<compile_context>
chip_gen: v7x
topology: tpu7x:2x2x1
jax: 0.10.0
libtpu: 0.0.40
codegen_flags: <defaults>
</compile_context>

<pallas_src>
import functools

import jax
import jax.numpy as jnp
from jax.experimental import pallas as pl
from jax.experimental.pallas import tpu as pltpu


def resblock_kernel(x_ref, w1_ref, b1_ref, w2_ref, b2_ref, out_ref, xpad_scr,
                    *, pad, res_scale):
    """One batch image per grid step.

    x_ref    : (1, H, W, C)   unpadded NHWC input block (also used for the residual add)
    w*_ref   : (K*K, C, C)    conv weights, one (Cin, Cout) matrix per tap
    b*_ref   : (1, C)         conv biases
    out_ref  : (1, H, W, C)
    xpad_scr : VMEM (H+2p, W+2p, C) scratch, reused as the padded input of both convs
    """
    Hp, Wp, C = xpad_scr.shape
    H = Hp - 2 * pad
    W = Wp - 2 * pad
    K = 2 * pad + 1
    HW = H * W

    # Zero only the halo strips (O(perimeter), not the whole scratch). Done every step so the
    # kernel stays correct when the batch axis is split across TensorCores.
    zrow = jnp.zeros((pad, Wp, C), jnp.float32)
    zcol = jnp.zeros((Hp, pad, C), jnp.float32)
    xpad_scr[0:pad, :, :] = zrow
    xpad_scr[H + pad:Hp, :, :] = zrow
    xpad_scr[:, 0:pad, :] = zcol
    xpad_scr[:, W + pad:Wp, :] = zcol

    x = x_ref[0]                                    # (H, W, C), already in VMEM
    xpad_scr[pad:pad + H, pad:pad + W, :] = x

    def conv(w_ref, b_ref):
        # Bias folded into the accumulator init; broadcast hoisted out of the tap loop.
        acc = jnp.broadcast_to(b_ref[...], (HW, C)).astype(jnp.float32)
        for dy in range(K):
            for dx in range(K):
                patch = xpad_scr[dy:dy + H, dx:dx + W, :].reshape(HW, C)
                acc = acc + jnp.dot(patch, w_ref[dy * K + dx],
                                    preferred_element_type=jnp.float32)
        return acc

    # conv1 + ReLU, then overwrite the scratch interior with the padded intermediate.
    mid = jnp.maximum(conv(w1_ref, b1_ref), 0.0)    # (HW, C)
    xpad_scr[pad:pad + H, pad:pad + W, :] = mid.reshape(H, W, C)

    # conv2, then res_scale * body(x) + x  (residual read straight from the resident input block).
    acc2 = conv(w2_ref, b2_ref)
    res = acc2 * res_scale + x.reshape(HW, C)
    out_ref[...] = res.reshape(1, H, W, C).astype(out_ref.dtype)


def resblock_pallas(x_nchw, w1, b1, w2, b2, *, res_scale=1.0):
    """x_nchw: (N, C, H, W); w*: (Cout, Cin, K, K) [PyTorch layout]; b*: (C,)."""
    N, C, H, W = x_nchw.shape
    Cout, Cin, KH, KW = w1.shape
    assert Cout == C and Cin == C and KH == KW
    K = KH
    pad = K // 2  # "same" padding, matching EDSR's default_conv

    # NCHW -> NHWC so channels sit on the lane axis and each tap is a (Cin, Cout) matmul.
    x = jnp.transpose(x_nchw, (0, 2, 3, 1)).astype(jnp.float32)

    # (Cout, Cin, K, K) -> (K*K, Cin, Cout)
    w1k = jnp.transpose(w1, (2, 3, 1, 0)).reshape(K * K, C, C).astype(jnp.float32)
    w2k = jnp.transpose(w2, (2, 3, 1, 0)).reshape(K * K, C, C).astype(jnp.float32)
    b1k = b1.reshape(1, C).astype(jnp.float32)
    b2k = b2.reshape(1, C).astype(jnp.float32)

    kern = functools.partial(resblock_kernel, pad=pad, res_scale=float(res_scale))

    out_nhwc = pl.pallas_call(
        kern,
        out_shape=jax.ShapeDtypeStruct((N, H, W, C), jnp.float32),
        grid_spec=pltpu.PrefetchScalarGridSpec(
            num_scalar_prefetch=0,
            grid=(N,),  # one image per step: pipelined DMA, independent steps
            in_specs=[
                pl.BlockSpec((1, H, W, C), lambda n: (n, 0, 0, 0)),   # x
                pl.BlockSpec((K * K, C, C), lambda n: (0, 0, 0)),     # w1 (resident)
                pl.BlockSpec((1, C), lambda n: (0, 0)),               # b1
                pl.BlockSpec((K * K, C, C), lambda n: (0, 0, 0)),     # w2
                pl.BlockSpec((1, C), lambda n: (0, 0)),               # b2
            ],
            out_specs=pl.BlockSpec((1, H, W, C), lambda n: (n, 0, 0, 0)),
            scratch_shapes=[pltpu.VMEM((H + 2 * pad, W + 2 * pad, C), jnp.float32)],
        ),
        compiler_params=pltpu.CompilerParams(
            dimension_semantics=("parallel",)),  # shards batch across v7x's 2 TensorCores
    )(x, w1k, b1k, w2k, b2k)

    return jnp.transpose(out_nhwc, (0, 3, 1, 2))  # back to NCHW


def resblock_reference(x, w1, b1, w2, b2, res_scale):
    """Pure-JAX reference mirroring the PyTorch forward (NCHW)."""
    dn = ('NCHW', 'OIHW', 'NCHW')
    y = jax.lax.conv_general_dilated(x, w1, (1, 1), 'SAME', dimension_numbers=dn)
    y = y + b1[None, :, None, None]
    y = jnp.maximum(y, 0.0)
    y = jax.lax.conv_general_dilated(y, w2, (1, 1), 'SAME', dimension_numbers=dn)
    y = y + b2[None, :, None, None]
    return y * res_scale + x


if __name__ == "__main__":
    # Small shapes consistent with ResBlock(conv, n_feat=4, kernel_size=3).
    N, C, H, W, K = 2, 4, 16, 16, 3
    res_scale = 0.1

    key = jax.random.PRNGKey(0)
    kx, k1, kb1, k2, kb2 = jax.random.split(key, 5)
    x = jax.random.normal(kx, (N, C, H, W), dtype=jnp.float32)
    w1 = 0.1 * jax.random.normal(k1, (C, C, K, K), dtype=jnp.float32)
    b1 = 0.1 * jax.random.normal(kb1, (C,), dtype=jnp.float32)
    w2 = 0.1 * jax.random.normal(k2, (C, C, K, K), dtype=jnp.float32)
    b2 = 0.1 * jax.random.normal(kb2, (C,), dtype=jnp.float32)

    out = resblock_pallas(x, w1, b1, w2, b2, res_scale=res_scale)
    out = jax.block_until_ready(out)

    ref = resblock_reference(x, w1, b1, w2, b2, res_scale)
    assert out.shape == (N, C, H, W)
    assert jnp.allclose(out, ref, atol=1e-4, rtol=1e-4), "mismatch vs reference"

    print("KERNEL_OK")
</pallas_src>

<mosaic_0001>
module attributes {stable_mosaic.version = 11 : i64} {
  func.func @resblock_kernel(%arg0: i32, %arg1: memref<1x16x16x4xf32, #tpu.memory_space<vmem>>, %arg2: memref<9x4x4xf32, #tpu.memory_space<vmem>>, %arg3: memref<1x4xf32, #tpu.memory_space<vmem>>, %arg4: memref<9x4x4xf32, #tpu.memory_space<vmem>>, %arg5: memref<1x4xf32, #tpu.memory_space<vmem>>, %arg6: memref<1x16x16x4xf32, #tpu.memory_space<vmem>>, %arg7: memref<18x18x4xf32, #tpu.memory_space<vmem>>) attributes {dimension_semantics = [#tpu.dimension_semantics<parallel>], iteration_bounds = array<i64: 2>, scalar_prefetch = 0 : i64, scratch_operands = 1 : i64, tpu.core_type = #tpu.core_type<tc>, window_params = [{transform_indices = @transform_0, window_bounds = array<i64: 1, 16, 16, 4>}, {pipeline_mode = #tpu.pipeline_mode<synchronous>, transform_indices = @transform_1, window_bounds = array<i64: 9, 4, 4>}, {pipeline_mode = #tpu.pipeline_mode<synchronous>, transform_indices = @transform_2, window_bounds = array<i64: 1, 4>}, {pipeline_mode = #tpu.pipeline_mode<synchronous>, transform_indices = @transform_3, window_bounds = array<i64: 9, 4, 4>}, {pipeline_mode = #tpu.pipeline_mode<synchronous>, transform_indices = @transform_4, window_bounds = array<i64: 1, 4>}, {transform_indices = @transform_5, window_bounds = array<i64: 1, 16, 16, 4>}]} {
    %cst = arith.constant 0.000000e+00 : f32
    %0 = vector.broadcast %cst : f32 to vector<1x18x4xf32>
    %cst_0 = arith.constant 0.000000e+00 : f32
    %1 = vector.broadcast %cst_0 : f32 to vector<18x1x4xf32>
    %c0 = arith.constant 0 : index
    %c0_1 = arith.constant 0 : index
    %c0_2 = arith.constant 0 : index
    %2 = vector.load %arg7[%c0, %c0_1, %c0_2] : memref<18x18x4xf32, #tpu.memory_space<vmem>>, vector<1x18x4xf32>
    tpu.vector_store %arg7[%c0, %c0_1, %c0_2], %0 {strides = array<i32>} : memref<18x18x4xf32, #tpu.memory_space<vmem>>, vector<1x18x4xf32>,
    %c17 = arith.constant 17 : index
    %c0_3 = arith.constant 0 : index
    %c0_4 = arith.constant 0 : index
    %3 = vector.load %arg7[%c17, %c0_3, %c0_4] : memref<18x18x4xf32, #tpu.memory_space<vmem>>, vector<1x18x4xf32>
    tpu.vector_store %arg7[%c17, %c0_3, %c0_4], %0 {strides = array<i32>} : memref<18x18x4xf32, #tpu.memory_space<vmem>>, vector<1x18x4xf32>,
    %c0_5 = arith.constant 0 : index
    %c0_6 = arith.constant 0 : index
    %c0_7 = arith.constant 0 : index
    %4 = vector.load %arg7[%c0_5, %c0_6, %c0_7] : memref<18x18x4xf32, #tpu.memory_space<vmem>>, vector<18x1x4xf32>
    tpu.vector_store %arg7[%c0_5, %c0_6, %c0_7], %1 {strides = array<i32>} : memref<18x18x4xf32, #tpu.memory_space<vmem>>, vector<18x1x4xf32>,
    %c0_8 = arith.constant 0 : index
    %c17_9 = arith.constant 17 : index
    %c0_10 = arith.constant 0 : index
    %5 = vector.load %arg7[%c0_8, %c17_9, %c0_10] : memref<18x18x4xf32, #tpu.memory_space<vmem>>, vector<18x1x4xf32>
    tpu.vector_store %arg7[%c0_8, %c17_9, %c0_10], %1 {strides = array<i32>} : memref<18x18x4xf32, #tpu.memory_space<vmem>>, vector<18x1x4xf32>,
    %c0_11 = arith.constant 0 : index
    %c0_12 = arith.constant 0 : index
    %c0_13 = arith.constant 0 : index
    %c0_14 = arith.constant 0 : index
    %6 = vector.load %arg1[%c0_11, %c0_12, %c0_13, %c0_14] : memref<1x16x16x4xf32, #tpu.memory_space<vmem>>, vector<1x16x16x4xf32>
    %7 = vector.shape_cast %6 : vector<1x16x16x4xf32> to vector<16x16x4xf32>
    %c1 = arith.constant 1 : index
    %c1_15 = arith.constant 1 : index
    %c0_16 = arith.constant 0 : index
    %8 = vector.load %arg7[%c1, %c1_15, %c0_16] : memref<18x18x4xf32, #tpu.memory_space<vmem>>, vector<16x16x4xf32>
    tpu.vector_store %arg7[%c1, %c1_15, %c0_16], %7 {strides = array<i32>} : memref<18x18x4xf32, #tpu.memory_space<vmem>>, vector<16x16x4xf32>,
    %c0_17 = arith.constant 0 : index
    %c0_18 = arith.constant 0 : index
    %9 = vector.load %arg3[%c0_17, %c0_18] : memref<1x4xf32, #tpu.memory_space<vmem>>, vector<1x4xf32>
    %10 = vector.shape_cast %9 : vector<1x4xf32> to vector<1x4xf32>
    %11 = vector.broadcast %10 : vector<1x4xf32> to vector<256x4xf32>
    %c0_19 = arith.constant 0 : index
    %c0_20 = arith.constant 0 : index
    %c0_21 = arith.constant 0 : index
    %12 = vector.load %arg7[%c0_19, %c0_20, %c0_21] : memref<18x18x4xf32, #tpu.memory_space<vmem>>, vector<16x16x4xf32>
    %13 = vector.shape_cast %12 : vector<16x16x4xf32> to vector<256x4xf32>
    %c0_22 = arith.constant 0 : index
    %c0_23 = arith.constant 0 : index
    %c0_24 = arith.constant 0 : index
    %14 = vector.load %arg2[%c0_22, %c0_23, %c0_24] : memref<9x4x4xf32, #tpu.memory_space<vmem>>, vector<1x4x4xf32>
    %15 = vector.shape_cast %14 : vector<1x4x4xf32> to vector<4x4xf32>
    %cst_25 = arith.constant dense<0.000000e+00> : vector<256x4xf32>
    %16 = tpu.matmul %13, %15, %cst_25 {dimension_numbers = #tpu.dot_dimension_numbers<[1], [0], [0], [1], [0, 0, 1, 1], [], []>} : vector<256x4xf32>, vector<4x4xf32>, vector<256x4xf32> -> vector<256x4xf32>
    %17 = arith.addf %11, %16 : vector<256x4xf32>
    %c0_26 = arith.constant 0 : index
    %c1_27 = arith.constant 1 : index
    %c0_28 = arith.constant 0 : index
    %18 = vector.load %arg7[%c0_26, %c1_27, %c0_28] : memref<18x18x4xf32, #tpu.memory_space<vmem>>, vector<16x16x4xf32>
    %19 = vector.shape_cast %18 : vector<16x16x4xf32> to vector<256x4xf32>
    %c1_29 = arith.constant 1 : index
    %c0_30 = arith.constant 0 : index
    %c0_31 = arith.constant 0 : index
    %20 = vector.load %arg2[%c1_29, %c0_30, %c0_31] : memref<9x4x4xf32, #tpu.memory_space<vmem>>, vector<1x4x4xf32>
    %21 = vector.shape_cast %20 : vector<1x4x4xf32> to vector<4x4xf32>
    %cst_32 = arith.constant dense<0.000000e+00> : vector<256x4xf32>
    %22 = tpu.matmul %19, %21, %cst_32 {dimension_numbers = #tpu.dot_dimension_numbers<[1], [0], [0], [1], [0, 0, 1, 1], [], []>} : vector<256x4xf32>, vector<4x4xf32>, vector<256x4xf32> -> vector<256x4xf32>
    %23 = arith.addf %17, %22 : vector<256x4xf32>
    %c0_33 = arith.constant 0 : index
    %c2 = arith.constant 2 : index
    %c0_34 = arith.constant 0 : index
    %24 = vector.load %arg7[%c0_33, %c2, %c0_34] : memref<18x18x4xf32, #tpu.memory_space<vmem>>, vector<16x16x4xf32>
    %25 = vector.shape_cast %24 : vector<16x16x4xf32> to vector<256x4xf32>
    %c2_35 = arith.constant 2 : index
    %c0_36 = arith.constant 0 : index
    %c0_37 = arith.constant 0 : index
    %26 = vector.load %arg2[%c2_35, %c0_36, %c0_37] : memref<9x4x4xf32, #tpu.memory_space<vmem>>, vector<1x4x4xf32>
    %27 = vector.shape_cast %26 : vector<1x4x4xf32> to vector<4x4xf32>
    %cst_38 = arith.constant dense<0.000000e+00> : vector<256x4xf32>
    %28 = tpu.matmul %25, %27, %cst_38 {dimension_numbers = #tpu.dot_dimension_numbers<[1], [0], [0], [1], [0, 0, 1, 1], [], []>} : vector<256x4xf32>, vector<4x4xf32>, vector<256x4xf32> -> vector<256x4xf32>
    %29 = arith.addf %23, %28 : vector<256x4xf32>
    %c1_39 = arith.constant 1 : index
    %c0_40 = arith.constant 0 : index
    %c0_41 = arith.constant 0 : index
    %30 = vector.load %arg7[%c1_39, %c0_40, %c0_41] : memref<18x18x4xf32, #tpu.memory_space<vmem>>, vector<16x16x4xf32>
    %31 = vector.shape_cast %30 : vector<16x16x4xf32> to vector<256x4xf32>
    %c3 = arith.constant 3 : index
    %c0_42 = arith.constant 0 : index
    %c0_43 = arith.constant 0 : index
    %32 = vector.load %arg2[%c3, %c0_42, %c0_43] : memref<9x4x4xf32, #tpu.memory_space<vmem>>, vector<1x4x4xf32>
    %33 = vector.shape_cast %32 : vector<1x4x4xf32> to vector<4x4xf32>
    %cst_44 = arith.constant dense<0.000000e+00> : vector<256x4xf32>
    %34 = tpu.matmul %31, %33, %cst_44 {dimension_numbers = #tpu.dot_dimension_numbers<[1], [0], [0], [1], [0, 0, 1, 1], [], []>} : vector<256x4xf32>, vector<4x4xf32>, vector<256x4xf32> -> vector<256x4xf32>
    %35 = arith.addf %29, %34 : vector<256x4xf32>
    %c1_45 = arith.constant 1 : index
    %c1_46 = arith.constant 1 : index
    %c0_47 = arith.constant 0 : index
    %36 = vector.load %arg7[%c1_45, %c1_46, %c0_47] : memref<18x18x4xf32, #tpu.memory_space<vmem>>, vector<16x16x4xf32>
    %37 = vector.shape_cast %36 : vector<16x16x4xf32> to vector<256x4xf32>
    %c4 = arith.constant 4 : index
    %c0_48 = arith.constant 0 : index
    %c0_49 = arith.constant 0 : index
    %38 = vector.load %arg2[%c4, %c0_48, %c0_49] : memref<9x4x4xf32, #tpu.memory_space<vmem>>, vector<1x4x4xf32>
    %39 = vector.shape_cast %38 : vector<1x4x4xf32> to vector<4x4xf32>
    %cst_50 = arith.constant dense<0.000000e+00> : vector<256x4xf32>
    %40 = tpu.matmul %37, %39, %cst_50 {dimension_numbers = #tpu.dot_dimension_numbers<[1], [0], [0], [1], [0, 0, 1, 1], [], []>} : vector<256x4xf32>, vector<4x4xf32>, vector<256x4xf32> -> vector<256x4xf32>
    %41 = arith.addf %35, %40 : vector<256x4xf32>
    %c1_51 = arith.constant 1 : index
    %c2_52 = arith.constant 2 : index
    %c0_53 = arith.constant 0 : index
    %42 = vector.load %arg7[%c1_51, %c2_52, %c0_53] : memref<18x18x4xf32, #tpu.memory_space<vmem>>, vector<16x16x4xf32>
    %43 = vector.shape_cast %42 : vector<16x16x4xf32> to vector<256x4xf32>
    %c5 = arith.constant 5 : index
    %c0_54 = arith.constant 0 : index
    %c0_55 = arith.constant 0 : index
    %44 = vector.load %arg2[%c5, %c0_54, %c0_55] : memref<9x4x4xf32, #tpu.memory_space<vmem>>, vector<1x4x4xf32>
    %45 = vector.shape_cast %44 : vector<1x4x4xf32> to vector<4x4xf32>
    %cst_56 = arith.constant dense<0.000000e+00> : vector<256x4xf32>
    %46 = tpu.matmul %43, %45, %cst_56 {dimension_numbers = #tpu.dot_dimension_numbers<[1], [0], [0], [1], [0, 0, 1, 1], [], []>} : vector<256x4xf32>, vector<4x4xf32>, vector<256x4xf32> -> vector<256x4xf32>
    %47 = arith.addf %41, %46 : vector<256x4xf32>
    %c2_57 = arith.constant 2 : index
    %c0_58 = arith.constant 0 : index
    %c0_59 = arith.constant 0 : index
    %48 = vector.load %arg7[%c2_57, %c0_58, %c0_59] : memref<18x18x4xf32, #tpu.memory_space<vmem>>, vector<16x16x4xf32>
    %49 = vector.shape_cast %48 : vector<16x16x4xf32> to vector<256x4xf32>
    %c6 = arith.constant 6 : index
    %c0_60 = arith.constant 0 : index
    %c0_61 = arith.constant 0 : index
    %50 = vector.load %arg2[%c6, %c0_60, %c0_61] : memref<9x4x4xf32, #tpu.memory_space<vmem>>, vector<1x4x4xf32>
    %51 = vector.shape_cast %50 : vector<1x4x4xf32> to vector<4x4xf32>
    %cst_62 = arith.constant dense<0.000000e+00> : vector<256x4xf32>
    %52 = tpu.matmul %49, %51, %cst_62 {dimension_numbers = #tpu.dot_dimension_numbers<[1], [0], [0], [1], [0, 0, 1, 1], [], []>} : vector<256x4xf32>, vector<4x4xf32>, vector<256x4xf32> -> vector<256x4xf32>
    %53 = arith.addf %47, %52 : vector<256x4xf32>
    %c2_63 = arith.constant 2 : index
    %c1_64 = arith.constant 1 : index
    %c0_65 = arith.constant 0 : index
    %54 = vector.load %arg7[%c2_63, %c1_64, %c0_65] : memref<18x18x4xf32, #tpu.memory_space<vmem>>, vector<16x16x4xf32>
    %55 = vector.shape_cast %54 : vector<16x16x4xf32> to vector<256x4xf32>
    %c7 = arith.constant 7 : index
    %c0_66 = arith.constant 0 : index
    %c0_67 = arith.constant 0 : index
    %56 = vector.load %arg2[%c7, %c0_66, %c0_67] : memref<9x4x4xf32, #tpu.memory_space<vmem>>, vector<1x4x4xf32>
    %57 = vector.shape_cast %56 : vector<1x4x4xf32> to vector<4x4xf32>
    %cst_68 = arith.constant dense<0.000000e+00> : vector<256x4xf32>
    %58 = tpu.matmul %55, %57, %cst_68 {dimension_numbers = #tpu.dot_dimension_numbers<[1], [0], [0], [1], [0, 0, 1, 1], [], []>} : vector<256x4xf32>, vector<4x4xf32>, vector<256x4xf32> -> vector<256x4xf32>
    %59 = arith.addf %53, %58 : vector<256x4xf32>
    %c2_69 = arith.constant 2 : index
    %c2_70 = arith.constant 2 : index
    %c0_71 = arith.constant 0 : index
    %60 = vector.load %arg7[%c2_69, %c2_70, %c0_71] : memref<18x18x4xf32, #tpu.memory_space<vmem>>, vector<16x16x4xf32>
    %61 = vector.shape_cast %60 : vector<16x16x4xf32> to vector<256x4xf32>
    %c8 = arith.constant 8 : index
    %c0_72 = arith.constant 0 : index
    %c0_73 = arith.constant 0 : index
    %62 = vector.load %arg2[%c8, %c0_72, %c0_73] : memref<9x4x4xf32, #tpu.memory_space<vmem>>, vector<1x4x4xf32>
    %63 = vector.shape_cast %62 : vector<1x4x4xf32> to vector<4x4xf32>
    %cst_74 = arith.constant dense<0.000000e+00> : vector<256x4xf32>
    %64 = tpu.matmul %61, %63, %cst_74 {dimension_numbers = #tpu.dot_dimension_numbers<[1], [0], [0], [1], [0, 0, 1, 1], [], []>} : vector<256x4xf32>, vector<4x4xf32>, vector<256x4xf32> -> vector<256x4xf32>
    %65 = arith.addf %59, %64 : vector<256x4xf32>
    %cst_75 = arith.constant 0.000000e+00 : f32
    %66 = vector.broadcast %cst_75 : f32 to vector<256x4xf32>
    %67 = arith.maximumf %65, %66 : vector<256x4xf32>
    %68 = vector.shape_cast %67 : vector<256x4xf32> to vector<16x16x4xf32>
    %c1_76 = arith.constant 1 : index
    %c1_77 = arith.constant 1 : index
    %c0_78 = arith.constant 0 : index
    %69 = vector.load %arg7[%c1_76, %c1_77, %c0_78] : memref<18x18x4xf32, #tpu.memory_space<vmem>>, vector<16x16x4xf32>
    tpu.vector_store %arg7[%c1_76, %c1_77, %c0_78], %68 {strides = array<i32>} : memref<18x18x4xf32, #tpu.memory_space<vmem>>, vector<16x16x4xf32>,
    %c0_79 = arith.constant 0 : index
    %c0_80 = arith.constant 0 : index
    %70 = vector.load %arg5[%c0_79, %c0_80] : memref<1x4xf32, #tpu.memory_space<vmem>>, vector<1x4xf32>
    %71 = vector.shape_cast %70 : vector<1x4xf32> to vector<1x4xf32>
    %72 = vector.broadcast %71 : vector<1x4xf32> to vector<256x4xf32>
    %c0_81 = arith.constant 0 : index
    %c0_82 = arith.constant 0 : index
    %c0_83 = arith.constant 0 : index
    %73 = vector.load %arg7[%c0_81, %c0_82, %c0_83] : memref<18x18x4xf32, #tpu.memory_space<vmem>>, vector<16x16x4xf32>
    %74 = vector.shape_cast %73 : vector<16x16x4xf32> to vector<256x4xf32>
    %c0_84 = arith.constant 0 : index
    %c0_85 = arith.constant 0 : index
    %c0_86 = arith.constant 0 : index
    %75 = vector.load %arg4[%c0_84, %c0_85, %c0_86] : memref<9x4x4xf32, #tpu.memory_space<vmem>>, vector<1x4x4xf32>
    %76 = vector.shape_cast %75 : vector<1x4x4xf32> to vector<4x4xf32>
    %cst_87 = arith.constant dense<0.000000e+00> : vector<256x4xf32>
    %77 = tpu.matmul %74, %76, %cst_87 {dimension_numbers = #tpu.dot_dimension_numbers<[1], [0], [0], [1], [0, 0, 1, 1], [], []>} : vector<256x4xf32>, vector<4x4xf32>, vector<256x4xf32> -> vector<256x4xf32>
    %78 = arith.addf %72, %77 : vector<256x4xf32>
    %c0_88 = arith.constant 0 : index
    %c1_89 = arith.constant 1 : index
    %c0_90 = arith.constant 0 : index
    %79 = vector.load %arg7[%c0_88, %c1_89, %c0_90] : memref<18x18x4xf32, #tpu.memory_space<vmem>>, vector<16x16x4xf32>
    %80 = vector.shape_cast %79 : vector<16x16x4xf32> to vector<256x4xf32>
    %c1_91 = arith.constant 1 : index
    %c0_92 = arith.constant 0 : index
    %c0_93 = arith.constant 0 : index
    %81 = vector.load %arg4[%c1_91, %c0_92, %c0_93] : memref<9x4x4xf32, #tpu.memory_space<vmem>>, vector<1x4x4xf32>
    %82 = vector.shape_cast %81 : vector<1x4x4xf32> to vector<4x4xf32>
    %cst_94 = arith.constant dense<0.000000e+00> : vector<256x4xf32>
    %83 = tpu.matmul %80, %82, %cst_94 {dimension_numbers = #tpu.dot_dimension_numbers<[1], [0], [0], [1], [0, 0, 1, 1], [], []>} : vector<256x4xf32>, vector<4x4xf32>, vector<256x4xf32> -> vector<256x4xf32>
    %84 = arith.addf %78, %83 : vector<256x4xf32>
    %c0_95 = arith.constant 0 : index
    %c2_96 = arith.constant 2 : index
    %c0_97 = arith.constant 0 : index
    %85 = vector.load %arg7[%c0_95, %c2_96, %c0_97] : memref<18x18x4xf32, #tpu.memory_space<vmem>>, vector<16x16x4xf32>
    %86 = vector.shape_cast %85 : vector<16x16x4xf32> to vector<256x4xf32>
    %c2_98 = arith.constant 2 : index
    %c0_99 = arith.constant 0 : index
    %c0_100 = arith.constant 0 : index
    %87 = vector.load %arg4[%c2_98, %c0_99, %c0_100] : memref<9x4x4xf32, #tpu.memory_space<vmem>>, vector<1x4x4xf32>
    %88 = vector.shape_cast %87 : vector<1x4x4xf32> to vector<4x4xf32>
    %cst_101 = arith.constant dense<0.000000e+00> : vector<256x4xf32>
    %89 = tpu.matmul %86, %88, %cst_101 {dimension_numbers = #tpu.dot_dimension_numbers<[1], [0], [0], [1], [0, 0, 1, 1], [], []>} : vector<256x4xf32>, vector<4x4xf32>, vector<256x4xf32> -> vector<256x4xf32>
    %90 = arith.addf %84, %89 : vector<256x4xf32>
    %c1_102 = arith.constant 1 : index
    %c0_103 = arith.constant 0 : index
    %c0_104 = arith.constant 0 : index
    %91 = vector.load %arg7[%c1_102, %c0_103, %c0_104] : memref<18x18x4xf32, #tpu.memory_space<vmem>>, vector<16x16x4xf32>
    %92 = vector.shape_cast %91 : vector<16x16x4xf32> to vector<256x4xf32>
    %c3_105 = arith.constant 3 : index
    %c0_106 = arith.constant 0 : index
    %c0_107 = arith.constant 0 : index
    %93 = vector.load %arg4[%c3_105, %c0_106, %c0_107] : memref<9x4x4xf32, #tpu.memory_space<vmem>>, vector<1x4x4xf32>
    %94 = vector.shape_cast %93 : vector<1x4x4xf32> to vector<4x4xf32>
    %cst_108 = arith.constant dense<0.000000e+00> : vector<256x4xf32>
    %95 = tpu.matmul %92, %94, %cst_108 {dimension_numbers = #tpu.dot_dimension_numbers<[1], [0], [0], [1], [0, 0, 1, 1], [], []>} : vector<256x4xf32>, vector<4x4xf32>, vector<256x4xf32> -> vector<256x4xf32>
    %96 = arith.addf %90, %95 : vector<256x4xf32>
    %c1_109 = arith.constant 1 : index
    %c1_110 = arith.constant 1 : index
    %c0_111 = arith.constant 0 : index
    %97 = vector.load %arg7[%c1_109, %c1_110, %c0_111] : memref<18x18x4xf32, #tpu.memory_space<vmem>>, vector<16x16x4xf32>
    %98 = vector.shape_cast %97 : vector<16x16x4xf32> to vector<256x4xf32>
    %c4_112 = arith.constant 4 : index
    %c0_113 = arith.constant 0 : index
    %c0_114 = arith.constant 0 : index
    %99 = vector.load %arg4[%c4_112, %c0_113, %c0_114] : memref<9x4x4xf32, #tpu.memory_space<vmem>>, vector<1x4x4xf32>
    %100 = vector.shape_cast %99 : vector<1x4x4xf32> to vector<4x4xf32>
    %cst_115 = arith.constant dense<0.000000e+00> : vector<256x4xf32>
    %101 = tpu.matmul %98, %100, %cst_115 {dimension_numbers = #tpu.dot_dimension_numbers<[1], [0], [0], [1], [0, 0, 1, 1], [], []>} : vector<256x4xf32>, vector<4x4xf32>, vector<256x4xf32> -> vector<256x4xf32>
    %102 = arith.addf %96, %101 : vector<256x4xf32>
    %c1_116 = arith.constant 1 : index
    %c2_117 = arith.constant 2 : index
    %c0_118 = arith.constant 0 : index
    %103 = vector.load %arg7[%c1_116, %c2_117, %c0_118] : memref<18x18x4xf32, #tpu.memory_space<vmem>>, vector<16x16x4xf32>
    %104 = vector.shape_cast %103 : vector<16x16x4xf32> to vector<256x4xf32>
    %c5_119 = arith.constant 5 : index
    %c0_120 = arith.constant 0 : index
    %c0_121 = arith.constant 0 : index
    %105 = vector.load %arg4[%c5_119, %c0_120, %c0_121] : memref<9x4x4xf32, #tpu.memory_space<vmem>>, vector<1x4x4xf32>
    %106 = vector.shape_cast %105 : vector<1x4x4xf32> to vector<4x4xf32>
    %cst_122 = arith.constant dense<0.000000e+00> : vector<256x4xf32>
    %107 = tpu.matmul %104, %106, %cst_122 {dimension_numbers = #tpu.dot_dimension_numbers<[1], [0], [0], [1], [0, 0, 1, 1], [], []>} : vector<256x4xf32>, vector<4x4xf32>, vector<256x4xf32> -> vector<256x4xf32>
    %108 = arith.addf %102, %107 : vector<256x4xf32>
    %c2_123 = arith.constant 2 : index
    %c0_124 = arith.constant 0 : index
    %c0_125 = arith.constant 0 : index
    %109 = vector.load %arg7[%c2_123, %c0_124, %c0_125] : memref<18x18x4xf32, #tpu.memory_space<vmem>>, vector<16x16x4xf32>
    %110 = vector.shape_cast %109 : vector<16x16x4xf32> to vector<256x4xf32>
    %c6_126 = arith.constant 6 : index
    %c0_127 = arith.constant 0 : index
    %c0_128 = arith.constant 0 : index
    %111 = vector.load %arg4[%c6_126, %c0_127, %c0_128] : memref<9x4x4xf32, #tpu.memory_space<vmem>>, vector<1x4x4xf32>
    %112 = vector.shape_cast %111 : vector<1x4x4xf32> to vector<4x4xf32>
    %cst_129 = arith.constant dense<0.000000e+00> : vector<256x4xf32>
    %113 = tpu.matmul %110, %112, %cst_129 {dimension_numbers = #tpu.dot_dimension_numbers<[1], [0], [0], [1], [0, 0, 1, 1], [], []>} : vector<256x4xf32>, vector<4x4xf32>, vector<256x4xf32> -> vector<256x4xf32>
    %114 = arith.addf %108, %113 : vector<256x4xf32>
    %c2_130 = arith.constant 2 : index
    %c1_131 = arith.constant 1 : index
    %c0_132 = arith.constant 0 : index
    %115 = vector.load %arg7[%c2_130, %c1_131, %c0_132] : memref<18x18x4xf32, #tpu.memory_space<vmem>>, vector<16x16x4xf32>
    %116 = vector.shape_cast %115 : vector<16x16x4xf32> to vector<256x4xf32>
    %c7_133 = arith.constant 7 : index
    %c0_134 = arith.constant 0 : index
    %c0_135 = arith.constant 0 : index
    %117 = vector.load %arg4[%c7_133, %c0_134, %c0_135] : memref<9x4x4xf32, #tpu.memory_space<vmem>>, vector<1x4x4xf32>
    %118 = vector.shape_cast %117 : vector<1x4x4xf32> to vector<4x4xf32>
    %cst_136 = arith.constant dense<0.000000e+00> : vector<256x4xf32>
    %119 = tpu.matmul %116, %118, %cst_136 {dimension_numbers = #tpu.dot_dimension_numbers<[1], [0], [0], [1], [0, 0, 1, 1], [], []>} : vector<256x4xf32>, vector<4x4xf32>, vector<256x4xf32> -> vector<256x4xf32>
    %120 = arith.addf %114, %119 : vector<256x4xf32>
    %c2_137 = arith.constant 2 : index
    %c2_138 = arith.constant 2 : index
    %c0_139 = arith.constant 0 : index
    %121 = vector.load %arg7[%c2_137, %c2_138, %c0_139] : memref<18x18x4xf32, #tpu.memory_space<vmem>>, vector<16x16x4xf32>
    %122 = vector.shape_cast %121 : vector<16x16x4xf32> to vector<256x4xf32>
    %c8_140 = arith.constant 8 : index
    %c0_141 = arith.constant 0 : index
    %c0_142 = arith.constant 0 : index
    %123 = vector.load %arg4[%c8_140, %c0_141, %c0_142] : memref<9x4x4xf32, #tpu.memory_space<vmem>>, vector<1x4x4xf32>
    %124 = vector.shape_cast %123 : vector<1x4x4xf32> to vector<4x4xf32>
    %cst_143 = arith.constant dense<0.000000e+00> : vector<256x4xf32>
    %125 = tpu.matmul %122, %124, %cst_143 {dimension_numbers = #tpu.dot_dimension_numbers<[1], [0], [0], [1], [0, 0, 1, 1], [], []>} : vector<256x4xf32>, vector<4x4xf32>, vector<256x4xf32> -> vector<256x4xf32>
    %126 = arith.addf %120, %125 : vector<256x4xf32>
    %cst_144 = arith.constant 1.000000e-01 : f32
    %127 = vector.broadcast %cst_144 : f32 to vector<256x4xf32>
    %128 = arith.mulf %126, %127 : vector<256x4xf32>
    %129 = vector.shape_cast %7 : vector<16x16x4xf32> to vector<256x4xf32>
    %130 = arith.addf %128, %129 : vector<256x4xf32>
    %131 = vector.shape_cast %130 : vector<256x4xf32> to vector<1x16x16x4xf32>
    %c0_145 = arith.constant 0 : index
    %c0_146 = arith.constant 0 : index
    %c0_147 = arith.constant 0 : index
    %c0_148 = arith.constant 0 : index
    %132 = vector.load %arg6[%c0_145, %c0_146, %c0_147, %c0_148] : memref<1x16x16x4xf32, #tpu.memory_space<vmem>>, vector<1x16x16x4xf32>
    tpu.vector_store %arg6[%c0_145, %c0_146, %c0_147, %c0_148], %131 {strides = array<i32>} : memref<1x16x16x4xf32, #tpu.memory_space<vmem>>, vector<1x16x16x4xf32>,
    return
  }
  func.func @transform_0(%arg0: i32) -> (i32, i32, i32, i32) {
    %c0_i32 = arith.constant 0 : i32
    %c0_i32_0 = arith.constant 0 : i32
    %c0_i32_1 = arith.constant 0 : i32
    %c0_i32_2 = arith.constant 0 : i32
    return %arg0, %c0_i32, %c0_i32_0, %c0_i32_1 : i32, i32, i32, i32
  }
  func.func @transform_1(%arg0: i32) -> (i32, i32, i32) {
    %c0_i32 = arith.constant 0 : i32
    %c0_i32_0 = arith.constant 0 : i32
    %c0_i32_1 = arith.constant 0 : i32
    %c0_i32_2 = arith.constant 0 : i32
    return %c0_i32, %c0_i32_0, %c0_i32_1 : i32, i32, i32
  }
  func.func @transform_2(%arg0: i32) -> (i32, i32) {
    %c0_i32 = arith.constant 0 : i32
    %c0_i32_0 = arith.constant 0 : i32
    %c0_i32_1 = arith.constant 0 : i32
    return %c0_i32, %c0_i32_0 : i32, i32
  }
  func.func @transform_3(%arg0: i32) -> (i32, i32, i32) {
    %c0_i32 = arith.constant 0 : i32
    %c0_i32_0 = arith.constant 0 : i32
    %c0_i32_1 = arith.constant 0 : i32
    %c0_i32_2 = arith.constant 0 : i32
    return %c0_i32, %c0_i32_0, %c0_i32_1 : i32, i32, i32
  }
  func.func @transform_4(%arg0: i32) -> (i32, i32) {
    %c0_i32 = arith.constant 0 : i32
    %c0_i32_0 = arith.constant 0 : i32
    %c0_i32_1 = arith.constant 0 : i32
    return %c0_i32, %c0_i32_0 : i32, i32
  }
  func.func @transform_5(%arg0: i32) -> (i32, i32, i32, i32) {
    %c0_i32 = arith.constant 0 : i32
    %c0_i32_0 = arith.constant 0 : i32
    %c0_i32_1 = arith.constant 0 : i32
    %c0_i32_2 = arith.constant 0 : i32
    return %arg0, %c0_i32, %c0_i32_0, %c0_i32_1 : i32, i32, i32, i32
  }
}

</mosaic_0001>

<bundles_post_ra>
// kernel: tpu_custom_call.1
= control target key start
LH: loop header
LB: loop body
LE: loop exit
PB: predicated region body
PF: predicated region fallthrough
CT: control target
= control target key end

     0   :  { %s10328_s18 = smov 0   ;;  %s12388_s0 = inlined_call_operand.vmem [shape: f32[2,16,16,4], index: 0, kind: input, shape index: {}]   ;;  %s12389_s1 = inlined_call_operand.vmem [shape: f32[9,4,4], index: 1, kind: input, shape index: {}]   ;;  %s12390_s2 = inlined_call_operand.vmem [shape: f32[1,4], index: 2, kind: input, shape index: {}]   ;;  %s12391_s3 = inlined_call_operand.vmem [shape: f32[9,4,4], index: 3, kind: input, shape index: {}]   ;;  %s12392_s4 = inlined_call_operand.vmem [shape: f32[1,4], index: 4, kind: input, shape index: {}]   ;;  %s12393_s5 = inlined_call_operand.vmem [shape: f32[2,16,16,4], index: 5, kind: output, shape index: {}]  }
   0x1 LB: > { %s7585_s19 = sadd.s32 4294967295, %s10295_s18   ;;  %p7589_p0 = scmp.ge.s32.totalorder %s10295_s18, 1  ;;  %s10295_s18 = sphi %s10328_s18, %s15_s18  }
   0x2   : > { %p187_p1 = scmp.lt.s32.totalorder %s10295_s18, 3 }
   0x4   : > { %p188_p2 = pnand %p7589_p0, %p187_p1 }
   0x6   : > { %191 = sbr.rel (%p188_p2) target bundleno = 1567 (0x61f), region = 40 }
   0xd   : > { %v375_v0 = vld [vmem:[%s12389_s1] sm:$0xf]  ;;  %vm472_vm0 = vcmask 1043456   ;;  %vm225_vm1 = vcmask 31744   ;;  %vm234_vm2 = vcmask 24576   ;;  %v10297_v1 = vmov 0.0  }
   0xe   : > { %8804 = vmatprep.subr.msk.mxu0 %vm472_vm0, %v375_v0  ;;  %226 = vst.msk [vmem:[#allocation2] sm:$0xff] %vm225_vm1, %v10297_v1  ;;  %227 = vst.msk [vmem:[#allocation2 + $0x8] sm:$0xff] %vm225_vm1, %v10297_v1  ;;  %v7628_v2 = vld [vmem:[%s12389_s1 + $0x4] sm:$0xf]  ;;  %p215_p3 = scmp.lt.s32.totalorder %s7585_s19, 1  ;;  %vm228_vm3 = vcmask 25600  }
   0xf   : > { %231 = vst.msk [vmem:[#allocation2 + $0x198] sm:$0xff] %vm225_vm1, %v10297_v1  ;;  %232 = vst.msk [vmem:[#allocation2 + $0x1a0] sm:$0xff] %vm225_vm1, %v10297_v1  ;;  %8805 = vmatpush3.msk.msra.mxu0 %vm472_vm0, %v375_v0  ;;  %v10423_v9 = vld [vmem:[%s12389_s1 + $0x8] sm:$0xf] }
  0x10   : > { %236 = vst.msk [vmem:[#allocation2 + $0x18] sm:$0x1] %vm234_vm2, %v10297_v1  ;;  %237 = vst.msk [vmem:[#allocation2 + $0x30] sm:$0x1] %vm234_vm2, %v10297_v1  ;;  %8854 = vmatprep.subr.msk.mxu0 %vm472_vm0, %v7628_v2  ;;  %s12799_s19 = smov (!%p215_p3, %s7585_s19), 1 }
  0x11   : > { %238 = vst.msk [vmem:[#allocation2 + $0x48] sm:$0x1] %vm234_vm2, %v10297_v1  ;;  %239 = vst.msk [vmem:[#allocation2 + $0x60] sm:$0x1] %vm234_vm2, %v10297_v1  ;;  %s8208_s24 = sshll.u32 %s12799_s19, 8 }
  0x12   : > { %240 = vst.msk [vmem:[#allocation2 + $0x78] sm:$0x1] %vm234_vm2, %v10297_v1  ;;  %241 = vst.msk [vmem:[#allocation2 + $0x90] sm:$0x1] %vm234_vm2, %v10297_v1  ;;  %s10397_s27 = scalar_lea.vmem %s12388_s0, %s8208_s24  ;;  %s12257_s21 = scalar_lea.vmem %s12393_s5, %s8208_s24 }
  0x13   : > { %242 = vst.msk [vmem:[#allocation2 + $0xa8] sm:$0x1] %vm234_vm2, %v10297_v1  ;;  %243 = vst.msk [vmem:[#allocation2 + $0xc0] sm:$0x1] %vm234_vm2, %v10297_v1  ;;  %v10400_v3 = vld [vmem:[%s10397_s27] sm:$0xff]  ;;  %v10403_v4 = vld [vmem:[%s10397_s27 + $0x8] sm:$0xff] }
  0x14   : > { %244 = vst.msk [vmem:[#allocation2 + $0xd8] sm:$0x1] %vm234_vm2, %v10297_v1  ;;  %245 = vst.msk [vmem:[#allocation2 + $0xf0] sm:$0x1] %vm234_vm2, %v10297_v1  ;;  %v10406_v5 = vld [vmem:[%s10397_s27 + $0x10] sm:$0xff]  ;;  %v10415_v7 = vld [vmem:[%s10397_s27 + $0x18] sm:$0xff] }
  0x15   : > { %246 = vst.msk [vmem:[#allocation2 + $0x108] sm:$0x1] %vm234_vm2, %v10297_v1  ;;  %247 = vst.msk [vmem:[#allocation2 + $0x120] sm:$0x1] %vm234_vm2, %v10297_v1  ;;  %v344_v6 = vld [vmem:[#allocation2 + $0x8] sm:$0xff]  ;;  %v10418_v8 = vld [vmem:[%s10397_s27 + $0x20] sm:$0xff] }
  0x16   : > { %248 = vst.msk [vmem:[#allocation2 + $0x138] sm:$0x1] %vm234_vm2, %v10297_v1  ;;  %249 = vst.msk [vmem:[#allocation2 + $0x150] sm:$0x1] %vm234_vm2, %v10297_v1  ;;  %v10430_v11 = vld [vmem:[%s10397_s27 + $0x28] sm:$0xff]  ;;  %v10433_v12 = vld [vmem:[%s10397_s27 + $0x30] sm:$0xff] }
  0x17   : > { %250 = vst.msk [vmem:[#allocation2 + $0x168] sm:$0x1] %vm234_vm2, %v10297_v1  ;;  %251 = vst.msk [vmem:[#allocation2 + $0x180] sm:$0x1] %vm234_vm2, %v10297_v1  ;;  %v10441_v13 = vld [vmem:[%s10397_s27 + $0x38] sm:$0xff]  ;;  %v10444_v14 = vld [vmem:[%s10397_s27 + $0x40] sm:$0xff] }
  0x18   : > { %254 = vst.msk [vmem:[#allocation2 + $0x29] sm:$0x1] %vm234_vm2, %v10297_v1  ;;  %255 = vst.msk [vmem:[#allocation2 + $0x41] sm:$0x1] %vm234_vm2, %v10297_v1  ;;  %v10447_v15 = vld [vmem:[%s10397_s27 + $0x48] sm:$0xff]  ;;  %v10457_v16 = vld [vmem:[%s10397_s27 + $0x50] sm:$0xff] }
  0x19   : > { %256 = vst.msk [vmem:[#allocation2 + $0x59] sm:$0x1] %vm234_vm2, %v10297_v1  ;;  %257 = vst.msk [vmem:[#allocation2 + $0x71] sm:$0x1] %vm234_vm2, %v10297_v1  ;;  %v10460_v17 = vld [vmem:[%s10397_s27 + $0x58] sm:$0xff]  ;;  %v10463_v18 = vld [vmem:[%s10397_s27 + $0x60] sm:$0xff] }
  0x1a   : > { %258 = vst.msk [vmem:[#allocation2 + $0x89] sm:$0x1] %vm234_vm2, %v10297_v1  ;;  %259 = vst.msk [vmem:[#allocation2 + $0xa1] sm:$0x1] %vm234_vm2, %v10297_v1  ;;  %v10473_v19 = vld [vmem:[%s10397_s27 + $0x68] sm:$0xff]  ;;  %v10476_v20 = vld [vmem:[%s10397_s27 + $0x70] sm:$0xff] }
  0x1b   : > { %260 = vst.msk [vmem:[#allocation2 + $0xb9] sm:$0x1] %vm234_vm2, %v10297_v1  ;;  %261 = vst.msk [vmem:[#allocation2 + $0xd1] sm:$0x1] %vm234_vm2, %v10297_v1  ;;  %v10479_v21 = vld [vmem:[%s10397_s27 + $0x78] sm:$0xff]  ;;  %v10488_v22 = vld [vmem:[%s10397_s27 + $0x80] sm:$0xff] }
  0x1c   : > { %262 = vst.msk [vmem:[#allocation2 + $0xe9] sm:$0x1] %vm234_vm2, %v10297_v1  ;;  %263 = vst.msk [vmem:[#allocation2 + $0x101] sm:$0x1] %vm234_vm2, %v10297_v1  ;;  %v10491_v23 = vld [vmem:[%s10397_s27 + $0x88] sm:$0xff]  ;;  %v10494_v24 = vld [vmem:[%s10397_s27 + $0x90] sm:$0xff] }
  0x1d   : > { %264 = vst.msk [vmem:[#allocation2 + $0x119] sm:$0x1] %vm234_vm2, %v10297_v1  ;;  %265 = vst.msk [vmem:[#allocation2 + $0x131] sm:$0x1] %vm234_vm2, %v10297_v1  ;;  %v10505_v25 = vld [vmem:[%s10397_s27 + $0x98] sm:$0xff]  ;;  %v10508_v26 = vld [vmem:[%s10397_s27 + $0xa0] sm:$0xff] }
  0x1e   : > { %266 = vst.msk [vmem:[#allocation2 + $0x149] sm:$0x1] %vm234_vm2, %v10297_v1  ;;  %267 = vst.msk [vmem:[#allocation2 + $0x161] sm:$0x1] %vm234_vm2, %v10297_v1  ;;  %v10511_v27 = vld [vmem:[%s10397_s27 + $0xa8] sm:$0xff]  ;;  %v10528_v31 = vld [vmem:[%s10397_s27 + $0xb0] sm:$0xff] }
  0x1f   : > { %268 = vst.msk [vmem:[#allocation2 + $0x179] sm:$0x1] %vm234_vm2, %v10297_v1  ;;  %269 = vst.msk [vmem:[#allocation2 + $0x191] sm:$0x1] %vm234_vm2, %v10297_v1  ;;  %v10535_v32 = vld [vmem:[%s10397_s27 + $0xb8] sm:$0xff]  ;;  %v10554_v37 = vld [vmem:[%s10397_s27 + $0xc0] sm:$0xff] }
  0x20   : > { %235 = vst.msk [vmem:[#allocation2] sm:$0x1] %vm234_vm2, %v10297_v1  ;;  %252 = vst.msk [vmem:[#allocation2 + $0x198] sm:$0x1] %vm234_vm2, %v10297_v1  ;;  %v10557_v38 = vld [vmem:[%s10397_s27 + $0xc8] sm:$0xff]  ;;  %v10560_v39 = vld [vmem:[%s10397_s27 + $0xd0] sm:$0xff] }
  0x21   : > { %229 = vst.msk [vmem:[#allocation2 + $0x10] sm:$0x3] %vm228_vm3, %v10297_v1  ;;  %233 = vst.msk [vmem:[#allocation2 + $0x1a8] sm:$0x3] %vm228_vm3, %v10297_v1  ;;  %v10569_v40 = vld [vmem:[%s10397_s27 + $0xd8] sm:$0xff]  ;;  %v10572_v41 = vld [vmem:[%s10397_s27 + $0xe0] sm:$0xff] }
  0x22   : > { %253 = vst.msk [vmem:[#allocation2 + $0x11] sm:$0x1] %vm234_vm2, %v10297_v1  ;;  %270 = vst.msk [vmem:[#allocation2 + $0x1a9] sm:$0x1] %vm234_vm2, %v10297_v1  ;;  %v10581_v42 = vld [vmem:[%s10397_s27 + $0xe8] sm:$0xff] }
  0x23   : > { %12550 = vst [vmem:[#allocation3_spill] sm:$0xff] %v10400_v3  ;;  %12551 = vst [vmem:[#allocation4_spill] sm:$0xff] %v10403_v4 }
  0x24   : > { %12552 = vst [vmem:[#allocation5_spill] sm:$0xff] %v10406_v5  ;;  %304 = vst.msk [vmem:[#allocation2 + $0x19] sm:$0xff] %vm225_vm1, %v10400_v3  ;;  %v1123_v3 = vld [vmem:[#allocation2 + $0x2] sm:$0xff] }
  0x25   : > { %305 = vst.msk [vmem:[#allocation2 + $0x21] sm:$0xff] %vm225_vm1, %v10403_v4  ;;  %306 = vst.msk [vmem:[#allocation2 + $0x31] sm:$0xff] %vm225_vm1, %v10406_v5 }
  0x26   : > { %12553 = vst [vmem:[#allocation6_spill] sm:$0xff] %v10415_v7  ;;  %12554 = vst [vmem:[#allocation7_spill] sm:$0xff] %v10418_v8 }
  0x27   : > { %v343_v10 = vld [vmem:[#allocation2] sm:$0xff]  ;;  %307 = vst.msk [vmem:[#allocation2 + $0x39] sm:$0xff] %vm225_vm1, %v10415_v7  ;;  %308 = vst.msk [vmem:[#allocation2 + $0x49] sm:$0xff] %vm225_vm1, %v10418_v8  ;;  %v10795_v8 = vld [vmem:[%s10397_s27 + $0xf0] sm:$0xff] }
  0x28   : > { %12555 = vst [vmem:[#allocation8_spill] sm:$0xff] %v10430_v11  ;;  %12556 = vst [vmem:[#allocation9_spill] sm:$0xff] %v10433_v12  ;;  %8806 = vmatprep.mubr.msk.f32.mxu0 %vm225_vm1, %v343_v10 }
  0x29   : > { %309 = vst.msk [vmem:[#allocation2 + $0x51] sm:$0xff] %vm225_vm1, %v10430_v11  ;;  %310 = vst.msk [vmem:[#allocation2 + $0x61] sm:$0xff] %vm225_vm1, %v10433_v12  ;;  %8807 = vmatmul.mubr.msk.f32.vlgmr.msra.gmra.mrb[0].mxu0 %vm225_vm1, %v344_v6  ;;  %v734_v6 = vld [vmem:[#allocation2 + $0x9] sm:$0xff]  ;;  %v10800_v11 = vld [vmem:[%s10397_s27 + $0xf8] sm:$0xff] }
  0x2a   : > { %12557 = vst [vmem:[#allocation10_spill] sm:$0xff] %v10441_v13  ;;  %12558 = vst [vmem:[#allocation11_spill] sm:$0xff] %v10444_v14  ;;  %8855 = vmatpush3.msk.msra.mxu0 %vm472_vm0, %v7628_v2  ;;  %v733_v2 = vld [vmem:[#allocation2 + $0x1] sm:$0xff] }
  0x2b   : > { %12559 = vst [vmem:[#allocation12_spill] sm:$0xff] %v10447_v15  ;;  %311 = vst.msk [vmem:[#allocation2 + $0x69] sm:$0xff] %vm225_vm1, %v10441_v13  ;;  %8904 = vmatprep.subr.msk.mxu0 %vm472_vm0, %v10423_v9  ;;  %v10513_v28 = vld [vmem:[#allocation2 + $0x18] sm:$0xff] }
  0x2c   : > { %312 = vst.msk [vmem:[#allocation2 + $0x79] sm:$0xff] %vm225_vm1, %v10444_v14  ;;  %313 = vst.msk [vmem:[#allocation2 + $0x81] sm:$0xff] %vm225_vm1, %v10447_v15  ;;  %v10515_v29 = vld [vmem:[#allocation2 + $0x20] sm:$0xff]  ;;  %v10517_v30 = vld [vmem:[#allocation2 + $0x30] sm:$0xff]  ;;  %8809 = vmatprep.mubr.msk.f32.mxu0 %vm225_vm1, %v10513_v28 }
  0x2d   : > { %12560 = vst [vmem:[#allocation13_spill] sm:$0xff] %v10457_v16  ;;  %12561 = vst [vmem:[#allocation14_spill] sm:$0xff] %v10460_v17  ;;  %8810 = vmatmul.mubr.msk.f32.gmra.mrb[2].mxu0 %vm225_vm1, %v10515_v29  ;;  %v10680_v10 = vld [vmem:[#allocation2 + $0x19] sm:$0xff] }
  0x2e   : > { %12562 = vst [vmem:[#allocation15_spill] sm:$0xff] %v10463_v18  ;;  %314 = vst.msk [vmem:[#allocation2 + $0x91] sm:$0xff] %vm225_vm1, %v10457_v16  ;;  %8812 = vmatprep.mubr.msk.f32.mxu0 %vm225_vm1, %v10517_v30  ;;  %v10539_v33 = vld [vmem:[#allocation2 + $0x38] sm:$0xff]  ;;  %v10543_v34 = vld [vmem:[#allocation2 + $0x48] sm:$0xff] }
  0x2f   : > { %315 = vst.msk [vmem:[#allocation2 + $0x99] sm:$0xff] %vm225_vm1, %v10460_v17  ;;  %316 = vst.msk [vmem:[#allocation2 + $0xa9] sm:$0xff] %vm225_vm1, %v10463_v18  ;;  %v10821_v4 = vld [vmem:[#allocation2 + $0x1a] sm:$0xff] }
  0x30   : > { %12563 = vst [vmem:[#allocation16_spill] sm:$0xff] %v10473_v19  ;;  %12564 = vst [vmem:[#allocation17_spill] sm:$0xff] %v10476_v20  ;;  %v10549_v35 = vld [vmem:[#allocation2 + $0x50] sm:$0xff]  ;;  %v10551_v36 = vld [vmem:[#allocation2 + $0x60] sm:$0xff] }
  0x31   : > { %12565 = vst [vmem:[#allocation18_spill] sm:$0xff] %v10479_v21  ;;  %317 = vst.msk [vmem:[#allocation2 + $0xb1] sm:$0xff] %vm225_vm1, %v10473_v19  ;;  %8813 = vmatmul.mubr.msk.f32.gmra.mrb[4].mxu0 %vm225_vm1, %v10539_v33 }
  0x32   : > { %318 = vst.msk [vmem:[#allocation2 + $0xc1] sm:$0xff] %vm225_vm1, %v10476_v20  ;;  %319 = vst.msk [vmem:[#allocation2 + $0xc9] sm:$0xff] %vm225_vm1, %v10479_v21  ;;  %8815 = vmatprep.mubr.msk.f32.mxu0 %vm225_vm1, %v10543_v34  ;;  %v10585_v43 = vld [vmem:[#allocation2 + $0x68] sm:$0xff] }
  0x33   : > { %12566 = vst [vmem:[#allocation19_spill] sm:$0xff] %v10488_v22  ;;  %12567 = vst [vmem:[#allocation20_spill] sm:$0xff] %v10491_v23  ;;  %v10589_v44 = vld [vmem:[#allocation2 + $0x78] sm:$0xff]  ;;  %v10595_v45 = vld [vmem:[#allocation2 + $0x80] sm:$0xff] }
  0x34   : > { %12568 = vst [vmem:[#allocation21_spill] sm:$0xff] %v10494_v24  ;;  %320 = vst.msk [vmem:[#allocation2 + $0xd9] sm:$0xff] %vm225_vm1, %v10488_v22 }
  0x35   : > { %321 = vst.msk [vmem:[#allocation2 + $0xe1] sm:$0xff] %vm225_vm1, %v10491_v23  ;;  %322 = vst.msk [vmem:[#allocation2 + $0xf1] sm:$0xff] %vm225_vm1, %v10494_v24  ;;  %8816 = vmatmul.mubr.msk.f32.gmra.mrb[6].mxu0 %vm225_vm1, %v10549_v35  ;;  %v10597_v46 = vld [vmem:[#allocation2 + $0x90] sm:$0xff] }
  0x36   : > { %12569 = vst [vmem:[#allocation22_spill] sm:$0xff] %v10505_v25  ;;  %12570 = vst [vmem:[#allocation23_spill] sm:$0xff] %v10508_v26  ;;  %8818 = vmatprep.mubr.msk.f32.mxu0 %vm225_vm1, %v10551_v36  ;;  %v10603_v47 = vld [vmem:[#allocation2 + $0x98] sm:$0xff]  ;;  %v10605_v48 = vld [vmem:[#allocation2 + $0xa8] sm:$0xff] }
  0x37   : > { %12571 = vst [vmem:[#allocation24_spill] sm:$0xff] %v10511_v27  ;;  %323 = vst.msk [vmem:[#allocation2 + $0xf9] sm:$0xff] %vm225_vm1, %v10505_v25 }
  0x38   : > { %324 = vst.msk [vmem:[#allocation2 + $0x109] sm:$0xff] %vm225_vm1, %v10508_v26  ;;  %325 = vst.msk [vmem:[#allocation2 + $0x111] sm:$0xff] %vm225_vm1, %v10511_v27  ;;  %v10611_v49 = vld [vmem:[#allocation2 + $0xb0] sm:$0xff]  ;;  %v10734_v26 = vld [vmem:[#allocation2 + $0x99] sm:$0xff] }
  0x39   : > { %12572 = vst [vmem:[#allocation25_spill] sm:$0xff] %v10528_v31  ;;  %326 = vst.msk [vmem:[#allocation2 + $0x121] sm:$0xff] %vm225_vm1, %v10528_v31  ;;  %8819 = vmatmul.mubr.msk.f32.gmra.mrb[8].mxu0 %vm225_vm1, %v10585_v43  ;;  %v10613_v50 = vld [vmem:[#allocation2 + $0xc0] sm:$0xff]  ;;  %v10619_v51 = vld [vmem:[#allocation2 + $0xc8] sm:$0xff] }
  0x3a   : > { %12573 = vst [vmem:[#allocation26_spill] sm:$0xff] %v10535_v32  ;;  %327 = vst.msk [vmem:[#allocation2 + $0x129] sm:$0xff] %vm225_vm1, %v10535_v32  ;;  %8821 = vmatprep.mubr.msk.f32.mxu0 %vm225_vm1, %v10589_v44  ;;  %v10726_v31 = vld [vmem:[#allocation2 + $0x81] sm:$0xff]  ;;  %v10728_v32 = vld [vmem:[#allocation2 + $0x91] sm:$0xff] }
  0x3b   : > { %12574 = vst [vmem:[#allocation27_spill] sm:$0xff] %v10554_v37  ;;  %12575 = vst [vmem:[#allocation28_spill] sm:$0xff] %v10557_v38  ;;  %v10621_v52 = vld [vmem:[#allocation2 + $0xd8] sm:$0xff]  ;;  %v10736_v27 = vld [vmem:[#allocation2 + $0xa9] sm:$0xff] }
  0x3c   : > { %12576 = vst [vmem:[#allocation29_spill] sm:$0xff] %v10560_v39  ;;  %328 = vst.msk [vmem:[#allocation2 + $0x139] sm:$0xff] %vm225_vm1, %v10554_v37  ;;  %v10627_v53 = vld [vmem:[#allocation2 + $0xe0] sm:$0xff]  ;;  %v10629_v54 = vld [vmem:[#allocation2 + $0xf0] sm:$0xff] }
  0x3d   : > { %329 = vst.msk [vmem:[#allocation2 + $0x141] sm:$0xff] %vm225_vm1, %v10557_v38  ;;  %330 = vst.msk [vmem:[#allocation2 + $0x151] sm:$0xff] %vm225_vm1, %v10560_v39  ;;  %8822 = vmatmul.mubr.msk.f32.gmra.mrb[10].mxu0 %vm225_vm1, %v10595_v45  ;;  %v10694_v39 = vld [vmem:[#allocation2 + $0x31] sm:$0xff]  ;;  %v10718_v37 = vld [vmem:[#allocation2 + $0x69] sm:$0xff] }
  0x3e   : > { %12577 = vst [vmem:[#allocation30_spill] sm:$0xff] %v10569_v40  ;;  %12578 = vst [vmem:[#allocation31_spill] sm:$0xff] %v10572_v41  ;;  %8824 = vmatprep.mubr.msk.f32.mxu0 %vm225_vm1, %v10597_v46  ;;  %v10635_v55 = vld [vmem:[#allocation2 + $0xf8] sm:$0xff]  ;;  %v10744_v25 = vld [vmem:[#allocation2 + $0xc1] sm:$0xff] }
  0x3f   : > { %331 = vst.msk [vmem:[#allocation2 + $0x159] sm:$0xff] %vm225_vm1, %v10569_v40  ;;  %332 = vst.msk [vmem:[#allocation2 + $0x169] sm:$0xff] %vm225_vm1, %v10572_v41  ;;  %v10637_v56 = vld [vmem:[#allocation2 + $0x108] sm:$0xff]  ;;  %v10643_v57 = vld [vmem:[#allocation2 + $0x110] sm:$0xff] }
  0x40   : > { %12579 = vst [vmem:[#allocation32_spill] sm:$0xff] %v10581_v42  ;;  %333 = vst.msk [vmem:[#allocation2 + $0x171] sm:$0xff] %vm225_vm1, %v10581_v42  ;;  %v10645_v58 = vld [vmem:[#allocation2 + $0x120] sm:$0xff]  ;;  %v10685_v41 = vld [vmem:[%s12389_s1 + $0xc] sm:$0xf] }
  0x41   : > { %8825 = vmatmul.mubr.msk.f32.gmra.mrb[12].mxu0 %vm225_vm1, %v10603_v47  ;;  %v10651_v59 = vld [vmem:[#allocation2 + $0x128] sm:$0xff]  ;;  %v10720_v38 = vld [vmem:[#allocation2 + $0x79] sm:$0xff]  ;;  %v10742_v24 = vld [vmem:[#allocation2 + $0xb1] sm:$0xff]  ;;  %12585 = vst [vmem:[#allocation38_spill] sm:$0xff] %v10795_v8 }
  0x42   : > { %8827 = vmatprep.mubr.msk.f32.mxu0 %vm225_vm1, %v10605_v48  ;;  %v10692_v42 = vld [vmem:[#allocation2 + $0x21] sm:$0xff]  ;;  %v10750_v22 = vld [vmem:[#allocation2 + $0xc9] sm:$0xff]  ;;  %v10752_v23 = vld [vmem:[#allocation2 + $0xd9] sm:$0xff]  ;;  %334 = vst.msk [vmem:[#allocation2 + $0x181] sm:$0xff] %vm225_vm1, %v10795_v8 }
  0x43   : > { %v10653_v60 = vld [vmem:[#allocation2 + $0x138] sm:$0xff]  ;;  %v10712_v40 = vld [vmem:[#allocation2 + $0x61] sm:$0xff]  ;;  %v10768_v19 = vld [vmem:[#allocation2 + $0x109] sm:$0xff]  ;;  %12586 = vst [vmem:[#allocation39_spill] sm:$0xff] %v10800_v11 }
  0x44   : > { %v10659_v61 = vld [vmem:[#allocation2 + $0x140] sm:$0xff]  ;;  %v10661_v62 = vld [vmem:[#allocation2 + $0x150] sm:$0xff]  ;;  %335 = vst.msk [vmem:[#allocation2 + $0x189] sm:$0xff] %vm225_vm1, %v10800_v11  ;;  %12590 = vst [vmem:[#allocation43_spill] sm:$0xff] %v10821_v4 }
  0x45   : > { %8828 = vmatmul.mubr.msk.f32.gmra.mrb[14].mxu0 %vm225_vm1, %v10611_v49  ;;  %v10758_v20 = vld [vmem:[#allocation2 + $0xe1] sm:$0xff]  ;;  %v10760_v21 = vld [vmem:[#allocation2 + $0xf1] sm:$0xff]  ;;  %v10766_v18 = vld [vmem:[#allocation2 + $0xf9] sm:$0xff] }
  0x46   : > { %8830 = vmatprep.mubr.msk.f32.mxu0 %vm225_vm1, %v10613_v50  ;;  %v10667_v63 = vld [vmem:[#allocation2 + $0x158] sm:$0xff]  ;;  %v10669_v0 = vld [vmem:[#allocation2 + $0x168] sm:$0xff] }
  0x47   : > { %v10675_v1 = vld [vmem:[#allocation2 + $0x170] sm:$0xff]  ;;  %v10776_v17 = vld [vmem:[#allocation2 + $0x121] sm:$0xff]  ;;  %v10784_v15 = vld [vmem:[#allocation2 + $0x139] sm:$0xff] }
  0x48   : > { %v10774_v16 = vld [vmem:[#allocation2 + $0x111] sm:$0xff]  ;;  %12580 = vst [vmem:[#allocation33_spill] sm:$0xff] %v10776_v17  ;;  %v10782_v14 = vld [vmem:[#allocation2 + $0x129] sm:$0xff]  ;;  %12582 = vst [vmem:[#allocation35_spill] sm:$0xff] %v10784_v15 }
  0x49   : > { %8831 = vmatmul.mubr.msk.f32.gmra.mrb[16].mxu0 %vm225_vm1, %v10619_v51  ;;  %12581 = vst [vmem:[#allocation34_spill] sm:$0xff] %v10782_v14  ;;  %v10790_v12 = vld [vmem:[#allocation2 + $0x141] sm:$0xff]  ;;  %v10792_v13 = vld [vmem:[#allocation2 + $0x151] sm:$0xff]  ;;  %v10808_v5 = vld [vmem:[#allocation2 + $0x159] sm:$0xff] }
  0x4a   : > { %8833 = vmatprep.mubr.msk.f32.mxu0 %vm225_vm1, %v10621_v52  ;;  %12583 = vst [vmem:[#allocation36_spill] sm:$0xff] %v10790_v12  ;;  %12584 = vst [vmem:[#allocation37_spill] sm:$0xff] %v10792_v13  ;;  %v10810_v7 = vld [vmem:[#allocation2 + $0x169] sm:$0xff]  ;;  %v10816_v8 = vld [vmem:[#allocation2 + $0x171] sm:$0xff] }
  0x4b   : > { %12587 = vst [vmem:[#allocation40_spill] sm:$0xff] %v10808_v5  ;;  %12588 = vst [vmem:[#allocation41_spill] sm:$0xff] %v10810_v7  ;;  %v1124_v11 = vld [vmem:[#allocation2 + $0xa] sm:$0xff] }
  0x4c   : > { %12589 = vst [vmem:[#allocation42_spill] sm:$0xff] %v10816_v8 }
  0x4d   : > { %8834 = vmatmul.mubr.msk.f32.gmra.mrb[18].mxu0 %vm225_vm1, %v10627_v53 }
  0x4e   : > { %8836 = vmatprep.mubr.msk.f32.mxu0 %vm225_vm1, %v10629_v54 }
  0x51   : > { %8837 = vmatmul.mubr.msk.f32.gmra.mrb[20].mxu0 %vm225_vm1, %v10635_v55 }
  0x52   : > { %8839 = vmatprep.mubr.msk.f32.mxu0 %vm225_vm1, %v10637_v56 }
  0x55   : > { %8840 = vmatmul.mubr.msk.f32.gmra.mrb[22].mxu0 %vm225_vm1, %v10643_v57 }
  0x56   : > { %8842 = vmatprep.mubr.msk.f32.mxu0 %vm225_vm1, %v10645_v58 }
  0x59   : > { %8843 = vmatmul.mubr.msk.f32.gmra.mrb[24].mxu0 %vm225_vm1, %v10651_v59 }
  0x5a   : > { %8845 = vmatprep.mubr.msk.f32.mxu0 %vm225_vm1, %v10653_v60 }
  0x5d   : > { %8846 = vmatmul.mubr.msk.f32.gmra.mrb[26].mxu0 %vm225_vm1, %v10659_v61 }
  0x5e   : > { %8848 = vmatprep.mubr.msk.f32.mxu0 %vm225_vm1, %v10661_v62 }
  0x61   : > { %8849 = vmatmul.mubr.msk.f32.gmra.mrb[28].mxu0 %vm225_vm1, %v10667_v63 }
  0x62   : > { %8851 = vmatprep.mubr.msk.f32.mxu0 %vm225_vm1, %v10669_v0 }
  0x65   : > { %8852 = vmatmul.mubr.msk.f32.gmra.mrb[30].mxu0 %vm225_vm1, %v10675_v1 }
  0x66   : > { %8856 = vmatprep.mubr.msk.f32.mxu0 %vm225_vm1, %v733_v2  ;;  %v10702_v2 = vld [vmem:[#allocation2 + $0x39] sm:$0xff] }
  0x69   : > { %8857 = vmatmul.mubr.msk.f32.vlgmr.msra.gmra.mrb[0].mxu0 %vm225_vm1, %v734_v6  ;;  %v10704_v6 = vld [vmem:[#allocation2 + $0x49] sm:$0xff] }
  0x6a   : > { %8905 = vmatpush3.msk.msra.mxu0 %vm472_vm0, %v10423_v9  ;;  %8859 = vmatprep.mubr.msk.f32.mxu0 %vm225_vm1, %v10680_v10  ;;  %v10710_v9 = vld [vmem:[#allocation2 + $0x51] sm:$0xff] }
  0x6b   : > { %8954 = vmatprep.subr.msk.mxu0 %vm472_vm0, %v10685_v41 }
  0x6d   : > { %8860 = vmatmul.mubr.msk.f32.gmra.mrb[2].mxu0 %vm225_vm1, %v10692_v42 }
  0x6e   : > { %8862 = vmatprep.mubr.msk.f32.mxu0 %vm225_vm1, %v10694_v39 }
  0x71   : > { %8863 = vmatmul.mubr.msk.f32.gmra.mrb[4].mxu0 %vm225_vm1, %v10702_v2 }
  0x72   : > { %8865 = vmatprep.mubr.msk.f32.mxu0 %vm225_vm1, %v10704_v6 }
  0x75   : > { %8866 = vmatmul.mubr.msk.f32.gmra.mrb[6].mxu0 %vm225_vm1, %v10710_v9 }
  0x76   : > { %8868 = vmatprep.mubr.msk.f32.mxu0 %vm225_vm1, %v10712_v40 }
  0x79   : > { %8869 = vmatmul.mubr.msk.f32.gmra.mrb[8].mxu0 %vm225_vm1, %v10718_v37 }
  0x7a   : > { %8871 = vmatprep.mubr.msk.f32.mxu0 %vm225_vm1, %v10720_v38 }
  0x7d   : > { %8872 = vmatmul.mubr.msk.f32.gmra.mrb[10].mxu0 %vm225_vm1, %v10726_v31 }
  0x7e   : > { %8874 = vmatprep.mubr.msk.f32.mxu0 %vm225_vm1, %v10728_v32 }
  0x81   : > { %8875 = vmatmul.mubr.msk.f32.gmra.mrb[12].mxu0 %vm225_vm1, %v10734_v26 }
  0x82   : > { %8877 = vmatprep.mubr.msk.f32.mxu0 %vm225_vm1, %v10736_v27 }
  0x85   : > { %8878 = vmatmul.mubr.msk.f32.gmra.mrb[14].mxu0 %vm225_vm1, %v10742_v24 }
  0x86   : > { %8880 = vmatprep.mubr.msk.f32.mxu0 %vm225_vm1, %v10744_v25 }
  0x89   : > { %8881 = vmatmul.mubr.msk.f32.gmra.mrb[16].mxu0 %vm225_vm1, %v10750_v22 }
  0x8a   : > { %8883 = vmatprep.mubr.msk.f32.mxu0 %vm225_vm1, %v10752_v23 }
  0x8d   : > { %8884 = vmatmul.mubr.msk.f32.gmra.mrb[18].mxu0 %vm225_vm1, %v10758_v20 }
  0x8e   : > { %8886 = vmatprep.mubr.msk.f32.mxu0 %vm225_vm1, %v10760_v21 }
  0x91   : > { %8887 = vmatmul.mubr.msk.f32.gmra.mrb[20].mxu0 %vm225_vm1, %v10766_v18 }
  0x92   : > { %8889 = vmatprep.mubr.msk.f32.mxu0 %vm225_vm1, %v10768_v19 }
  0x95   : > { %8890 = vmatmul.mubr.msk.f32.gmra.mrb[22].mxu0 %vm225_vm1, %v10774_v16 }
  0x96   : > { %8892 = vmatprep.mubr.msk.f32.mxu0 %vm225_vm1, %v10776_v17 }
  0x99   : > { %8893 = vmatmul.mubr.msk.f32.gmra.mrb[24].mxu0 %vm225_vm1, %v10782_v14 }
  0x9a   : > { %8895 = vmatprep.mubr.msk.f32.mxu0 %vm225_vm1, %v10784_v15 }
  0x9d   : > { %8896 = vmatmul.mubr.msk.f32.gmra.mrb[26].mxu0 %vm225_vm1, %v10790_v12 }
  0x9e   : > { %8898 = vmatprep.mubr.msk.f32.mxu0 %vm225_vm1, %v10792_v13  ;;  %v10826_v13 = vld [vmem:[%s12389_s1 + $0x10] sm:$0xf] }
  0xa1   : > { %8899 = vmatmul.mubr.msk.f32.gmra.mrb[28].mxu0 %vm225_vm1, %v10808_v5 }
  0xa2   : > { %8901 = vmatprep.mubr.msk.f32.mxu0 %vm225_vm1, %v10810_v7  ;;  %v10833_v7 = vld [vmem:[#allocation2 + $0x22] sm:$0xff] }
  0xa3   : > { %12591 = vst [vmem:[#allocation44_spill] sm:$0xff] %v10833_v7 }
  0xa5   : > { %8902 = vmatmul.mubr.msk.f32.gmra.mrb[30].mxu0 %vm225_vm1, %v10816_v8  ;;  %v10835_v8 = vld [vmem:[#allocation2 + $0x32] sm:$0xff] }
  0xa6   : > { %8906 = vmatprep.mubr.msk.f32.mxu0 %vm225_vm1, %v1123_v3  ;;  %12592 = vst [vmem:[#allocation45_spill] sm:$0xff] %v10835_v8  ;;  %v10843_v3 = vld [vmem:[#allocation2 + $0x3a] sm:$0xff] }
  0xa7   : > { %12593 = vst [vmem:[#allocation46_spill] sm:$0xff] %v10843_v3 }
  0xa9   : > { %8907 = vmatmul.mubr.msk.f32.vlgmr.msra.gmra.mrb[0].mxu0 %vm225_vm1, %v1124_v11  ;;  %v10845_v11 = vld [vmem:[#allocation2 + $0x4a] sm:$0xff] }
  0xaa   : > { %8955 = vmatpush3.msk.msra.mxu0 %vm472_vm0, %v10685_v41  ;;  %8909 = vmatprep.mubr.msk.f32.mxu0 %vm225_vm1, %v10821_v4  ;;  %12594 = vst [vmem:[#allocation47_spill] sm:$0xff] %v10845_v11  ;;  %v10851_v41 = vld [vmem:[#allocation2 + $0x52] sm:$0xff]  ;;  %v10853_v4 = vld [vmem:[#allocation2 + $0x62] sm:$0xff] }
  0xab   : > { %9004 = vmatprep.subr.msk.mxu0 %vm472_vm0, %v10826_v13  ;;  %12595 = vst [vmem:[#allocation48_spill] sm:$0xff] %v10851_v41  ;;  %12596 = vst [vmem:[#allocation49_spill] sm:$0xff] %v10853_v4 }
  0xad   : > { %8910 = vmatmul.mubr.msk.f32.gmra.mrb[2].mxu0 %vm225_vm1, %v10833_v7  ;;  %v10861_v7 = vld [vmem:[#allocation2 + $0x7a] sm:$0xff] }
  0xae   : > { %8912 = vmatprep.mubr.msk.f32.mxu0 %vm225_vm1, %v10835_v8  ;;  %v10859_v8 = vld [vmem:[#allocation2 + $0x6a] sm:$0xff]  ;;  %12598 = vst [vmem:[#allocation51_spill] sm:$0xff] %v10861_v7 }
  0xaf   : > { %12597 = vst [vmem:[#allocation50_spill] sm:$0xff] %v10859_v8 }
  0xb1   : > { %8913 = vmatmul.mubr.msk.f32.gmra.mrb[4].mxu0 %vm225_vm1, %v10843_v3  ;;  %v10869_v3 = vld [vmem:[#allocation2 + $0x92] sm:$0xff] }
  0xb2   : > { %8915 = vmatprep.mubr.msk.f32.mxu0 %vm225_vm1, %v10845_v11  ;;  %v10867_v11 = vld [vmem:[#allocation2 + $0x82] sm:$0xff]  ;;  %12600 = vst [vmem:[#allocation53_spill] sm:$0xff] %v10869_v3 }
  0xb3   : > { %12599 = vst [vmem:[#allocation52_spill] sm:$0xff] %v10867_v11 }
  0xb5   : > { %8916 = vmatmul.mubr.msk.f32.gmra.mrb[6].mxu0 %vm225_vm1, %v10851_v41  ;;  %v10877_v41 = vld [vmem:[#allocation2 + $0xaa] sm:$0xff] }
  0xb6   : > { %8918 = vmatprep.mubr.msk.f32.mxu0 %vm225_vm1, %v10853_v4  ;;  %v10875_v4 = vld [vmem:[#allocation2 + $0x9a] sm:$0xff]  ;;  %12602 = vst [vmem:[#allocation55_spill] sm:$0xff] %v10877_v41 }
  0xb7   : > { %12601 = vst [vmem:[#allocation54_spill] sm:$0xff] %v10875_v4 }
  0xb9   : > { %8919 = vmatmul.mubr.msk.f32.gmra.mrb[8].mxu0 %vm225_vm1, %v10859_v8  ;;  %v10885_v8 = vld [vmem:[#allocation2 + $0xc2] sm:$0xff] }
  0xba   : > { %8921 = vmatprep.mubr.msk.f32.mxu0 %vm225_vm1, %v10861_v7  ;;  %v10883_v7 = vld [vmem:[#allocation2 + $0xb2] sm:$0xff]  ;;  %12604 = vst [vmem:[#allocation57_spill] sm:$0xff] %v10885_v8 }
  0xbb   : > { %12603 = vst [vmem:[#allocation56_spill] sm:$0xff] %v10883_v7 }
  0xbd   : > { %8922 = vmatmul.mubr.msk.f32.gmra.mrb[10].mxu0 %vm225_vm1, %v10867_v11  ;;  %v10893_v11 = vld [vmem:[#allocation2 + $0xda] sm:$0xff] }
  0xbe   : > { %8924 = vmatprep.mubr.msk.f32.mxu0 %vm225_vm1, %v10869_v3  ;;  %v10891_v3 = vld [vmem:[#allocation2 + $0xca] sm:$0xff]  ;;  %12606 = vst [vmem:[#allocation59_spill] sm:$0xff] %v10893_v11 }
  0xbf   : > { %12605 = vst [vmem:[#allocation58_spill] sm:$0xff] %v10891_v3 }
  0xc1   : > { %8925 = vmatmul.mubr.msk.f32.gmra.mrb[12].mxu0 %vm225_vm1, %v10875_v4  ;;  %v10901_v4 = vld [vmem:[#allocation2 + $0xf2] sm:$0xff] }
  0xc2   : > { %8927 = vmatprep.mubr.msk.f32.mxu0 %vm225_vm1, %v10877_v41  ;;  %v10899_v41 = vld [vmem:[#allocation2 + $0xe2] sm:$0xff]  ;;  %12608 = vst [vmem:[#allocation61_spill] sm:$0xff] %v10901_v4 }
  0xc3   : > { %12607 = vst [vmem:[#allocation60_spill] sm:$0xff] %v10899_v41 }
  0xc5   : > { %8928 = vmatmul.mubr.msk.f32.gmra.mrb[14].mxu0 %vm225_vm1, %v10883_v7  ;;  %v10909_v7 = vld [vmem:[#allocation2 + $0x10a] sm:$0xff] }
  0xc6   : > { %8930 = vmatprep.mubr.msk.f32.mxu0 %vm225_vm1, %v10885_v8  ;;  %v10907_v8 = vld [vmem:[#allocation2 + $0xfa] sm:$0xff]  ;;  %12610 = vst [vmem:[#allocation63_spill] sm:$0xff] %v10909_v7 }
  0xc7   : > { %12609 = vst [vmem:[#allocation62_spill] sm:$0xff] %v10907_v8 }
  0xc9   : > { %8931 = vmatmul.mubr.msk.f32.gmra.mrb[16].mxu0 %vm225_vm1, %v10891_v3  ;;  %v10917_v3 = vld [vmem:[#allocation2 + $0x122] sm:$0xff] }
  0xca   : > { %8933 = vmatprep.mubr.msk.f32.mxu0 %vm225_vm1, %v10893_v11  ;;  %v10915_v11 = vld [vmem:[#allocation2 + $0x112] sm:$0xff]  ;;  %12612 = vst [vmem:[#allocation65_spill] sm:$0xff] %v10917_v3 }
  0xcb   : > { %12611 = vst [vmem:[#allocation64_spill] sm:$0xff] %v10915_v11 }
  0xcd   : > { %8934 = vmatmul.mubr.msk.f32.gmra.mrb[18].mxu0 %vm225_vm1, %v10899_v41  ;;  %v10925_v41 = vld [vmem:[#allocation2 + $0x13a] sm:$0xff] }
  0xce   : > { %8936 = vmatprep.mubr.msk.f32.mxu0 %vm225_vm1, %v10901_v4  ;;  %v10923_v4 = vld [vmem:[#allocation2 + $0x12a] sm:$0xff]  ;;  %12613 = vst [vmem:[#allocation66_spill] sm:$0xff] %v10925_v41 }
  0xd1   : > { %8937 = vmatmul.mubr.msk.f32.gmra.mrb[20].mxu0 %vm225_vm1, %v10907_v8  ;;  %v10933_v8 = vld [vmem:[#allocation2 + $0x152] sm:$0xff] }
  0xd2   : > { %8939 = vmatprep.mubr.msk.f32.mxu0 %vm225_vm1, %v10909_v7  ;;  %v10931_v7 = vld [vmem:[#allocation2 + $0x142] sm:$0xff]  ;;  %12614 = vst [vmem:[#allocation67_spill] sm:$0xff] %v10933_v8 }
  0xd5   : > { %8940 = vmatmul.mubr.msk.f32.gmra.mrb[22].mxu0 %vm225_vm1, %v10915_v11  ;;  %v10941_v11 = vld [vmem:[#allocation2 + $0x16a] sm:$0xff] }
  0xd6   : > { %8942 = vmatprep.mubr.msk.f32.mxu0 %vm225_vm1, %v10917_v3  ;;  %v10939_v3 = vld [vmem:[#allocation2 + $0x15a] sm:$0xff]  ;;  %12615 = vst [vmem:[#allocation68_spill] sm:$0xff] %v10941_v11 }
  0xd9   : > { %8943 = vmatmul.mubr.msk.f32.gmra.mrb[24].mxu0 %vm225_vm1, %v10923_v4 }
  0xda   : > { %8945 = vmatprep.mubr.msk.f32.mxu0 %vm225_vm1, %v10925_v41  ;;  %v10947_v41 = vld [vmem:[#allocation2 + $0x172] sm:$0xff] }
  0xdd   : > { %8946 = vmatmul.mubr.msk.f32.gmra.mrb[26].mxu0 %vm225_vm1, %v10931_v7 }
  0xde   : > { %8948 = vmatprep.mubr.msk.f32.mxu0 %vm225_vm1, %v10933_v8  ;;  %v7764_v8 = vld [vmem:[%s12389_s1 + $0x14] sm:$0xf] }
  0xe1   : > { %8949 = vmatmul.mubr.msk.f32.gmra.mrb[28].mxu0 %vm225_vm1, %v10939_v3 }
  0xe2   : > { %8951 = vmatprep.mubr.msk.f32.mxu0 %vm225_vm1, %v10941_v11 }
  0xe5   : > { %8952 = vmatmul.mubr.msk.f32.gmra.mrb[30].mxu0 %vm225_vm1, %v10947_v41 }
  0xe6   : > { %8956 = vmatprep.mubr.msk.f32.mxu0 %vm225_vm1, %v10513_v28  ;;  %v11021_v28 = vld [vmem:[#allocation2 + $0x188] sm:$0xff] }
  0xe9   : > { %8957 = vmatmul.mubr.msk.f32.vlgmr.msra.gmra.mrb[0].mxu0 %vm225_vm1, %v10515_v29  ;;  %v7798_v29 = vld [vmem:[%s12389_s1 + $0x18] sm:$0xf] }
  0xea   : > { %9005 = vmatpush3.msk.msra.mxu0 %vm472_vm0, %v10826_v13  ;;  %8959 = vmatprep.mubr.msk.f32.mxu0 %vm225_vm1, %v10517_v30  ;;  %v11015_v13 = vld [vmem:[#allocation2 + $0x180] sm:$0xff] }
  0xeb   : > { %9054 = vmatprep.subr.msk.mxu0 %vm472_vm0, %v7764_v8 }
  0xed   : > { %8960 = vmatmul.mubr.msk.f32.gmra.mrb[2].mxu0 %vm225_vm1, %v10539_v33 }
  0xee   : > { %8962 = vmatprep.mubr.msk.f32.mxu0 %vm225_vm1, %v10543_v34 }
  0xf1   : > { %8963 = vmatmul.mubr.msk.f32.gmra.mrb[4].mxu0 %vm225_vm1, %v10549_v35 }
  0xf2   : > { %8965 = vmatprep.mubr.msk.f32.mxu0 %vm225_vm1, %v10551_v36 }
  0xf5   : > { %8966 = vmatmul.mubr.msk.f32.gmra.mrb[6].mxu0 %vm225_vm1, %v10585_v43 }
  0xf6   : > { %8968 = vmatprep.mubr.msk.f32.mxu0 %vm225_vm1, %v10589_v44 }
  0xf9   : > { %8969 = vmatmul.mubr.msk.f32.gmra.mrb[8].mxu0 %vm225_vm1, %v10595_v45 }
  0xfa   : > { %8971 = vmatprep.mubr.msk.f32.mxu0 %vm225_vm1, %v10597_v46 }
  0xfd   : > { %8972 = vmatmul.mubr.msk.f32.gmra.mrb[10].mxu0 %vm225_vm1, %v10603_v47 }
  0xfe   : > { %8974 = vmatprep.mubr.msk.f32.mxu0 %vm225_vm1, %v10605_v48 }
 0x101   : > { %8975 = vmatmul.mubr.msk.f32.gmra.mrb[12].mxu0 %vm225_vm1, %v10611_v49 }
 0x102   : > { %8977 = vmatprep.mubr.msk.f32.mxu0 %vm225_vm1, %v10613_v50 }
 0x105   : > { %8978 = vmatmul.mubr.msk.f32.gmra.mrb[14].mxu0 %vm225_vm1, %v10619_v51 }
 0x106   : > { %8980 = vmatprep.mubr.msk.f32.mxu0 %vm225_vm1, %v10621_v52 }
 0x109   : > { %8981 = vmatmul.mubr.msk.f32.gmra.mrb[16].mxu0 %vm225_vm1, %v10627_v53 }
 0x10a   : > { %8983 = vmatprep.mubr.msk.f32.mxu0 %vm225_vm1, %v10629_v54 }
 0x10d   : > { %8984 = vmatmul.mubr.msk.f32.gmra.mrb[18].mxu0 %vm225_vm1, %v10635_v55 }
 0x10e   : > { %8986 = vmatprep.mubr.msk.f32.mxu0 %vm225_vm1, %v10637_v56 }
 0x111   : > { %8987 = vmatmul.mubr.msk.f32.gmra.mrb[20].mxu0 %vm225_vm1, %v10643_v57 }
 0x112   : > { %8989 = vmatprep.mubr.msk.f32.mxu0 %vm225_vm1, %v10645_v58 }
 0x115   : > { %8990 = vmatmul.mubr.msk.f32.gmra.mrb[22].mxu0 %vm225_vm1, %v10651_v59 }
 0x116   : > { %8992 = vmatprep.mubr.msk.f32.mxu0 %vm225_vm1, %v10653_v60 }
 0x119   : > { %8993 = vmatmul.mubr.msk.f32.gmra.mrb[24].mxu0 %vm225_vm1, %v10659_v61 }
 0x11a   : > { %8995 = vmatprep.mubr.msk.f32.mxu0 %vm225_vm1, %v10661_v62 }
 0x11d   : > { %8996 = vmatmul.mubr.msk.f32.gmra.mrb[26].mxu0 %vm225_vm1, %v10667_v63 }
 0x11e   : > { %8998 = vmatprep.mubr.msk.f32.mxu0 %vm225_vm1, %v10669_v0 }
 0x121   : > { %8999 = vmatmul.mubr.msk.f32.gmra.mrb[28].mxu0 %vm225_vm1, %v10675_v1 }
 0x122   : > { %9001 = vmatprep.mubr.msk.f32.mxu0 %vm225_vm1, %v11015_v13 }
 0x125   : > { %9002 = vmatmul.mubr.msk.f32.gmra.mrb[30].mxu0 %vm225_vm1, %v11021_v28 }
 0x126   : > { %9006 = vmatprep.mubr.msk.f32.mxu0 %vm225_vm1, %v10680_v10  ;;  %v11088_v10 = vld [vmem:[#allocation2 + $0x181] sm:$0xff] }
 0x127   : > { %12618 = vst [vmem:[#allocation69_spill] sm:$0xff] %v11088_v10 }
 0x129   : > { %9007 = vmatmul.mubr.msk.f32.vlgmr.msra.gmra.mrb[0].mxu0 %vm225_vm1, %v10692_v42  ;;  %v12617_v42 = vld [vmem:[#allocation41_spill] sm:$0xff] }
 0x12a   : > { %9055 = vmatpush3.msk.msra.mxu0 %vm472_vm0, %v7764_v8  ;;  %9009 = vmatprep.mubr.msk.f32.mxu0 %vm225_vm1, %v10694_v39  ;;  %v12616_v8 = vld [vmem:[#allocation37_spill] sm:$0xff] }
 0x12b   : > { %9104 = vmatprep.subr.msk.mxu0 %vm472_vm0, %v7798_v29 }
 0x12d   : > { %9010 = vmatmul.mubr.msk.f32.gmra.mrb[2].mxu0 %vm225_vm1, %v10702_v2 }
 0x12e   : > { %9012 = vmatprep.mubr.msk.f32.mxu0 %vm225_vm1, %v10704_v6 }
 0x131   : > { %9013 = vmatmul.mubr.msk.f32.gmra.mrb[4].mxu0 %vm225_vm1, %v10710_v9 }
 0x132   : > { %9015 = vmatprep.mubr.msk.f32.mxu0 %vm225_vm1, %v10712_v40 }
 0x135   : > { %9016 = vmatmul.mubr.msk.f32.gmra.mrb[6].mxu0 %vm225_vm1, %v10718_v37 }
 0x136   : > { %9018 = vmatprep.mubr.msk.f32.mxu0 %vm225_vm1, %v10720_v38 }
 0x139   : > { %9019 = vmatmul.mubr.msk.f32.gmra.mrb[8].mxu0 %vm225_vm1, %v10726_v31 }
 0x13a   : > { %9021 = vmatprep.mubr.msk.f32.mxu0 %vm225_vm1, %v10728_v32 }
 0x13d   : > { %9022 = vmatmul.mubr.msk.f32.gmra.mrb[10].mxu0 %vm225_vm1, %v10734_v26 }
 0x13e   : > { %9024 = vmatprep.mubr.msk.f32.mxu0 %vm225_vm1, %v10736_v27 }
 0x141   : > { %9025 = vmatmul.mubr.msk.f32.gmra.mrb[12].mxu0 %vm225_vm1, %v10742_v24 }
 0x142   : > { %9027 = vmatprep.mubr.msk.f32.mxu0 %vm225_vm1, %v10744_v25 }
 0x145   : > { %9028 = vmatmul.mubr.msk.f32.gmra.mrb[14].mxu0 %vm225_vm1, %v10750_v22 }
 0x146   : > { %9030 = vmatprep.mubr.msk.f32.mxu0 %vm225_vm1, %v10752_v23 }
 0x149   : > { %9031 = vmatmul.mubr.msk.f32.gmra.mrb[16].mxu0 %vm225_vm1, %v10758_v20 }
 0x14a   : > { %9033 = vmatprep.mubr.msk.f32.mxu0 %vm225_vm1, %v10760_v21 }
 0x14d   : > { %9034 = vmatmul.mubr.msk.f32.gmra.mrb[18].mxu0 %vm225_vm1, %v10766_v18 }
 0x14e   : > { %9036 = vmatprep.mubr.msk.f32.mxu0 %vm225_vm1, %v10768_v19 }
 0x151   : > { %9037 = vmatmul.mubr.msk.f32.gmra.mrb[20].mxu0 %vm225_vm1, %v10774_v16 }
 0x152   : > { %9039 = vmatprep.mubr.msk.f32.mxu0 %vm225_vm1, %v10776_v17  ;;  %v12619_v17 = vld [vmem:[#allocation42_spill] sm:$0xff] }
 0x155   : > { %9040 = vmatmul.mubr.msk.f32.gmra.mrb[22].mxu0 %vm225_vm1, %v10782_v14  ;;  %v12631_v14 = vld [vmem:[#allocation53_spill] sm:$0xff] }
 0x156   : > { %9042 = vmatprep.mubr.msk.f32.mxu0 %vm225_vm1, %v10784_v15  ;;  %v11094_v15 = vld [vmem:[#allocation2 + $0x189] sm:$0xff] }
 0x157   : > { %12620 = vst [vmem:[#allocation70_spill] sm:$0xff] %v11094_v15 }
 0x159   : > { %9043 = vmatmul.mubr.msk.f32.gmra.mrb[24].mxu0 %vm225_vm1, %v10790_v12  ;;  %v12627_v12 = vld [vmem:[#allocation49_spill] sm:$0xff] }
 0x15a   : > { %9045 = vmatprep.mubr.msk.f32.mxu0 %vm225_vm1, %v12616_v8  ;;  %v12621_v8 = vld [vmem:[#allocation43_spill] sm:$0xff] }
 0x15d   : > { %9046 = vmatmul.mubr.msk.f32.gmra.mrb[26].mxu0 %vm225_vm1, %v10808_v5  ;;  %v12622_v5 = vld [vmem:[#allocation44_spill] sm:$0xff] }
 0x15e   : > { %9048 = vmatprep.mubr.msk.f32.mxu0 %vm225_vm1, %v12617_v42  ;;  %v7832_v42 = vld [vmem:[%s12389_s1 + $0x1c] sm:$0xf] }
 0x161   : > { %9049 = vmatmul.mubr.msk.f32.gmra.mrb[28].mxu0 %vm225_vm1, %v12619_v17  ;;  %v12623_v17 = vld [vmem:[#allocation45_spill] sm:$0xff] }
 0x162   : > { %9051 = vmatprep.mubr.msk.f32.mxu0 %vm225_vm1, %v11088_v10  ;;  %v12624_v10 = vld [vmem:[#allocation46_spill] sm:$0xff] }
 0x165   : > { %9052 = vmatmul.mubr.msk.f32.gmra.mrb[30].mxu0 %vm225_vm1, %v11094_v15  ;;  %v12625_v15 = vld [vmem:[#allocation47_spill] sm:$0xff] }
 0x166   : > { %9056 = vmatprep.mubr.msk.f32.mxu0 %vm225_vm1, %v12621_v8  ;;  %v12626_v8 = vld [vmem:[#allocation48_spill] sm:$0xff] }
 0x169   : > { %9057 = vmatmul.mubr.msk.f32.vlgmr.msra.gmra.mrb[0].mxu0 %vm225_vm1, %v12622_v5  ;;  %v12628_v5 = vld [vmem:[#allocation50_spill] sm:$0xff] }
 0x16a   : > { %9105 = vmatpush3.msk.msra.mxu0 %vm472_vm0, %v7798_v29  ;;  %9059 = vmatprep.mubr.msk.f32.mxu0 %vm225_vm1, %v12623_v17  ;;  %v12629_v29 = vld [vmem:[#allocation51_spill] sm:$0xff]  ;;  %v12630_v17 = vld [vmem:[#allocation52_spill] sm:$0xff] }
 0x16b   : > { %9154 = vmatprep.subr.msk.mxu0 %vm472_vm0, %v7832_v42 }
 0x16d   : > { %9060 = vmatmul.mubr.msk.f32.gmra.mrb[2].mxu0 %vm225_vm1, %v12624_v10  ;;  %v12632_v10 = vld [vmem:[#allocation54_spill] sm:$0xff] }
 0x16e   : > { %9062 = vmatprep.mubr.msk.f32.mxu0 %vm225_vm1, %v12625_v15  ;;  %v12633_v15 = vld [vmem:[#allocation55_spill] sm:$0xff] }
 0x171   : > { %9063 = vmatmul.mubr.msk.f32.gmra.mrb[4].mxu0 %vm225_vm1, %v12626_v8  ;;  %v12634_v8 = vld [vmem:[#allocation56_spill] sm:$0xff] }
 0x172   : > { %9065 = vmatprep.mubr.msk.f32.mxu0 %vm225_vm1, %v12627_v12  ;;  %v12635_v12 = vld [vmem:[#allocation57_spill] sm:$0xff] }
 0x175   : > { %9066 = vmatmul.mubr.msk.f32.gmra.mrb[6].mxu0 %vm225_vm1, %v12628_v5  ;;  %v12636_v5 = vld [vmem:[#allocation58_spill] sm:$0xff] }
 0x176   : > { %9068 = vmatprep.mubr.msk.f32.mxu0 %vm225_vm1, %v12629_v29  ;;  %v12637_v29 = vld [vmem:[#allocation59_spill] sm:$0xff] }
 0x179   : > { %9069 = vmatmul.mubr.msk.f32.gmra.mrb[8].mxu0 %vm225_vm1, %v12630_v17  ;;  %v12638_v17 = vld [vmem:[#allocation60_spill] sm:$0xff] }
 0x17a   : > { %9071 = vmatprep.mubr.msk.f32.mxu0 %vm225_vm1, %v12631_v14  ;;  %v12639_v14 = vld [vmem:[#allocation61_spill] sm:$0xff] }
 0x17d   : > { %9072 = vmatmul.mubr.msk.f32.gmra.mrb[10].mxu0 %vm225_vm1, %v12632_v10  ;;  %v12640_v10 = vld [vmem:[#allocation62_spill] sm:$0xff] }
 0x17e   : > { %9074 = vmatprep.mubr.msk.f32.mxu0 %vm225_vm1, %v12633_v15  ;;  %v12641_v15 = vld [vmem:[#allocation63_spill] sm:$0xff] }
 0x181   : > { %9075 = vmatmul.mubr.msk.f32.gmra.mrb[12].mxu0 %vm225_vm1, %v12634_v8  ;;  %v12642_v8 = vld [vmem:[#allocation64_spill] sm:$0xff] }
 0x182   : > { %9077 = vmatprep.mubr.msk.f32.mxu0 %vm225_vm1, %v12635_v12  ;;  %v12643_v12 = vld [vmem:[#allocation65_spill] sm:$0xff] }
 0x185   : > { %9078 = vmatmul.mubr.msk.f32.gmra.mrb[14].mxu0 %vm225_vm1, %v12636_v5 }
 0x186   : > { %9080 = vmatprep.mubr.msk.f32.mxu0 %vm225_vm1, %v12637_v29  ;;  %v12644_v29 = vld [vmem:[#allocation66_spill] sm:$0xff] }
 0x189   : > { %9081 = vmatmul.mubr.msk.f32.gmra.mrb[16].mxu0 %vm225_vm1, %v12638_v17 }
 0x18a   : > { %9083 = vmatprep.mubr.msk.f32.mxu0 %vm225_vm1, %v12639_v14  ;;  %v12645_v14 = vld [vmem:[#allocation67_spill] sm:$0xff] }
 0x18d   : > { %9084 = vmatmul.mubr.msk.f32.gmra.mrb[18].mxu0 %vm225_vm1, %v12640_v10 }
 0x18e   : > { %9086 = vmatprep.mubr.msk.f32.mxu0 %vm225_vm1, %v12641_v15 }
 0x191   : > { %9087 = vmatmul.mubr.msk.f32.gmra.mrb[20].mxu0 %vm225_vm1, %v12642_v8  ;;  %v11161_v8 = vld [vmem:[#allocation2 + $0x182] sm:$0xff] }
 0x192   : > { %9089 = vmatprep.mubr.msk.f32.mxu0 %vm225_vm1, %v12643_v12 }
 0x195   : > { %9090 = vmatmul.mubr.msk.f32.gmra.mrb[22].mxu0 %vm225_vm1, %v10923_v4 }
 0x196   : > { %9092 = vmatprep.mubr.msk.f32.mxu0 %vm225_vm1, %v12644_v29  ;;  %v11167_v29 = vld [vmem:[#allocation2 + $0x18a] sm:$0xff] }
 0x199   : > { %9093 = vmatmul.mubr.msk.f32.gmra.mrb[24].mxu0 %vm225_vm1, %v10931_v7 }
 0x19a   : > { %9095 = vmatprep.mubr.msk.f32.mxu0 %vm225_vm1, %v12645_v14 }
 0x19d   : > { %9096 = vmatmul.mubr.msk.f32.gmra.mrb[26].mxu0 %vm225_vm1, %v10939_v3 }
 0x19e   : > { %9098 = vmatprep.mubr.msk.f32.mxu0 %vm225_vm1, %v10941_v11  ;;  %v7866_v11 = vld [vmem:[%s12389_s1 + $0x20] sm:$0xf] }
 0x1a1   : > { %9099 = vmatmul.mubr.msk.f32.gmra.mrb[28].mxu0 %vm225_vm1, %v10947_v41 }
 0x1a2   : > { %9101 = vmatprep.mubr.msk.f32.mxu0 %vm225_vm1, %v11161_v8 }
 0x1a5   : > { %9102 = vmatmul.mubr.msk.f32.gmra.mrb[30].mxu0 %vm225_vm1, %v11167_v29 }
 0x1a6   : > { %9106 = vmatprep.mubr.msk.f32.mxu0 %vm225_vm1, %v10517_v30  ;;  %v2714_v30 = vld [vmem:[#allocation2 + $0x198] sm:$0xff] }
 0x1a9   : > { %9107 = vmatmul.mubr.msk.f32.vlgmr.msra.gmra.mrb[0].mxu0 %vm225_vm1, %v10539_v33  ;;  %v2715_v33 = vld [vmem:[#allocation2 + $0x1a0] sm:$0xff] }
 0x1aa   : > { %9155 = vmatpush3.msk.msra.mxu0 %vm472_vm0, %v7832_v42  ;;  %9109 = vmatprep.mubr.msk.f32.mxu0 %vm225_vm1, %v10543_v34  ;;  %v12657_v34 = vld [vmem:[#allocation46_spill] sm:$0xff] }
 0x1ab   : > { %9204 = vmatprep.subr.msk.mxu0 %vm472_vm0, %v7866_v11 }
 0x1ad   : > { %9110 = vmatmul.mubr.msk.f32.gmra.mrb[2].mxu0 %vm225_vm1, %v10549_v35  ;;  %v12658_v35 = vld [vmem:[#allocation47_spill] sm:$0xff] }
 0x1ae   : > { %9112 = vmatprep.mubr.msk.f32.mxu0 %vm225_vm1, %v10551_v36  ;;  %v12659_v36 = vld [vmem:[#allocation48_spill] sm:$0xff] }
 0x1b1   : > { %9113 = vmatmul.mubr.msk.f32.gmra.mrb[4].mxu0 %vm225_vm1, %v10585_v43  ;;  %v12664_v43 = vld [vmem:[#allocation53_spill] sm:$0xff] }
 0x1b2   : > { %9115 = vmatprep.mubr.msk.f32.mxu0 %vm225_vm1, %v10589_v44  ;;  %v12665_v44 = vld [vmem:[#allocation54_spill] sm:$0xff] }
 0x1b5   : > { %9116 = vmatmul.mubr.msk.f32.gmra.mrb[6].mxu0 %vm225_vm1, %v10595_v45  ;;  %v12666_v45 = vld [vmem:[#allocation55_spill] sm:$0xff] }
 0x1b6   : > { %9118 = vmatprep.mubr.msk.f32.mxu0 %vm225_vm1, %v10597_v46  ;;  %v12667_v46 = vld [vmem:[#allocation56_spill] sm:$0xff] }
 0x1b9   : > { %9119 = vmatmul.mubr.msk.f32.gmra.mrb[8].mxu0 %vm225_vm1, %v10603_v47  ;;  %v12668_v47 = vld [vmem:[#allocation57_spill] sm:$0xff] }
 0x1ba   : > { %9121 = vmatprep.mubr.msk.f32.mxu0 %vm225_vm1, %v10605_v48  ;;  %v12669_v48 = vld [vmem:[#allocation59_spill] sm:$0xff] }
 0x1bd   : > { %9122 = vmatmul.mubr.msk.f32.gmra.mrb[10].mxu0 %vm225_vm1, %v10611_v49  ;;  %v12670_v49 = vld [vmem:[#allocation61_spill] sm:$0xff] }
 0x1be   : > { %9124 = vmatprep.mubr.msk.f32.mxu0 %vm225_vm1, %v10613_v50  ;;  %v12671_v50 = vld [vmem:[#allocation64_spill] sm:$0xff] }
 0x1c1   : > { %9125 = vmatmul.mubr.msk.f32.gmra.mrb[12].mxu0 %vm225_vm1, %v10619_v51  ;;  %v12672_v51 = vld [vmem:[#allocation66_spill] sm:$0xff] }
 0x1c2   : > { %9127 = vmatprep.mubr.msk.f32.mxu0 %vm225_vm1, %v10621_v52  ;;  %v7934_v52 = vld [vmem:[%s12391_s3 + $0x4] sm:$0xf] }
 0x1c5   : > { %9128 = vmatmul.mubr.msk.f32.gmra.mrb[14].mxu0 %vm225_vm1, %v10627_v53  ;;  %v11378_v53 = vld [vmem:[%s12391_s3 + $0x8] sm:$0xf] }
 0x1c6   : > { %9130 = vmatprep.mubr.msk.f32.mxu0 %vm225_vm1, %v10629_v54  ;;  %v11385_v54 = vld [vmem:[%s12390_s2] ss:$0 sm:$0xff] }
 0x1c9   : > { %9131 = vmatmul.mubr.msk.f32.gmra.mrb[16].mxu0 %vm225_vm1, %v10635_v55 }
 0x1ca   : > { %9133 = vmatprep.mubr.msk.f32.mxu0 %vm225_vm1, %v10637_v56 }
 0x1cd   : > { %9134 = vmatmul.mubr.msk.f32.gmra.mrb[18].mxu0 %vm225_vm1, %v10643_v57 }
 0x1ce   : > { %9136 = vmatprep.mubr.msk.f32.mxu0 %vm225_vm1, %v10645_v58 }
 0x1d1   : > { %9137 = vmatmul.mubr.msk.f32.gmra.mrb[20].mxu0 %vm225_vm1, %v10651_v59 }
 0x1d2   : > { %9139 = vmatprep.mubr.msk.f32.mxu0 %vm225_vm1, %v10653_v60 }
 0x1d5   : > { %9140 = vmatmul.mubr.msk.f32.gmra.mrb[22].mxu0 %vm225_vm1, %v10659_v61 }
 0x1d6   : > { %9142 = vmatprep.mubr.msk.f32.mxu0 %vm225_vm1, %v10661_v62 }
 0x1d9   : > { %9143 = vmatmul.mubr.msk.f32.gmra.mrb[24].mxu0 %vm225_vm1, %v10667_v63 }
 0x1da   : > { %9145 = vmatprep.mubr.msk.f32.mxu0 %vm225_vm1, %v10669_v0 }
 0x1dd   : > { %9146 = vmatmul.mubr.msk.f32.gmra.mrb[26].mxu0 %vm225_vm1, %v10675_v1 }
 0x1de   : > { %9148 = vmatprep.mubr.msk.f32.mxu0 %vm225_vm1, %v11015_v13 }
 0x1e1   : > { %9149 = vmatmul.mubr.msk.f32.gmra.mrb[28].mxu0 %vm225_vm1, %v11021_v28 }
 0x1e2   : > { %9151 = vmatprep.mubr.msk.f32.mxu0 %vm225_vm1, %v2714_v30 }
 0x1e5   : > { %9152 = vmatmul.mubr.msk.f32.gmra.mrb[30].mxu0 %vm225_vm1, %v2715_v33 }
 0x1e6   : > { %9156 = vmatprep.mubr.msk.f32.mxu0 %vm225_vm1, %v10694_v39  ;;  %v12662_v39 = vld [vmem:[#allocation51_spill] sm:$0xff] }
 0x1e9   : > { %9157 = vmatmul.mubr.msk.f32.vlgmr.msra.gmra.mrb[0].mxu0 %vm225_vm1, %v10702_v2 }
 0x1ea   : > { %9205 = vmatpush3.msk.msra.mxu0 %vm472_vm0, %v7866_v11  ;;  %9159 = vmatprep.mubr.msk.f32.mxu0 %vm225_vm1, %v10704_v6 }
 0x1ed   : > { %9160 = vmatmul.mubr.msk.f32.gmra.mrb[2].mxu0 %vm225_vm1, %v10710_v9 }
 0x1ee   : > { %9162 = vmatprep.mubr.msk.f32.mxu0 %vm225_vm1, %v10712_v40  ;;  %v12663_v40 = vld [vmem:[#allocation52_spill] sm:$0xff] }
 0x1f1   : > { %9163 = vmatmul.mubr.msk.f32.gmra.mrb[4].mxu0 %vm225_vm1, %v10718_v37  ;;  %v12660_v37 = vld [vmem:[#allocation49_spill] sm:$0xff] }
 0x1f2   : > { %9165 = vmatprep.mubr.msk.f32.mxu0 %vm225_vm1, %v10720_v38  ;;  %v12661_v38 = vld [vmem:[#allocation50_spill] sm:$0xff] }
 0x1f5   : > { %9166 = vmatmul.mubr.msk.f32.gmra.mrb[6].mxu0 %vm225_vm1, %v10726_v31  ;;  %v3105_v31 = vld [vmem:[#allocation2 + $0x1a1] sm:$0xff] }
 0x1f6   : > { %9168 = vmatprep.mubr.msk.f32.mxu0 %vm225_vm1, %v10728_v32  ;;  %v12656_v32 = vld [vmem:[#allocation45_spill] sm:$0xff] }
 0x1f9   : > { %9169 = vmatmul.mubr.msk.f32.gmra.mrb[8].mxu0 %vm225_vm1, %v10734_v26  ;;  %v3104_v26 = vld [vmem:[#allocation2 + $0x199] sm:$0xff] }
 0x1fa   : > { %9171 = vmatprep.mubr.msk.f32.mxu0 %vm225_vm1, %v10736_v27  ;;  %v12655_v27 = vld [vmem:[#allocation70_spill] sm:$0xff] }
 0x1fd   : > { %9172 = vmatmul.mubr.msk.f32.gmra.mrb[10].mxu0 %vm225_vm1, %v10742_v24  ;;  %v12646_v24 = vld [vmem:[#allocation33_spill] sm:$0xff] }
 0x1fe   : > { %9174 = vmatprep.mubr.msk.f32.mxu0 %vm225_vm1, %v10744_v25  ;;  %v12654_v25 = vld [vmem:[#allocation69_spill] sm:$0xff] }
 0x201   : > { %9175 = vmatmul.mubr.msk.f32.gmra.mrb[12].mxu0 %vm225_vm1, %v10750_v22  ;;  %v12647_v22 = vld [vmem:[#allocation34_spill] sm:$0xff] }
 0x202   : > { %9177 = vmatprep.mubr.msk.f32.mxu0 %vm225_vm1, %v10752_v23  ;;  %v12648_v23 = vld [vmem:[#allocation35_spill] sm:$0xff] }
 0x205   : > { %9178 = vmatmul.mubr.msk.f32.gmra.mrb[14].mxu0 %vm225_vm1, %v10758_v20  ;;  %v12649_v20 = vld [vmem:[#allocation36_spill] sm:$0xff] }
 0x206   : > { %9180 = vmatprep.mubr.msk.f32.mxu0 %vm225_vm1, %v10760_v21  ;;  %v12650_v21 = vld [vmem:[#allocation37_spill] sm:$0xff] }
 0x209   : > { %9181 = vmatmul.mubr.msk.f32.gmra.mrb[16].mxu0 %vm225_vm1, %v10766_v18  ;;  %v12651_v18 = vld [vmem:[#allocation40_spill] sm:$0xff] }
 0x20a   : > { %9183 = vmatprep.mubr.msk.f32.mxu0 %vm225_vm1, %v10768_v19  ;;  %v12652_v19 = vld [vmem:[#allocation41_spill] sm:$0xff] }
 0x20d   : > { %9184 = vmatmul.mubr.msk.f32.gmra.mrb[18].mxu0 %vm225_vm1, %v10774_v16  ;;  %v12653_v16 = vld [vmem:[#allocation42_spill] sm:$0xff] }
 0x20e   : > { %9186 = vmatprep.mubr.msk.f32.mxu0 %vm225_vm1, %v12646_v24 }
 0x211   : > { %9187 = vmatmul.mubr.msk.f32.gmra.mrb[20].mxu0 %vm225_vm1, %v12647_v22 }
 0x212   : > { %9189 = vmatprep.mubr.msk.f32.mxu0 %vm225_vm1, %v12648_v23 }
 0x215   : > { %9190 = vmatmul.mubr.msk.f32.gmra.mrb[22].mxu0 %vm225_vm1, %v12649_v20 }
 0x216   : > { %9192 = vmatprep.mubr.msk.f32.mxu0 %vm225_vm1, %v12650_v21 }
 0x219   : > { %9193 = vmatmul.mubr.msk.f32.gmra.mrb[24].mxu0 %vm225_vm1, %v12651_v18 }
 0x21a   : > { %9195 = vmatprep.mubr.msk.f32.mxu0 %vm225_vm1, %v12652_v19 }
 0x21d   : > { %9196 = vmatmul.mubr.msk.f32.gmra.mrb[26].mxu0 %vm225_vm1, %v12653_v16 }
 0x21e   : > { %9198 = vmatprep.mubr.msk.f32.mxu0 %vm225_vm1, %v12654_v25 }
 0x221   : > { %9199 = vmatmul.mubr.msk.f32.gmra.mrb[28].mxu0 %vm225_vm1, %v12655_v27 }
 0x222   : > { %9201 = vmatprep.mubr.msk.f32.mxu0 %vm225_vm1, %v3104_v26 }
 0x225   : > { %9202 = vmatmul.mubr.msk.f32.gmra.mrb[30].mxu0 %vm225_vm1, %v3105_v31 }
 0x226   : > { %9206 = vmatprep.mubr.msk.f32.mxu0 %vm225_vm1, %v12656_v32 }
 0x229   : > { %9207 = vmatmul.mubr.msk.f32.vlgmr.msra.gmra.mrb[0].mxu0 %vm225_vm1, %v12657_v34 }
 0x22a   : > { %9209 = vmatprep.mubr.msk.f32.mxu0 %vm225_vm1, %v12658_v35 }
 0x22d   : > { %9210 = vmatmul.mubr.msk.f32.gmra.mrb[2].mxu0 %vm225_vm1, %v12659_v36 }
 0x22e   : > { %9212 = vmatprep.mubr.msk.f32.mxu0 %vm225_vm1, %v12660_v37 }
 0x231   : > { %9213 = vmatmul.mubr.msk.f32.gmra.mrb[4].mxu0 %vm225_vm1, %v12661_v38 }
 0x232   : > { %9215 = vmatprep.mubr.msk.f32.mxu0 %vm225_vm1, %v12662_v39 }
 0x235   : > { %9216 = vmatmul.mubr.msk.f32.gmra.mrb[6].mxu0 %vm225_vm1, %v12663_v40 }
 0x236   : > { %9218 = vmatprep.mubr.msk.f32.mxu0 %vm225_vm1, %v12664_v43 }
 0x239   : > { %9219 = vmatmul.mubr.msk.f32.gmra.mrb[8].mxu0 %vm225_vm1, %v12665_v44 }
 0x23a   : > { %9221 = vmatprep.mubr.msk.f32.mxu0 %vm225_vm1, %v12666_v45 }
 0x23d   : > { %9222 = vmatmul.mubr.msk.f32.gmra.mrb[10].mxu0 %vm225_vm1, %v12667_v46 }
 0x23e   : > { %9224 = vmatprep.mubr.msk.f32.mxu0 %vm225_vm1, %v12668_v47 }
 0x241   : > { %9225 = vmatmul.mubr.msk.f32.gmra.mrb[12].mxu0 %vm225_vm1, %v12636_v5 }
 0x242   : > { %9227 = vmatprep.mubr.msk.f32.mxu0 %vm225_vm1, %v12669_v48 }
 0x245   : > { %9228 = vmatmul.mubr.msk.f32.gmra.mrb[14].mxu0 %vm225_vm1, %v12638_v17  ;;  %v3926_v17 = vld [vmem:[#allocation2 + $0x8] sm:$0xff] }
 0x246   : > { %9230 = vmatprep.mubr.msk.f32.mxu0 %vm225_vm1, %v12670_v49 }
 0x249   : > { %9231 = vmatmul.mubr.msk.f32.gmra.mrb[16].mxu0 %vm225_vm1, %v12640_v10 }
 0x24a   : > { %9233 = vmatprep.mubr.msk.f32.mxu0 %vm225_vm1, %v12641_v15  ;;  %v12673_v15 = vld [vmem:[#allocation68_spill] sm:$0xff] }
 0x24d   : > { %9234 = vmatmul.mubr.msk.f32.gmra.mrb[18].mxu0 %vm225_vm1, %v12671_v50 }
 0x24e   : > { %9236 = vmatprep.mubr.msk.f32.mxu0 %vm225_vm1, %v12643_v12  ;;  %v3957_v12 = vld [vmem:[%s12391_s3] sm:$0xf] }
 0x24f   : > { %9254 = vmatprep.subr.msk.mxu1 %vm472_vm0, %v3957_v12 }
 0x250   : > { %9255 = vmatpush3.msk.msra.mxu1 %vm472_vm0, %v3957_v12 }
 0x251   : > { %9237 = vmatmul.mubr.msk.f32.gmra.mrb[20].mxu0 %vm225_vm1, %v10923_v4  ;;  %v3494_v4 = vld [vmem:[#allocation2 + $0x19a] sm:$0xff]  ;;  %9304 = vmatprep.subr.msk.mxu1 %vm472_vm0, %v7934_v52 }
 0x252   : > { %9239 = vmatprep.mubr.msk.f32.mxu0 %vm225_vm1, %v12672_v51 }
 0x255   : > { %9240 = vmatmul.mubr.msk.f32.gmra.mrb[22].mxu0 %vm225_vm1, %v10931_v7  ;;  %v3495_v7 = vld [vmem:[#allocation2 + $0x1a2] sm:$0xff] }
 0x256   : > { %9242 = vmatprep.mubr.msk.f32.mxu0 %vm225_vm1, %v12645_v14  ;;  %v3925_v14 = vld [vmem:[#allocation2] sm:$0xff] }
 0x257   : > { %9256 = vmatprep.mubr.msk.f32.mxu1 %vm225_vm1, %v3925_v14 }
 0x258   : > { %9257 = vmatmul.mubr.msk.f32.vlgmr.msra.gmra.mrb[0].mxu1 %vm225_vm1, %v3926_v17 }
 0x259   : > { %9243 = vmatmul.mubr.msk.f32.gmra.mrb[24].mxu0 %vm225_vm1, %v10939_v3  ;;  %9305 = vmatpush3.msk.msra.mxu1 %vm472_vm0, %v7934_v52 }
 0x25a   : > { %9245 = vmatprep.mubr.msk.f32.mxu0 %vm225_vm1, %v12673_v15  ;;  %9354 = vmatprep.subr.msk.mxu1 %vm472_vm0, %v11378_v53 }
 0x25d   : > { %9246 = vmatmul.mubr.msk.f32.gmra.mrb[26].mxu0 %vm225_vm1, %v10947_v41 }
 0x25e   : > { %9248 = vmatprep.mubr.msk.f32.mxu0 %vm225_vm1, %v11161_v8 }
 0x261   : > { %9249 = vmatmul.mubr.msk.f32.gmra.mrb[28].mxu0 %vm225_vm1, %v11167_v29 }
 0x262   : > { %9251 = vmatprep.mubr.msk.f32.mxu0 %vm225_vm1, %v3494_v4 }
 0x265   : > { %9252 = vmatmul.mubr.msk.f32.gmra.mrb[30].mxu0 %vm225_vm1, %v3495_v7 }
 0x2fc   : > { %v9208_v55 = vpop.f32.mrb[0].mxu0 }
 0x2fd   : > { %v9704_v56 = vadd.f32 %v9208_v55, %v11385_v54  ;;  %v3663_v57 = vpop.f32.mrb[1].mxu0 }
 0x2fe   : > { %v9705_v58 = vadd.f32 %v11385_v54, %v3663_v57 }
 0x2ff   : > { %v3855_v59 = vmax.f32 %v9704_v56, 0.0 }
 0x300   : > { %v3854_v60 = vmax.f32 %v9705_v58, 0.0  ;;  %v9211_v61 = vpop.f32.mrb[2].mxu0 }
 0x301   : > { %3887 = vst.msk [vmem:[#allocation2 + $0x21] sm:$0xff] %vm225_vm1, %v3855_v59  ;;  %v9706_v62 = vadd.f32 %v9211_v61, %v11385_v54  ;;  %v3673_v63 = vpop.f32.mrb[3].mxu0 }
 0x302   : > { %3886 = vst.msk [vmem:[#allocation2 + $0x19] sm:$0xff] %vm225_vm1, %v3854_v60  ;;  %v9707_v0 = vadd.f32 %v11385_v54, %v3673_v63 }
 0x303   : > { %v3857_v1 = vmax.f32 %v9706_v62, 0.0 }
 0x304   : > { %v3856_v2 = vmax.f32 %v9707_v0, 0.0  ;;  %v9214_v6 = vpop.f32.mrb[4].mxu0 }
 0x305   : > { %3889 = vst.msk [vmem:[#allocation2 + $0x39] sm:$0xff] %vm225_vm1, %v3857_v1  ;;  %v9708_v9 = vadd.f32 %v9214_v6, %v11385_v54  ;;  %v3683_v3 = vpop.f32.mrb[5].mxu0 }
 0x306   : > { %3888 = vst.msk [vmem:[#allocation2 + $0x31] sm:$0xff] %vm225_vm1, %v3856_v2  ;;  %v9709_v11 = vadd.f32 %v11385_v54, %v3683_v3 }
 0x307   : > { %v3859_v41 = vmax.f32 %v9708_v9, 0.0 }
 0x308   : > { %v3858_v13 = vmax.f32 %v9709_v11, 0.0  ;;  %v9217_v28 = vpop.f32.mrb[6].mxu0 }
 0x309   : > { %3891 = vst.msk [vmem:[#allocation2 + $0x51] sm:$0xff] %vm225_vm1, %v3859_v41  ;;  %v9710_v42 = vadd.f32 %v9217_v28, %v11385_v54  ;;  %v3693_v10 = vpop.f32.mrb[7].mxu0  ;;  %v11399_v8 = vld [vmem:[#allocation2 + $0x18] sm:$0xff]  ;;  %v11401_v5 = vld [vmem:[#allocation2 + $0x20] sm:$0xff] }
 0x30a   : > { %3890 = vst.msk [vmem:[#allocation2 + $0x49] sm:$0xff] %vm225_vm1, %v3858_v13  ;;  %v9711_v29 = vadd.f32 %v11385_v54, %v3693_v10  ;;  %9259 = vmatprep.mubr.msk.f32.mxu1 %vm225_vm1, %v11399_v8 }
 0x30b   : > { %v3861_v30 = vmax.f32 %v9710_v42, 0.0  ;;  %9260 = vmatmul.mubr.msk.f32.gmra.mrb[2].mxu1 %vm225_vm1, %v11401_v5 }
 0x30c   : > { %v3860_v33 = vmax.f32 %v9711_v29, 0.0  ;;  %v9220_v24 = vpop.f32.mrb[8].mxu0 }
 0x30d   : > { %3893 = vst.msk [vmem:[#allocation2 + $0x69] sm:$0xff] %vm225_vm1, %v3861_v30  ;;  %v9712_v22 = vadd.f32 %v9220_v24, %v11385_v54  ;;  %v3703_v23 = vpop.f32.mrb[9].mxu0  ;;  %v11411_v20 = vld [vmem:[#allocation2 + $0x30] sm:$0xff]  ;;  %v11413_v21 = vld [vmem:[#allocation2 + $0x38] sm:$0xff] }
 0x30e   : > { %3892 = vst.msk [vmem:[#allocation2 + $0x61] sm:$0xff] %vm225_vm1, %v3860_v33  ;;  %v9713_v18 = vadd.f32 %v11385_v54, %v3703_v23  ;;  %9262 = vmatprep.mubr.msk.f32.mxu1 %vm225_vm1, %v11411_v20 }
 0x30f   : > { %v3863_v19 = vmax.f32 %v9712_v22, 0.0  ;;  %9263 = vmatmul.mubr.msk.f32.gmra.mrb[4].mxu1 %vm225_vm1, %v11413_v21 }
 0x310   : > { %v3862_v16 = vmax.f32 %v9713_v18, 0.0  ;;  %v9223_v25 = vpop.f32.mrb[10].mxu0 }
 0x311   : > { %3895 = vst.msk [vmem:[#allocation2 + $0x81] sm:$0xff] %vm225_vm1, %v3863_v19  ;;  %v9714_v26 = vadd.f32 %v9223_v25, %v11385_v54  ;;  %v3713_v27 = vpop.f32.mrb[11].mxu0  ;;  %v11423_v31 = vld [vmem:[#allocation2 + $0x48] sm:$0xff]  ;;  %v11425_v32 = vld [vmem:[#allocation2 + $0x50] sm:$0xff] }
 0x312   : > { %3894 = vst.msk [vmem:[#allocation2 + $0x79] sm:$0xff] %vm225_vm1, %v3862_v16  ;;  %v9715_v34 = vadd.f32 %v11385_v54, %v3713_v27  ;;  %9265 = vmatprep.mubr.msk.f32.mxu1 %vm225_vm1, %v11423_v31 }
 0x313   : > { %v3865_v35 = vmax.f32 %v9714_v26, 0.0  ;;  %9266 = vmatmul.mubr.msk.f32.gmra.mrb[6].mxu1 %vm225_vm1, %v11425_v32 }
 0x314   : > { %v3864_v36 = vmax.f32 %v9715_v34, 0.0  ;;  %v9226_v37 = vpop.f32.mrb[12].mxu0 }
 0x315   : > { %3897 = vst.msk [vmem:[#allocation2 + $0x99] sm:$0xff] %vm225_vm1, %v3865_v35  ;;  %v9716_v38 = vadd.f32 %v9226_v37, %v11385_v54  ;;  %v3723_v39 = vpop.f32.mrb[13].mxu0  ;;  %v11435_v40 = vld [vmem:[#allocation2 + $0x60] sm:$0xff]  ;;  %v11437_v43 = vld [vmem:[#allocation2 + $0x68] sm:$0xff] }
 0x316   : > { %3896 = vst.msk [vmem:[#allocation2 + $0x91] sm:$0xff] %vm225_vm1, %v3864_v36  ;;  %v9717_v44 = vadd.f32 %v11385_v54, %v3723_v39  ;;  %9268 = vmatprep.mubr.msk.f32.mxu1 %vm225_vm1, %v11435_v40 }
 0x317   : > { %v3867_v45 = vmax.f32 %v9716_v38, 0.0  ;;  %9269 = vmatmul.mubr.msk.f32.gmra.mrb[8].mxu1 %vm225_vm1, %v11437_v43 }
 0x318   : > { %v3866_v46 = vmax.f32 %v9717_v44, 0.0  ;;  %v9229_v47 = vpop.f32.mrb[14].mxu0 }
 0x319   : > { %3899 = vst.msk [vmem:[#allocation2 + $0xb1] sm:$0xff] %vm225_vm1, %v3867_v45  ;;  %v9718_v48 = vadd.f32 %v9229_v47, %v11385_v54  ;;  %v3733_v49 = vpop.f32.mrb[15].mxu0  ;;  %v11447_v50 = vld [vmem:[#allocation2 + $0x78] sm:$0xff]  ;;  %v11449_v51 = vld [vmem:[#allocation2 + $0x80] sm:$0xff] }
 0x31a   : > { %3898 = vst.msk [vmem:[#allocation2 + $0xa9] sm:$0xff] %vm225_vm1, %v3866_v46  ;;  %v9719_v15 = vadd.f32 %v11385_v54, %v3733_v49  ;;  %9271 = vmatprep.mubr.msk.f32.mxu1 %vm225_vm1, %v11447_v50 }
 0x31b   : > { %v3869_v4 = vmax.f32 %v9718_v48, 0.0  ;;  %9272 = vmatmul.mubr.msk.f32.gmra.mrb[10].mxu1 %vm225_vm1, %v11449_v51 }
 0x31c   : > { %v3868_v7 = vmax.f32 %v9719_v15, 0.0  ;;  %v9232_v12 = vpop.f32.mrb[16].mxu0 }
 0x31d   : > { %3901 = vst.msk [vmem:[#allocation2 + $0xc9] sm:$0xff] %vm225_vm1, %v3869_v4  ;;  %v9720_v14 = vadd.f32 %v9232_v12, %v11385_v54  ;;  %v3743_v17 = vpop.f32.mrb[17].mxu0  ;;  %v11459_v52 = vld [vmem:[#allocation2 + $0x90] sm:$0xff]  ;;  %v11461_v55 = vld [vmem:[#allocation2 + $0x98] sm:$0xff] }
 0x31e   : > { %3900 = vst.msk [vmem:[#allocation2 + $0xc1] sm:$0xff] %vm225_vm1, %v3868_v7  ;;  %v9721_v56 = vadd.f32 %v11385_v54, %v3743_v17  ;;  %9274 = vmatprep.mubr.msk.f32.mxu1 %vm225_vm1, %v11459_v52 }
 0x31f   : > { %v3871_v57 = vmax.f32 %v9720_v14, 0.0  ;;  %9275 = vmatmul.mubr.msk.f32.gmra.mrb[12].mxu1 %vm225_vm1, %v11461_v55 }
 0x320   : > { %v3870_v58 = vmax.f32 %v9721_v56, 0.0  ;;  %v9235_v59 = vpop.f32.mrb[18].mxu0 }
 0x321   : > { %3903 = vst.msk [vmem:[#allocation2 + $0xe1] sm:$0xff] %vm225_vm1, %v3871_v57  ;;  %v9722_v60 = vadd.f32 %v9235_v59, %v11385_v54  ;;  %v3753_v61 = vpop.f32.mrb[19].mxu0  ;;  %v11471_v62 = vld [vmem:[#allocation2 + $0xa8] sm:$0xff]  ;;  %v11473_v63 = vld [vmem:[#allocation2 + $0xb0] sm:$0xff] }
 0x322   : > { %3902 = vst.msk [vmem:[#allocation2 + $0xd9] sm:$0xff] %vm225_vm1, %v3870_v58  ;;  %v9723_v0 = vadd.f32 %v11385_v54, %v3753_v61  ;;  %9277 = vmatprep.mubr.msk.f32.mxu1 %vm225_vm1, %v11471_v62 }
 0x323   : > { %v3873_v1 = vmax.f32 %v9722_v60, 0.0  ;;  %9278 = vmatmul.mubr.msk.f32.gmra.mrb[14].mxu1 %vm225_vm1, %v11473_v63 }
 0x324   : > { %v3872_v2 = vmax.f32 %v9723_v0, 0.0  ;;  %v9238_v6 = vpop.f32.mrb[20].mxu0 }
 0x325   : > { %3905 = vst.msk [vmem:[#allocation2 + $0xf9] sm:$0xff] %vm225_vm1, %v3873_v1  ;;  %v9724_v9 = vadd.f32 %v9238_v6, %v11385_v54  ;;  %v3763_v3 = vpop.f32.mrb[21].mxu0  ;;  %v11483_v11 = vld [vmem:[#allocation2 + $0xc0] sm:$0xff]  ;;  %v11485_v41 = vld [vmem:[#allocation2 + $0xc8] sm:$0xff] }
 0x326   : > { %3904 = vst.msk [vmem:[#allocation2 + $0xf1] sm:$0xff] %vm225_vm1, %v3872_v2  ;;  %v9725_v13 = vadd.f32 %v11385_v54, %v3763_v3  ;;  %9280 = vmatprep.mubr.msk.f32.mxu1 %vm225_vm1, %v11483_v11 }
 0x327   : > { %v3875_v28 = vmax.f32 %v9724_v9, 0.0  ;;  %9281 = vmatmul.mubr.msk.f32.gmra.mrb[16].mxu1 %vm225_vm1, %v11485_v41 }
 0x328   : > { %v3874_v42 = vmax.f32 %v9725_v13, 0.0  ;;  %v9241_v10 = vpop.f32.mrb[22].mxu0  ;;  %v4314_v13 = vld [vmem:[#allocation2 + $0x1] sm:$0xff] }
 0x329   : > { %3907 = vst.msk [vmem:[#allocation2 + $0x111] sm:$0xff] %vm225_vm1, %v3875_v28  ;;  %v9726_v29 = vadd.f32 %v9241_v10, %v11385_v54  ;;  %v3773_v30 = vpop.f32.mrb[23].mxu0  ;;  %v11495_v33 = vld [vmem:[#allocation2 + $0xd8] sm:$0xff]  ;;  %v11497_v24 = vld [vmem:[#allocation2 + $0xe0] sm:$0xff]  ;;  %v4315_v28 = vld [vmem:[#allocation2 + $0x9] sm:$0xff] }
 0x32a   : > { %3906 = vst.msk [vmem:[#allocation2 + $0x109] sm:$0xff] %vm225_vm1, %v3874_v42  ;;  %v9727_v22 = vadd.f32 %v11385_v54, %v3773_v30  ;;  %9283 = vmatprep.mubr.msk.f32.mxu1 %vm225_vm1, %v11495_v33  ;;  %v11575_v42 = vld [vmem:[%s12391_s3 + $0xc] sm:$0xf]  ;;  %v11578_v10 = vld [vmem:[#allocation2 + $0x19] sm:$0xff]  ;;  %v11590_v30 = vld [vmem:[#allocation2 + $0x31] sm:$0xff] }
 0x32b   : > { %v3877_v23 = vmax.f32 %v9726_v29, 0.0  ;;  %9284 = vmatmul.mubr.msk.f32.gmra.mrb[18].mxu1 %vm225_vm1, %v11497_v24  ;;  %v11586_v29 = vld [vmem:[#allocation2 + $0x21] sm:$0xff] }
 0x32c   : > { %v3876_v18 = vmax.f32 %v9727_v22, 0.0  ;;  %v9244_v19 = vpop.f32.mrb[24].mxu0  ;;  %v11594_v22 = vld [vmem:[#allocation2 + $0x39] sm:$0xff] }
 0x32d   : > { %3909 = vst.msk [vmem:[#allocation2 + $0x129] sm:$0xff] %vm225_vm1, %v3877_v23  ;;  %v9728_v16 = vadd.f32 %v9244_v19, %v11385_v54  ;;  %v3783_v25 = vpop.f32.mrb[25].mxu0  ;;  %v11507_v26 = vld [vmem:[#allocation2 + $0xf0] sm:$0xff]  ;;  %v11509_v27 = vld [vmem:[#allocation2 + $0xf8] sm:$0xff] }
 0x32e   : > { %3908 = vst.msk [vmem:[#allocation2 + $0x121] sm:$0xff] %vm225_vm1, %v3876_v18  ;;  %v9729_v34 = vadd.f32 %v11385_v54, %v3783_v25  ;;  %9286 = vmatprep.mubr.msk.f32.mxu1 %vm225_vm1, %v11507_v26  ;;  %v11602_v23 = vld [vmem:[#allocation2 + $0x51] sm:$0xff]  ;;  %v11606_v18 = vld [vmem:[#allocation2 + $0x61] sm:$0xff]  ;;  %v11610_v19 = vld [vmem:[#allocation2 + $0x69] sm:$0xff] }
 0x32f   : > { %v3879_v35 = vmax.f32 %v9728_v16, 0.0  ;;  %9287 = vmatmul.mubr.msk.f32.gmra.mrb[20].mxu1 %vm225_vm1, %v11509_v27  ;;  %v11614_v16 = vld [vmem:[#allocation2 + $0x79] sm:$0xff]  ;;  %v11618_v25 = vld [vmem:[#allocation2 + $0x81] sm:$0xff] }
 0x330   : > { %v3878_v36 = vmax.f32 %v9729_v34, 0.0  ;;  %v9247_v37 = vpop.f32.mrb[26].mxu0  ;;  %v11622_v34 = vld [vmem:[#allocation2 + $0x91] sm:$0xff] }
 0x331   : > { %3911 = vst.msk [vmem:[#allocation2 + $0x141] sm:$0xff] %vm225_vm1, %v3879_v35  ;;  %v9730_v38 = vadd.f32 %v9247_v37, %v11385_v54  ;;  %v3793_v39 = vpop.f32.mrb[27].mxu0  ;;  %v11519_v44 = vld [vmem:[#allocation2 + $0x108] sm:$0xff]  ;;  %v11521_v45 = vld [vmem:[#allocation2 + $0x110] sm:$0xff]  ;;  %v11626_v35 = vld [vmem:[#allocation2 + $0x99] sm:$0xff] }
 0x332   : > { %3910 = vst.msk [vmem:[#allocation2 + $0x139] sm:$0xff] %vm225_vm1, %v3878_v36  ;;  %v9731_v46 = vadd.f32 %v11385_v54, %v3793_v39  ;;  %9289 = vmatprep.mubr.msk.f32.mxu1 %vm225_vm1, %v11519_v44  ;;  %v11630_v36 = vld [vmem:[#allocation2 + $0xa9] sm:$0xff]  ;;  %v11634_v37 = vld [vmem:[#allocation2 + $0xb1] sm:$0xff] }
 0x333   : > { %v3881_v47 = vmax.f32 %v9730_v38, 0.0  ;;  %9290 = vmatmul.mubr.msk.f32.gmra.mrb[22].mxu1 %vm225_vm1, %v11521_v45  ;;  %v11638_v38 = vld [vmem:[#allocation2 + $0xc1] sm:$0xff]  ;;  %v11642_v39 = vld [vmem:[#allocation2 + $0xc9] sm:$0xff] }
 0x334   : > { %v3880_v48 = vmax.f32 %v9731_v46, 0.0  ;;  %v9250_v49 = vpop.f32.mrb[28].mxu0  ;;  %v11646_v46 = vld [vmem:[#allocation2 + $0xd9] sm:$0xff] }
 0x335   : > { %3913 = vst.msk [vmem:[#allocation2 + $0x159] sm:$0xff] %vm225_vm1, %v3881_v47  ;;  %v9732_v15 = vadd.f32 %v9250_v49, %v11385_v54  ;;  %v3803_v4 = vpop.f32.mrb[29].mxu0  ;;  %v11531_v7 = vld [vmem:[#allocation2 + $0x120] sm:$0xff]  ;;  %v11533_v12 = vld [vmem:[#allocation2 + $0x128] sm:$0xff] }
 0x336   : > { %3912 = vst.msk [vmem:[#allocation2 + $0x151] sm:$0xff] %vm225_vm1, %v3880_v48  ;;  %v9733_v14 = vadd.f32 %v11385_v54, %v3803_v4  ;;  %9292 = vmatprep.mubr.msk.f32.mxu1 %vm225_vm1, %v11531_v7  ;;  %v11650_v47 = vld [vmem:[#allocation2 + $0xe1] sm:$0xff]  ;;  %v11654_v48 = vld [vmem:[#allocation2 + $0xf1] sm:$0xff]  ;;  %v11658_v49 = vld [vmem:[#allocation2 + $0xf9] sm:$0xff] }
 0x337   : > { %v3883_v17 = vmax.f32 %v9732_v15, 0.0  ;;  %9293 = vmatmul.mubr.msk.f32.gmra.mrb[24].mxu1 %vm225_vm1, %v11533_v12  ;;  %v11662_v15 = vld [vmem:[#allocation2 + $0x109] sm:$0xff]  ;;  %v11666_v4 = vld [vmem:[#allocation2 + $0x111] sm:$0xff] }
 0x338   : > { %v3882_v56 = vmax.f32 %v9733_v14, 0.0  ;;  %v9253_v57 = vpop.f32.mrb[30].mxu0  ;;  %v11670_v14 = vld [vmem:[#allocation2 + $0x121] sm:$0xff] }
 0x339   : > { %3915 = vst.msk [vmem:[#allocation2 + $0x171] sm:$0xff] %vm225_vm1, %v3883_v17  ;;  %v9734_v58 = vadd.f32 %v9253_v57, %v11385_v54  ;;  %v3813_v59 = vpop.f32.mrb[31].mxu0  ;;  %v11543_v60 = vld [vmem:[#allocation2 + $0x138] sm:$0xff]  ;;  %v11545_v61 = vld [vmem:[#allocation2 + $0x140] sm:$0xff]  ;;  %v11674_v17 = vld [vmem:[#allocation2 + $0x129] sm:$0xff] }
 0x33a   : > { %3914 = vst.msk [vmem:[#allocation2 + $0x169] sm:$0xff] %vm225_vm1, %v3882_v56  ;;  %v9735_v0 = vadd.f32 %v11385_v54, %v3813_v59  ;;  %9295 = vmatprep.mubr.msk.f32.mxu1 %vm225_vm1, %v11543_v60  ;;  %12674 = vst [vmem:[#allocation43_spill] sm:$0xff] %v11674_v17  ;;  %v11678_v56 = vld [vmem:[#allocation2 + $0x139] sm:$0xff]  ;;  %v11682_v57 = vld [vmem:[#allocation2 + $0x141] sm:$0xff] }
 0x33b   : > { %v3885_v1 = vmax.f32 %v9734_v58, 0.0  ;;  %9296 = vmatmul.mubr.msk.f32.gmra.mrb[26].mxu1 %vm225_vm1, %v11545_v61  ;;  %12675 = vst [vmem:[#allocation44_spill] sm:$0xff] %v11678_v56  ;;  %12676 = vst [vmem:[#allocation58_spill] sm:$0xff] %v11682_v57 }
 0x33c   : > { %v3884_v2 = vmax.f32 %v9735_v0, 0.0  ;;  %v11690_v59 = vld [vmem:[#allocation2 + $0x159] sm:$0xff] }
 0x33d   : > { %3917 = vst.msk [vmem:[#allocation2 + $0x189] sm:$0xff] %vm225_vm1, %v3885_v1  ;;  %v11554_v6 = vld [vmem:[#allocation2 + $0x150] sm:$0xff]  ;;  %v11556_v9 = vld [vmem:[#allocation2 + $0x158] sm:$0xff]  ;;  %12678 = vst [vmem:[#allocation62_spill] sm:$0xff] %v11690_v59 }
 0x33e   : > { %3916 = vst.msk [vmem:[#allocation2 + $0x181] sm:$0xff] %vm225_vm1, %v3884_v2  ;;  %9298 = vmatprep.mubr.msk.f32.mxu1 %vm225_vm1, %v11554_v6  ;;  %v11686_v58 = vld [vmem:[#allocation2 + $0x151] sm:$0xff]  ;;  %v4704_v1 = vld [vmem:[#allocation2 + $0x2] sm:$0xff] }
 0x33f   : > { %9299 = vmatmul.mubr.msk.f32.gmra.mrb[28].mxu1 %vm225_vm1, %v11556_v9  ;;  %12677 = vst [vmem:[#allocation60_spill] sm:$0xff] %v11686_v58 }
 0x340   : > { %v11698_v2 = vld [vmem:[#allocation2 + $0x171] sm:$0xff] }
 0x341   : > { %v11563_v54 = vld [vmem:[#allocation2 + $0x168] sm:$0xff]  ;;  %v11565_v3 = vld [vmem:[#allocation2 + $0x170] sm:$0xff]  ;;  %12680 = vst [vmem:[#allocation65_spill] sm:$0xff] %v11698_v2 }
 0x342   : > { %9301 = vmatprep.mubr.msk.f32.mxu1 %vm225_vm1, %v11563_v54  ;;  %v11694_v0 = vld [vmem:[#allocation2 + $0x169] sm:$0xff] }
 0x343   : > { %9302 = vmatmul.mubr.msk.f32.gmra.mrb[30].mxu1 %vm225_vm1, %v11565_v3  ;;  %12679 = vst [vmem:[#allocation63_spill] sm:$0xff] %v11694_v0 }
 0x344   : > { %9306 = vmatprep.mubr.msk.f32.mxu1 %vm225_vm1, %v4314_v13  ;;  %v4705_v13 = vld [vmem:[#allocation2 + $0xa] sm:$0xff] }
 0x347   : > { %9307 = vmatmul.mubr.msk.f32.vlgmr.msra.gmra.mrb[0].mxu1 %vm225_vm1, %v4315_v28  ;;  %v11706_v28 = vld [vmem:[%s12391_s3 + $0x10] sm:$0xf] }
 0x348   : > { %9355 = vmatpush3.msk.msra.mxu1 %vm472_vm0, %v11378_v53  ;;  %9309 = vmatprep.mubr.msk.f32.mxu1 %vm225_vm1, %v11578_v10  ;;  %v11598_v53 = vld [vmem:[#allocation2 + $0x49] sm:$0xff] }
 0x349   : > { %9404 = vmatprep.subr.msk.mxu1 %vm472_vm0, %v11575_v42 }
 0x34b   : > { %9310 = vmatmul.mubr.msk.f32.gmra.mrb[2].mxu1 %vm225_vm1, %v11586_v29 }
 0x34c   : > { %9312 = vmatprep.mubr.msk.f32.mxu1 %vm225_vm1, %v11590_v30 }
 0x34f   : > { %9313 = vmatmul.mubr.msk.f32.gmra.mrb[4].mxu1 %vm225_vm1, %v11594_v22 }
 0x350   : > { %9315 = vmatprep.mubr.msk.f32.mxu1 %vm225_vm1, %v11598_v53 }
 0x353   : > { %9316 = vmatmul.mubr.msk.f32.gmra.mrb[6].mxu1 %vm225_vm1, %v11602_v23 }
 0x354   : > { %9318 = vmatprep.mubr.msk.f32.mxu1 %vm225_vm1, %v11606_v18 }
 0x357   : > { %9319 = vmatmul.mubr.msk.f32.gmra.mrb[8].mxu1 %vm225_vm1, %v11610_v19 }
 0x358   : > { %9321 = vmatprep.mubr.msk.f32.mxu1 %vm225_vm1, %v11614_v16 }
 0x35b   : > { %9322 = vmatmul.mubr.msk.f32.gmra.mrb[10].mxu1 %vm225_vm1, %v11618_v25 }
 0x35c   : > { %9324 = vmatprep.mubr.msk.f32.mxu1 %vm225_vm1, %v11622_v34 }
 0x35f   : > { %9325 = vmatmul.mubr.msk.f32.gmra.mrb[12].mxu1 %vm225_vm1, %v11626_v35 }
 0x360   : > { %9327 = vmatprep.mubr.msk.f32.mxu1 %vm225_vm1, %v11630_v36 }
 0x363   : > { %9328 = vmatmul.mubr.msk.f32.gmra.mrb[14].mxu1 %vm225_vm1, %v11634_v37 }
 0x364   : > { %9330 = vmatprep.mubr.msk.f32.mxu1 %vm225_vm1, %v11638_v38 }
 0x367   : > { %9331 = vmatmul.mubr.msk.f32.gmra.mrb[16].mxu1 %vm225_vm1, %v11642_v39 }
 0x368   : > { %9333 = vmatprep.mubr.msk.f32.mxu1 %vm225_vm1, %v11646_v46 }
 0x36b   : > { %9334 = vmatmul.mubr.msk.f32.gmra.mrb[18].mxu1 %vm225_vm1, %v11650_v47 }
 0x36c   : > { %9336 = vmatprep.mubr.msk.f32.mxu1 %vm225_vm1, %v11654_v48 }
 0x36f   : > { %9337 = vmatmul.mubr.msk.f32.gmra.mrb[20].mxu1 %vm225_vm1, %v11658_v49 }
 0x370   : > { %9339 = vmatprep.mubr.msk.f32.mxu1 %vm225_vm1, %v11662_v15 }
 0x373   : > { %9340 = vmatmul.mubr.msk.f32.gmra.mrb[22].mxu1 %vm225_vm1, %v11666_v4 }
 0x374   : > { %9342 = vmatprep.mubr.msk.f32.mxu1 %vm225_vm1, %v11670_v14 }
 0x377   : > { %9343 = vmatmul.mubr.msk.f32.gmra.mrb[24].mxu1 %vm225_vm1, %v11674_v17 }
 0x378   : > { %9345 = vmatprep.mubr.msk.f32.mxu1 %vm225_vm1, %v11678_v56 }
 0x37b   : > { %9346 = vmatmul.mubr.msk.f32.gmra.mrb[26].mxu1 %vm225_vm1, %v11682_v57 }
 0x37c   : > { %9348 = vmatprep.mubr.msk.f32.mxu1 %vm225_vm1, %v11686_v58 }
 0x37f   : > { %9349 = vmatmul.mubr.msk.f32.gmra.mrb[28].mxu1 %vm225_vm1, %v11690_v59  ;;  %v11709_v59 = vld [vmem:[#allocation2 + $0x1a] sm:$0xff] }
 0x380   : > { %9351 = vmatprep.mubr.msk.f32.mxu1 %vm225_vm1, %v11694_v0  ;;  %12681 = vst [vmem:[#allocation67_spill] sm:$0xff] %v11709_v59 }
 0x383   : > { %9352 = vmatmul.mubr.msk.f32.gmra.mrb[30].mxu1 %vm225_vm1, %v11698_v2  ;;  %v11721_v2 = vld [vmem:[#allocation2 + $0x32] sm:$0xff] }
 0x384   : > { %9356 = vmatprep.mubr.msk.f32.mxu1 %vm225_vm1, %v4704_v1  ;;  %v11717_v1 = vld [vmem:[#allocation2 + $0x22] sm:$0xff]  ;;  %12683 = vst [vmem:[#allocation34_spill] sm:$0xff] %v11721_v2 }
 0x385   : > { %12682 = vst [vmem:[#allocation33_spill] sm:$0xff] %v11717_v1 }
 0x387   : > { %9357 = vmatmul.mubr.msk.f32.vlgmr.msra.gmra.mrb[0].mxu1 %vm225_vm1, %v4705_v13  ;;  %v11725_v13 = vld [vmem:[#allocation2 + $0x3a] sm:$0xff] }
 0x388   : > { %9405 = vmatpush3.msk.msra.mxu1 %vm472_vm0, %v11575_v42  ;;  %9359 = vmatprep.mubr.msk.f32.mxu1 %vm225_vm1, %v11709_v59  ;;  %12684 = vst [vmem:[#allocation35_spill] sm:$0xff] %v11725_v13  ;;  %v11729_v42 = vld [vmem:[#allocation2 + $0x4a] sm:$0xff]  ;;  %v11733_v59 = vld [vmem:[#allocation2 + $0x52] sm:$0xff] }
 0x389   : > { %9454 = vmatprep.subr.msk.mxu1 %vm472_vm0, %v11706_v28  ;;  %12685 = vst [vmem:[#allocation36_spill] sm:$0xff] %v11729_v42  ;;  %12686 = vst [vmem:[#allocation37_spill] sm:$0xff] %v11733_v59 }
 0x38b   : > { %9360 = vmatmul.mubr.msk.f32.gmra.mrb[2].mxu1 %vm225_vm1, %v11717_v1  ;;  %v11737_v1 = vld [vmem:[#allocation2 + $0x62] sm:$0xff] }
 0x38c   : > { %9362 = vmatprep.mubr.msk.f32.mxu1 %vm225_vm1, %v11721_v2  ;;  %12687 = vst [vmem:[#allocation40_spill] sm:$0xff] %v11737_v1  ;;  %v11741_v2 = vld [vmem:[#allocation2 + $0x6a] sm:$0xff] }
 0x38d   : > { %12688 = vst [vmem:[#allocation41_spill] sm:$0xff] %v11741_v2 }
 0x38f   : > { %9363 = vmatmul.mubr.msk.f32.gmra.mrb[4].mxu1 %vm225_vm1, %v11725_v13  ;;  %v11745_v13 = vld [vmem:[#allocation2 + $0x7a] sm:$0xff] }
 0x390   : > { %9365 = vmatprep.mubr.msk.f32.mxu1 %vm225_vm1, %v11729_v42  ;;  %12689 = vst [vmem:[#allocation42_spill] sm:$0xff] %v11745_v13  ;;  %v11749_v42 = vld [vmem:[#allocation2 + $0x82] sm:$0xff] }
 0x391   : > { %12690 = vst [vmem:[#allocation69_spill] sm:$0xff] %v11749_v42 }
 0x393   : > { %9366 = vmatmul.mubr.msk.f32.gmra.mrb[6].mxu1 %vm225_vm1, %v11733_v59  ;;  %v11753_v59 = vld [vmem:[#allocation2 + $0x92] sm:$0xff] }
 0x394   : > { %9368 = vmatprep.mubr.msk.f32.mxu1 %vm225_vm1, %v11737_v1  ;;  %12691 = vst [vmem:[#allocation70_spill] sm:$0xff] %v11753_v59  ;;  %v11757_v1 = vld [vmem:[#allocation2 + $0x9a] sm:$0xff] }
 0x395   : > { %12692 = vst [vmem:[#allocation45_spill] sm:$0xff] %v11757_v1 }
 0x397   : > { %9369 = vmatmul.mubr.msk.f32.gmra.mrb[8].mxu1 %vm225_vm1, %v11741_v2  ;;  %v11761_v2 = vld [vmem:[#allocation2 + $0xaa] sm:$0xff] }
 0x398   : > { %9371 = vmatprep.mubr.msk.f32.mxu1 %vm225_vm1, %v11745_v13  ;;  %12693 = vst [vmem:[#allocation46_spill] sm:$0xff] %v11761_v2  ;;  %v11765_v13 = vld [vmem:[#allocation2 + $0xb2] sm:$0xff] }
 0x399   : > { %12694 = vst [vmem:[#allocation47_spill] sm:$0xff] %v11765_v13 }
 0x39b   : > { %9372 = vmatmul.mubr.msk.f32.gmra.mrb[10].mxu1 %vm225_vm1, %v11749_v42  ;;  %v11769_v42 = vld [vmem:[#allocation2 + $0xc2] sm:$0xff] }
 0x39c   : > { %9374 = vmatprep.mubr.msk.f32.mxu1 %vm225_vm1, %v11753_v59  ;;  %12695 = vst [vmem:[#allocation48_spill] sm:$0xff] %v11769_v42  ;;  %v11773_v59 = vld [vmem:[#allocation2 + $0xca] sm:$0xff] }
 0x39d   : > { %12696 = vst [vmem:[#allocation49_spill] sm:$0xff] %v11773_v59 }
 0x39f   : > { %9375 = vmatmul.mubr.msk.f32.gmra.mrb[12].mxu1 %vm225_vm1, %v11757_v1  ;;  %v11777_v1 = vld [vmem:[#allocation2 + $0xda] sm:$0xff] }
 0x3a0   : > { %9377 = vmatprep.mubr.msk.f32.mxu1 %vm225_vm1, %v11761_v2  ;;  %12697 = vst [vmem:[#allocation50_spill] sm:$0xff] %v11777_v1  ;;  %v11781_v2 = vld [vmem:[#allocation2 + $0xe2] sm:$0xff] }
 0x3a1   : > { %12698 = vst [vmem:[#allocation51_spill] sm:$0xff] %v11781_v2 }
 0x3a3   : > { %9378 = vmatmul.mubr.msk.f32.gmra.mrb[14].mxu1 %vm225_vm1, %v11765_v13  ;;  %v11785_v13 = vld [vmem:[#allocation2 + $0xf2] sm:$0xff] }
 0x3a4   : > { %9380 = vmatprep.mubr.msk.f32.mxu1 %vm225_vm1, %v11769_v42  ;;  %12699 = vst [vmem:[#allocation52_spill] sm:$0xff] %v11785_v13  ;;  %v11789_v42 = vld [vmem:[#allocation2 + $0xfa] sm:$0xff] }
 0x3a5   : > { %12700 = vst [vmem:[#allocation53_spill] sm:$0xff] %v11789_v42 }
 0x3a7   : > { %9381 = vmatmul.mubr.msk.f32.gmra.mrb[16].mxu1 %vm225_vm1, %v11773_v59  ;;  %v11793_v59 = vld [vmem:[#allocation2 + $0x10a] sm:$0xff] }
 0x3a8   : > { %9383 = vmatprep.mubr.msk.f32.mxu1 %vm225_vm1, %v11777_v1  ;;  %12701 = vst [vmem:[#allocation54_spill] sm:$0xff] %v11793_v59  ;;  %v11797_v1 = vld [vmem:[#allocation2 + $0x112] sm:$0xff] }
 0x3a9   : > { %12702 = vst [vmem:[#allocation55_spill] sm:$0xff] %v11797_v1 }
 0x3ab   : > { %9384 = vmatmul.mubr.msk.f32.gmra.mrb[18].mxu1 %vm225_vm1, %v11781_v2  ;;  %v11801_v2 = vld [vmem:[#allocation2 + $0x122] sm:$0xff] }
 0x3ac   : > { %9386 = vmatprep.mubr.msk.f32.mxu1 %vm225_vm1, %v11785_v13  ;;  %12703 = vst [vmem:[#allocation56_spill] sm:$0xff] %v11801_v2  ;;  %v11805_v13 = vld [vmem:[#allocation2 + $0x12a] sm:$0xff] }
 0x3ad   : > { %12704 = vst [vmem:[#allocation57_spill] sm:$0xff] %v11805_v13 }
 0x3af   : > { %9387 = vmatmul.mubr.msk.f32.gmra.mrb[20].mxu1 %vm225_vm1, %v11789_v42  ;;  %v11809_v42 = vld [vmem:[#allocation2 + $0x13a] sm:$0xff] }
 0x3b0   : > { %9389 = vmatprep.mubr.msk.f32.mxu1 %vm225_vm1, %v11793_v59  ;;  %12705 = vst [vmem:[#allocation59_spill] sm:$0xff] %v11809_v42  ;;  %v11813_v59 = vld [vmem:[#allocation2 + $0x142] sm:$0xff] }
 0x3b3   : > { %9390 = vmatmul.mubr.msk.f32.gmra.mrb[22].mxu1 %vm225_vm1, %v11797_v1  ;;  %v11817_v1 = vld [vmem:[#allocation2 + $0x152] sm:$0xff] }
 0x3b4   : > { %9392 = vmatprep.mubr.msk.f32.mxu1 %vm225_vm1, %v11801_v2  ;;  %12706 = vst [vmem:[#allocation61_spill] sm:$0xff] %v11817_v1  ;;  %v11821_v2 = vld [vmem:[#allocation2 + $0x15a] sm:$0xff] }
 0x3b7   : > { %9393 = vmatmul.mubr.msk.f32.gmra.mrb[24].mxu1 %vm225_vm1, %v11805_v13  ;;  %v11825_v13 = vld [vmem:[#allocation2 + $0x16a] sm:$0xff] }
 0x3b8   : > { %9395 = vmatprep.mubr.msk.f32.mxu1 %vm225_vm1, %v11809_v42  ;;  %12707 = vst [vmem:[#allocation64_spill] sm:$0xff] %v11825_v13  ;;  %v11829_v42 = vld [vmem:[#allocation2 + $0x172] sm:$0xff] }
 0x3bb   : > { %9396 = vmatmul.mubr.msk.f32.gmra.mrb[26].mxu1 %vm225_vm1, %v11813_v59 }
 0x3bc   : > { %9398 = vmatprep.mubr.msk.f32.mxu1 %vm225_vm1, %v11817_v1  ;;  %v8070_v1 = vld [vmem:[%s12391_s3 + $0x14] sm:$0xf] }
 0x3bf   : > { %9399 = vmatmul.mubr.msk.f32.gmra.mrb[28].mxu1 %vm225_vm1, %v11821_v2 }
 0x3c0   : > { %9401 = vmatprep.mubr.msk.f32.mxu1 %vm225_vm1, %v11825_v13 }
 0x3c3   : > { %9402 = vmatmul.mubr.msk.f32.gmra.mrb[30].mxu1 %vm225_vm1, %v11829_v42 }
 0x3c4   : > { %9406 = vmatprep.mubr.msk.f32.mxu1 %vm225_vm1, %v11399_v8  ;;  %v11899_v8 = vld [vmem:[#allocation2 + $0x180] sm:$0xff] }
 0x3c7   : > { %9407 = vmatmul.mubr.msk.f32.vlgmr.msra.gmra.mrb[0].mxu1 %vm225_vm1, %v11401_v5  ;;  %v11903_v5 = vld [vmem:[#allocation2 + $0x188] sm:$0xff] }
 0x3c8   : > { %9455 = vmatpush3.msk.msra.mxu1 %vm472_vm0, %v11706_v28  ;;  %9409 = vmatprep.mubr.msk.f32.mxu1 %vm225_vm1, %v11411_v20  ;;  %v8104_v28 = vld [vmem:[%s12391_s3 + $0x18] sm:$0xf] }
 0x3c9   : > { %9504 = vmatprep.subr.msk.mxu1 %vm472_vm0, %v8070_v1 }
 0x3cb   : > { %9410 = vmatmul.mubr.msk.f32.gmra.mrb[2].mxu1 %vm225_vm1, %v11413_v21 }
 0x3cc   : > { %9412 = vmatprep.mubr.msk.f32.mxu1 %vm225_vm1, %v11423_v31 }
 0x3cf   : > { %9413 = vmatmul.mubr.msk.f32.gmra.mrb[4].mxu1 %vm225_vm1, %v11425_v32 }
 0x3d0   : > { %9415 = vmatprep.mubr.msk.f32.mxu1 %vm225_vm1, %v11435_v40 }
 0x3d3   : > { %9416 = vmatmul.mubr.msk.f32.gmra.mrb[6].mxu1 %vm225_vm1, %v11437_v43 }
 0x3d4   : > { %9418 = vmatprep.mubr.msk.f32.mxu1 %vm225_vm1, %v11447_v50 }
 0x3d7   : > { %9419 = vmatmul.mubr.msk.f32.gmra.mrb[8].mxu1 %vm225_vm1, %v11449_v51 }
 0x3d8   : > { %9421 = vmatprep.mubr.msk.f32.mxu1 %vm225_vm1, %v11459_v52 }
 0x3db   : > { %9422 = vmatmul.mubr.msk.f32.gmra.mrb[10].mxu1 %vm225_vm1, %v11461_v55 }
 0x3dc   : > { %9424 = vmatprep.mubr.msk.f32.mxu1 %vm225_vm1, %v11471_v62 }
 0x3df   : > { %9425 = vmatmul.mubr.msk.f32.gmra.mrb[12].mxu1 %vm225_vm1, %v11473_v63 }
 0x3e0   : > { %9427 = vmatprep.mubr.msk.f32.mxu1 %vm225_vm1, %v11483_v11 }
 0x3e3   : > { %9428 = vmatmul.mubr.msk.f32.gmra.mrb[14].mxu1 %vm225_vm1, %v11485_v41 }
 0x3e4   : > { %9430 = vmatprep.mubr.msk.f32.mxu1 %vm225_vm1, %v11495_v33 }
 0x3e7   : > { %9431 = vmatmul.mubr.msk.f32.gmra.mrb[16].mxu1 %vm225_vm1, %v11497_v24 }
 0x3e8   : > { %9433 = vmatprep.mubr.msk.f32.mxu1 %vm225_vm1, %v11507_v26 }
 0x3eb   : > { %9434 = vmatmul.mubr.msk.f32.gmra.mrb[18].mxu1 %vm225_vm1, %v11509_v27 }
 0x3ec   : > { %9436 = vmatprep.mubr.msk.f32.mxu1 %vm225_vm1, %v11519_v44 }
 0x3ef   : > { %9437 = vmatmul.mubr.msk.f32.gmra.mrb[20].mxu1 %vm225_vm1, %v11521_v45 }
 0x3f0   : > { %9439 = vmatprep.mubr.msk.f32.mxu1 %vm225_vm1, %v11531_v7 }
 0x3f3   : > { %9440 = vmatmul.mubr.msk.f32.gmra.mrb[22].mxu1 %vm225_vm1, %v11533_v12 }
 0x3f4   : > { %9442 = vmatprep.mubr.msk.f32.mxu1 %vm225_vm1, %v11543_v60 }
 0x3f7   : > { %9443 = vmatmul.mubr.msk.f32.gmra.mrb[24].mxu1 %vm225_vm1, %v11545_v61 }
 0x3f8   : > { %9445 = vmatprep.mubr.msk.f32.mxu1 %vm225_vm1, %v11554_v6 }
 0x3fb   : > { %9446 = vmatmul.mubr.msk.f32.gmra.mrb[26].mxu1 %vm225_vm1, %v11556_v9 }
 0x3fc   : > { %9448 = vmatprep.mubr.msk.f32.mxu1 %vm225_vm1, %v11563_v54 }
 0x3ff   : > { %9449 = vmatmul.mubr.msk.f32.gmra.mrb[28].mxu1 %vm225_vm1, %v11565_v3 }
 0x400   : > { %9451 = vmatprep.mubr.msk.f32.mxu1 %vm225_vm1, %v11899_v8 }
 0x403   : > { %9452 = vmatmul.mubr.msk.f32.gmra.mrb[30].mxu1 %vm225_vm1, %v11903_v5 }
 0x404   : > { %9456 = vmatprep.mubr.msk.f32.mxu1 %vm225_vm1, %v11578_v10  ;;  %v12708_v10 = vld [vmem:[#allocation62_spill] sm:$0xff] }
 0x407   : > { %9457 = vmatmul.mubr.msk.f32.vlgmr.msra.gmra.mrb[0].mxu1 %vm225_vm1, %v11586_v29  ;;  %v12709_v29 = vld [vmem:[#allocation65_spill] sm:$0xff] }
 0x408   : > { %9505 = vmatpush3.msk.msra.mxu1 %vm472_vm0, %v8070_v1  ;;  %9459 = vmatprep.mubr.msk.f32.mxu1 %vm225_vm1, %v11590_v30  ;;  %v11972_v1 = vld [vmem:[#allocation2 + $0x181] sm:$0xff] }
 0x409   : > { %9554 = vmatprep.subr.msk.mxu1 %vm472_vm0, %v8104_v28  ;;  %12710 = vst [vmem:[#allocation66_spill] sm:$0xff] %v11972_v1 }
 0x40b   : > { %9460 = vmatmul.mubr.msk.f32.gmra.mrb[2].mxu1 %vm225_vm1, %v11594_v22 }
 0x40c   : > { %9462 = vmatprep.mubr.msk.f32.mxu1 %vm225_vm1, %v11598_v53 }
 0x40f   : > { %9463 = vmatmul.mubr.msk.f32.gmra.mrb[4].mxu1 %vm225_vm1, %v11602_v23 }
 0x410   : > { %9465 = vmatprep.mubr.msk.f32.mxu1 %vm225_vm1, %v11606_v18 }
 0x413   : > { %9466 = vmatmul.mubr.msk.f32.gmra.mrb[6].mxu1 %vm225_vm1, %v11610_v19 }
 0x414   : > { %9468 = vmatprep.mubr.msk.f32.mxu1 %vm225_vm1, %v11614_v16 }
 0x417   : > { %9469 = vmatmul.mubr.msk.f32.gmra.mrb[8].mxu1 %vm225_vm1, %v11618_v25 }
 0x418   : > { %9471 = vmatprep.mubr.msk.f32.mxu1 %vm225_vm1, %v11622_v34 }
 0x41b   : > { %9472 = vmatmul.mubr.msk.f32.gmra.mrb[10].mxu1 %vm225_vm1, %v11626_v35 }
 0x41c   : > { %9474 = vmatprep.mubr.msk.f32.mxu1 %vm225_vm1, %v11630_v36 }
 0x41f   : > { %9475 = vmatmul.mubr.msk.f32.gmra.mrb[12].mxu1 %vm225_vm1, %v11634_v37 }
 0x420   : > { %9477 = vmatprep.mubr.msk.f32.mxu1 %vm225_vm1, %v11638_v38 }
 0x423   : > { %9478 = vmatmul.mubr.msk.f32.gmra.mrb[14].mxu1 %vm225_vm1, %v11642_v39 }
 0x424   : > { %9480 = vmatprep.mubr.msk.f32.mxu1 %vm225_vm1, %v11646_v46 }
 0x427   : > { %9481 = vmatmul.mubr.msk.f32.gmra.mrb[16].mxu1 %vm225_vm1, %v11650_v47 }
 0x428   : > { %9483 = vmatprep.mubr.msk.f32.mxu1 %vm225_vm1, %v11654_v48 }
 0x42b   : > { %9484 = vmatmul.mubr.msk.f32.gmra.mrb[18].mxu1 %vm225_vm1, %v11658_v49 }
 0x42c   : > { %9486 = vmatprep.mubr.msk.f32.mxu1 %vm225_vm1, %v11662_v15 }
 0x42f   : > { %9487 = vmatmul.mubr.msk.f32.gmra.mrb[20].mxu1 %vm225_vm1, %v11666_v4 }
 0x430   : > { %9489 = vmatprep.mubr.msk.f32.mxu1 %vm225_vm1, %v11670_v14 }
 0x433   : > { %9490 = vmatmul.mubr.msk.f32.gmra.mrb[22].mxu1 %vm225_vm1, %v11674_v17  ;;  %v12722_v17 = vld [vmem:[#allocation70_spill] sm:$0xff] }
 0x434   : > { %9492 = vmatprep.mubr.msk.f32.mxu1 %vm225_vm1, %v11678_v56  ;;  %v11976_v56 = vld [vmem:[#allocation2 + $0x189] sm:$0xff] }
 0x435   : > { %12711 = vst [vmem:[#allocation68_spill] sm:$0xff] %v11976_v56 }
 0x437   : > { %9493 = vmatmul.mubr.msk.f32.gmra.mrb[24].mxu1 %vm225_vm1, %v11682_v57  ;;  %v12718_v57 = vld [vmem:[#allocation40_spill] sm:$0xff] }
 0x438   : > { %9495 = vmatprep.mubr.msk.f32.mxu1 %vm225_vm1, %v11686_v58  ;;  %v12712_v58 = vld [vmem:[#allocation67_spill] sm:$0xff] }
 0x43b   : > { %9496 = vmatmul.mubr.msk.f32.gmra.mrb[26].mxu1 %vm225_vm1, %v12708_v10  ;;  %v12713_v10 = vld [vmem:[#allocation33_spill] sm:$0xff] }
 0x43c   : > { %9498 = vmatprep.mubr.msk.f32.mxu1 %vm225_vm1, %v11694_v0  ;;  %v8138_v0 = vld [vmem:[%s12391_s3 + $0x1c] sm:$0xf] }
 0x43f   : > { %9499 = vmatmul.mubr.msk.f32.gmra.mrb[28].mxu1 %vm225_vm1, %v12709_v29  ;;  %v12714_v29 = vld [vmem:[#allocation34_spill] sm:$0xff] }
 0x440   : > { %9501 = vmatprep.mubr.msk.f32.mxu1 %vm225_vm1, %v11972_v1  ;;  %v12715_v1 = vld [vmem:[#allocation35_spill] sm:$0xff] }
 0x443   : > { %9502 = vmatmul.mubr.msk.f32.gmra.mrb[30].mxu1 %vm225_vm1, %v11976_v56  ;;  %v12716_v56 = vld [vmem:[#allocation36_spill] sm:$0xff] }
 0x444   : > { %9506 = vmatprep.mubr.msk.f32.mxu1 %vm225_vm1, %v12712_v58  ;;  %v12717_v58 = vld [vmem:[#allocation37_spill] sm:$0xff] }
 0x447   : > { %9507 = vmatmul.mubr.msk.f32.vlgmr.msra.gmra.mrb[0].mxu1 %vm225_vm1, %v12713_v10  ;;  %v12719_v10 = vld [vmem:[#allocation41_spill] sm:$0xff] }
 0x448   : > { %9555 = vmatpush3.msk.msra.mxu1 %vm472_vm0, %v8104_v28  ;;  %9509 = vmatprep.mubr.msk.f32.mxu1 %vm225_vm1, %v12714_v29  ;;  %v12720_v28 = vld [vmem:[#allocation42_spill] sm:$0xff]  ;;  %v12721_v29 = vld [vmem:[#allocation69_spill] sm:$0xff] }
 0x449   : > { %9604 = vmatprep.subr.msk.mxu1 %vm472_vm0, %v8138_v0 }
 0x44b   : > { %9510 = vmatmul.mubr.msk.f32.gmra.mrb[2].mxu1 %vm225_vm1, %v12715_v1  ;;  %v12723_v1 = vld [vmem:[#allocation45_spill] sm:$0xff] }
 0x44c   : > { %9512 = vmatprep.mubr.msk.f32.mxu1 %vm225_vm1, %v12716_v56  ;;  %v12724_v56 = vld [vmem:[#allocation46_spill] sm:$0xff] }
 0x44f   : > { %9513 = vmatmul.mubr.msk.f32.gmra.mrb[4].mxu1 %vm225_vm1, %v12717_v58  ;;  %v12725_v58 = vld [vmem:[#allocation47_spill] sm:$0xff] }
 0x450   : > { %9515 = vmatprep.mubr.msk.f32.mxu1 %vm225_vm1, %v12718_v57  ;;  %v12726_v57 = vld [vmem:[#allocation48_spill] sm:$0xff] }
 0x453   : > { %9516 = vmatmul.mubr.msk.f32.gmra.mrb[6].mxu1 %vm225_vm1, %v12719_v10  ;;  %v12727_v10 = vld [vmem:[#allocation49_spill] sm:$0xff] }
 0x454   : > { %9518 = vmatprep.mubr.msk.f32.mxu1 %vm225_vm1, %v12720_v28  ;;  %v12728_v28 = vld [vmem:[#allocation50_spill] sm:$0xff] }
 0x457   : > { %9519 = vmatmul.mubr.msk.f32.gmra.mrb[8].mxu1 %vm225_vm1, %v12721_v29  ;;  %v12729_v29 = vld [vmem:[#allocation51_spill] sm:$0xff] }
 0x458   : > { %9521 = vmatprep.mubr.msk.f32.mxu1 %vm225_vm1, %v12722_v17  ;;  %v12730_v17 = vld [vmem:[#allocation52_spill] sm:$0xff] }
 0x45b   : > { %9522 = vmatmul.mubr.msk.f32.gmra.mrb[10].mxu1 %vm225_vm1, %v12723_v1  ;;  %v12731_v1 = vld [vmem:[#allocation53_spill] sm:$0xff] }
 0x45c   : > { %9524 = vmatprep.mubr.msk.f32.mxu1 %vm225_vm1, %v12724_v56  ;;  %v12732_v56 = vld [vmem:[#allocation54_spill] sm:$0xff] }
 0x45f   : > { %9525 = vmatmul.mubr.msk.f32.gmra.mrb[12].mxu1 %vm225_vm1, %v12725_v58  ;;  %v12733_v58 = vld [vmem:[#allocation55_spill] sm:$0xff] }
 0x460   : > { %9527 = vmatprep.mubr.msk.f32.mxu1 %vm225_vm1, %v12726_v57  ;;  %v12734_v57 = vld [vmem:[#allocation56_spill] sm:$0xff] }
 0x463   : > { %9528 = vmatmul.mubr.msk.f32.gmra.mrb[14].mxu1 %vm225_vm1, %v12727_v10  ;;  %v12735_v10 = vld [vmem:[#allocation57_spill] sm:$0xff] }
 0x464   : > { %9530 = vmatprep.mubr.msk.f32.mxu1 %vm225_vm1, %v12728_v28  ;;  %v12736_v28 = vld [vmem:[#allocation59_spill] sm:$0xff] }
 0x467   : > { %9531 = vmatmul.mubr.msk.f32.gmra.mrb[16].mxu1 %vm225_vm1, %v12729_v29 }
 0x468   : > { %9533 = vmatprep.mubr.msk.f32.mxu1 %vm225_vm1, %v12730_v17  ;;  %v12737_v17 = vld [vmem:[#allocation61_spill] sm:$0xff] }
 0x46b   : > { %9534 = vmatmul.mubr.msk.f32.gmra.mrb[18].mxu1 %vm225_vm1, %v12731_v1 }
 0x46c   : > { %9536 = vmatprep.mubr.msk.f32.mxu1 %vm225_vm1, %v12732_v56 }
 0x46f   : > { %9537 = vmatmul.mubr.msk.f32.gmra.mrb[20].mxu1 %vm225_vm1, %v12733_v58 }
 0x470   : > { %9539 = vmatprep.mubr.msk.f32.mxu1 %vm225_vm1, %v12734_v57  ;;  %v12045_v57 = vld [vmem:[#allocation2 + $0x182] sm:$0xff] }
 0x473   : > { %9540 = vmatmul.mubr.msk.f32.gmra.mrb[22].mxu1 %vm225_vm1, %v12735_v10 }
 0x474   : > { %9542 = vmatprep.mubr.msk.f32.mxu1 %vm225_vm1, %v12736_v28  ;;  %v12049_v28 = vld [vmem:[#allocation2 + $0x18a] sm:$0xff] }
 0x477   : > { %9543 = vmatmul.mubr.msk.f32.gmra.mrb[24].mxu1 %vm225_vm1, %v11813_v59 }
 0x478   : > { %9545 = vmatprep.mubr.msk.f32.mxu1 %vm225_vm1, %v12737_v17 }
 0x47b   : > { %9546 = vmatmul.mubr.msk.f32.gmra.mrb[26].mxu1 %vm225_vm1, %v11821_v2 }
 0x47c   : > { %9548 = vmatprep.mubr.msk.f32.mxu1 %vm225_vm1, %v11825_v13  ;;  %v8172_v13 = vld [vmem:[%s12391_s3 + $0x20] sm:$0xf] }
 0x47f   : > { %9549 = vmatmul.mubr.msk.f32.gmra.mrb[28].mxu1 %vm225_vm1, %v11829_v42 }
 0x480   : > { %9551 = vmatprep.mubr.msk.f32.mxu1 %vm225_vm1, %v12045_v57 }
 0x483   : > { %9552 = vmatmul.mubr.msk.f32.gmra.mrb[30].mxu1 %vm225_vm1, %v12049_v28 }
 0x484   : > { %9556 = vmatprep.mubr.msk.f32.mxu1 %vm225_vm1, %v11411_v20  ;;  %v6294_v20 = vld [vmem:[#allocation2 + $0x198] sm:$0xff] }
 0x487   : > { %9557 = vmatmul.mubr.msk.f32.vlgmr.msra.gmra.mrb[0].mxu1 %vm225_vm1, %v11413_v21  ;;  %v6295_v21 = vld [vmem:[#allocation2 + $0x1a0] sm:$0xff] }
 0x488   : > { %9605 = vmatpush3.msk.msra.mxu1 %vm472_vm0, %v8138_v0  ;;  %9559 = vmatprep.mubr.msk.f32.mxu1 %vm225_vm1, %v11423_v31  ;;  %v12738_v31 = vld [vmem:[#allocation43_spill] sm:$0xff] }
 0x489   : > { %9654 = vmatprep.subr.msk.mxu1 %vm472_vm0, %v8172_v13 }
 0x48b   : > { %9560 = vmatmul.mubr.msk.f32.gmra.mrb[2].mxu1 %vm225_vm1, %v11425_v32  ;;  %v12739_v32 = vld [vmem:[#allocation44_spill] sm:$0xff] }
 0x48c   : > { %9562 = vmatprep.mubr.msk.f32.mxu1 %vm225_vm1, %v11435_v40  ;;  %v12740_v40 = vld [vmem:[#allocation58_spill] sm:$0xff] }
 0x48f   : > { %9563 = vmatmul.mubr.msk.f32.gmra.mrb[4].mxu1 %vm225_vm1, %v11437_v43  ;;  %v12741_v43 = vld [vmem:[#allocation60_spill] sm:$0xff] }
 0x490   : > { %9565 = vmatprep.mubr.msk.f32.mxu1 %vm225_vm1, %v11447_v50  ;;  %v12742_v50 = vld [vmem:[#allocation62_spill] sm:$0xff] }
 0x493   : > { %9566 = vmatmul.mubr.msk.f32.gmra.mrb[6].mxu1 %vm225_vm1, %v11449_v51  ;;  %v12743_v51 = vld [vmem:[#allocation63_spill] sm:$0xff] }
 0x494   : > { %9568 = vmatprep.mubr.msk.f32.mxu1 %vm225_vm1, %v11459_v52  ;;  %v12744_v52 = vld [vmem:[#allocation65_spill] sm:$0xff] }
 0x497   : > { %9569 = vmatmul.mubr.msk.f32.gmra.mrb[8].mxu1 %vm225_vm1, %v11461_v55  ;;  %v12745_v55 = vld [vmem:[#allocation66_spill] sm:$0xff] }
 0x498   : > { %9571 = vmatprep.mubr.msk.f32.mxu1 %vm225_vm1, %v11471_v62  ;;  %v6684_v62 = vld [vmem:[#allocation2 + $0x199] sm:$0xff] }
 0x49b   : > { %9572 = vmatmul.mubr.msk.f32.gmra.mrb[10].mxu1 %vm225_vm1, %v11473_v63  ;;  %v12746_v63 = vld [vmem:[#allocation68_spill] sm:$0xff] }
 0x49c   : > { %9574 = vmatprep.mubr.msk.f32.mxu1 %vm225_vm1, %v11483_v11  ;;  %v6685_v11 = vld [vmem:[#allocation2 + $0x1a1] sm:$0xff] }
 0x49f   : > { %9575 = vmatmul.mubr.msk.f32.gmra.mrb[12].mxu1 %vm225_vm1, %v11485_v41  ;;  %v12747_v41 = vld [vmem:[#allocation34_spill] sm:$0xff] }
 0x4a0   : > { %9577 = vmatprep.mubr.msk.f32.mxu1 %vm225_vm1, %v11495_v33  ;;  %v12748_v33 = vld [vmem:[#allocation35_spill] sm:$0xff] }
 0x4a3   : > { %9578 = vmatmul.mubr.msk.f32.gmra.mrb[14].mxu1 %vm225_vm1, %v11497_v24  ;;  %v12749_v24 = vld [vmem:[#allocation36_spill] sm:$0xff] }
 0x4a4   : > { %9580 = vmatprep.mubr.msk.f32.mxu1 %vm225_vm1, %v11507_v26  ;;  %v12750_v26 = vld [vmem:[#allocation37_spill] sm:$0xff] }
 0x4a7   : > { %9581 = vmatmul.mubr.msk.f32.gmra.mrb[16].mxu1 %vm225_vm1, %v11509_v27  ;;  %v12751_v27 = vld [vmem:[#allocation40_spill] sm:$0xff] }
 0x4a8   : > { %9583 = vmatprep.mubr.msk.f32.mxu1 %vm225_vm1, %v11519_v44  ;;  %v12752_v44 = vld [vmem:[#allocation41_spill] sm:$0xff] }
 0x4ab   : > { %9584 = vmatmul.mubr.msk.f32.gmra.mrb[18].mxu1 %vm225_vm1, %v11521_v45  ;;  %v12753_v45 = vld [vmem:[#allocation42_spill] sm:$0xff] }
 0x4ac   : > { %9586 = vmatprep.mubr.msk.f32.mxu1 %vm225_vm1, %v11531_v7  ;;  %v12754_v7 = vld [vmem:[#allocation69_spill] sm:$0xff] }
 0x4af   : > { %9587 = vmatmul.mubr.msk.f32.gmra.mrb[20].mxu1 %vm225_vm1, %v11533_v12  ;;  %v12755_v12 = vld [vmem:[#allocation70_spill] sm:$0xff] }
 0x4b0   : > { %9589 = vmatprep.mubr.msk.f32.mxu1 %vm225_vm1, %v11543_v60  ;;  %v12756_v60 = vld [vmem:[#allocation45_spill] sm:$0xff] }
 0x4b3   : > { %9590 = vmatmul.mubr.msk.f32.gmra.mrb[22].mxu1 %vm225_vm1, %v11545_v61  ;;  %v12757_v61 = vld [vmem:[#allocation46_spill] sm:$0xff] }
 0x4b4   : > { %9592 = vmatprep.mubr.msk.f32.mxu1 %vm225_vm1, %v11554_v6  ;;  %v12758_v6 = vld [vmem:[#allocation47_spill] sm:$0xff] }
 0x4b7   : > { %9593 = vmatmul.mubr.msk.f32.gmra.mrb[24].mxu1 %vm225_vm1, %v11556_v9  ;;  %v12759_v9 = vld [vmem:[#allocation48_spill] sm:$0xff] }
 0x4b8   : > { %9595 = vmatprep.mubr.msk.f32.mxu1 %vm225_vm1, %v11563_v54  ;;  %v12760_v54 = vld [vmem:[#allocation49_spill] sm:$0xff] }
 0x4bb   : > { %9596 = vmatmul.mubr.msk.f32.gmra.mrb[26].mxu1 %vm225_vm1, %v11565_v3  ;;  %v12761_v3 = vld [vmem:[#allocation50_spill] sm:$0xff] }
 0x4bc   : > { %9598 = vmatprep.mubr.msk.f32.mxu1 %vm225_vm1, %v11899_v8 }
 0x4bf   : > { %9599 = vmatmul.mubr.msk.f32.gmra.mrb[28].mxu1 %vm225_vm1, %v11903_v5 }
 0x4c0   : > { %9601 = vmatprep.mubr.msk.f32.mxu1 %vm225_vm1, %v6294_v20 }
 0x4c3   : > { %9602 = vmatmul.mubr.msk.f32.gmra.mrb[30].mxu1 %vm225_vm1, %v6295_v21 }
 0x4c4   : > { %9606 = vmatprep.mubr.msk.f32.mxu1 %vm225_vm1, %v11590_v30  ;;  %v12762_v30 = vld [vmem:[#allocation52_spill] sm:$0xff] }
 0x4c7   : > { %9607 = vmatmul.mubr.msk.f32.vlgmr.msra.gmra.mrb[0].mxu1 %vm225_vm1, %v11594_v22  ;;  %v12763_v22 = vld [vmem:[#allocation56_spill] sm:$0xff] }
 0x4c8   : > { %9655 = vmatpush3.msk.msra.mxu1 %vm472_vm0, %v8172_v13  ;;  %9609 = vmatprep.mubr.msk.f32.mxu1 %vm225_vm1, %v11598_v53  ;;  %v12764_v53 = vld [vmem:[#allocation59_spill] sm:$0xff] }
 0x4cb   : > { %9610 = vmatmul.mubr.msk.f32.gmra.mrb[2].mxu1 %vm225_vm1, %v11602_v23  ;;  %v12765_v23 = vld [vmem:[#allocation64_spill] sm:$0xff] }
 0x4cc   : > { %9612 = vmatprep.mubr.msk.f32.mxu1 %vm225_vm1, %v11606_v18  ;;  %v7074_v18 = vld [vmem:[#allocation2 + $0x19a] sm:$0xff] }
 0x4cf   : > { %9613 = vmatmul.mubr.msk.f32.gmra.mrb[4].mxu1 %vm225_vm1, %v11610_v19  ;;  %v7075_v19 = vld [vmem:[#allocation2 + $0x1a2] sm:$0xff] }
 0x4d0   : > { %9615 = vmatprep.mubr.msk.f32.mxu1 %vm225_vm1, %v11614_v16  ;;  %v12248_v16 = vld [vmem:[%s12392_s4] ss:$0 sm:$0xff] }
 0x4d3   : > { %9616 = vmatmul.mubr.msk.f32.gmra.mrb[6].mxu1 %vm225_vm1, %v11618_v25 }
 0x4d4   : > { %9618 = vmatprep.mubr.msk.f32.mxu1 %vm225_vm1, %v11622_v34 }
 0x4d7   : > { %9619 = vmatmul.mubr.msk.f32.gmra.mrb[8].mxu1 %vm225_vm1, %v11626_v35 }
 0x4d8   : > { %9621 = vmatprep.mubr.msk.f32.mxu1 %vm225_vm1, %v11630_v36 }
 0x4db   : > { %9622 = vmatmul.mubr.msk.f32.gmra.mrb[10].mxu1 %vm225_vm1, %v11634_v37 }
 0x4dc   : > { %9624 = vmatprep.mubr.msk.f32.mxu1 %vm225_vm1, %v11638_v38 }
 0x4df   : > { %9625 = vmatmul.mubr.msk.f32.gmra.mrb[12].mxu1 %vm225_vm1, %v11642_v39 }
 0x4e0   : > { %9627 = vmatprep.mubr.msk.f32.mxu1 %vm225_vm1, %v11646_v46  ;;  %v12766_v46 = vld [vmem:[#allocation4_spill] sm:$0xff] }
 0x4e3   : > { %9628 = vmatmul.mubr.msk.f32.gmra.mrb[14].mxu1 %vm225_vm1, %v11650_v47 }
 0x4e4   : > { %9630 = vmatprep.mubr.msk.f32.mxu1 %vm225_vm1, %v11654_v48 }
 0x4e7   : > { %9631 = vmatmul.mubr.msk.f32.gmra.mrb[16].mxu1 %vm225_vm1, %v11658_v49 }
 0x4e8   : > { %9633 = vmatprep.mubr.msk.f32.mxu1 %vm225_vm1, %v11662_v15  ;;  %v12767_v15 = vld [vmem:[#allocation3_spill] sm:$0xff] }
 0x4eb   : > { %9634 = vmatmul.mubr.msk.f32.gmra.mrb[18].mxu1 %vm225_vm1, %v11666_v4 }
 0x4ec   : > { %9636 = vmatprep.mubr.msk.f32.mxu1 %vm225_vm1, %v11670_v14 }
 0x4ef   : > { %9637 = vmatmul.mubr.msk.f32.gmra.mrb[20].mxu1 %vm225_vm1, %v12738_v31  ;;  %v12771_v31 = vld [vmem:[#allocation7_spill] sm:$0xff] }
 0x4f0   : > { %9639 = vmatprep.mubr.msk.f32.mxu1 %vm225_vm1, %v12739_v32 }
 0x4f3   : > { %9640 = vmatmul.mubr.msk.f32.gmra.mrb[22].mxu1 %vm225_vm1, %v12740_v40 }
 0x4f4   : > { %9642 = vmatprep.mubr.msk.f32.mxu1 %vm225_vm1, %v12741_v43 }
 0x4f7   : > { %9643 = vmatmul.mubr.msk.f32.gmra.mrb[24].mxu1 %vm225_vm1, %v12742_v50 }
 0x4f8   : > { %9645 = vmatprep.mubr.msk.f32.mxu1 %vm225_vm1, %v12743_v51 }
 0x4fb   : > { %9646 = vmatmul.mubr.msk.f32.gmra.mrb[26].mxu1 %vm225_vm1, %v12744_v52  ;;  %v12772_v52 = vld [vmem:[#allocation10_spill] sm:$0xff] }
 0x4fc   : > { %9648 = vmatprep.mubr.msk.f32.mxu1 %vm225_vm1, %v12745_v55 }
 0x4ff   : > { %9649 = vmatmul.mubr.msk.f32.gmra.mrb[28].mxu1 %vm225_vm1, %v12746_v63 }
 0x500   : > { %9651 = vmatprep.mubr.msk.f32.mxu1 %vm225_vm1, %v6684_v62 }
 0x503   : > { %9652 = vmatmul.mubr.msk.f32.gmra.mrb[30].mxu1 %vm225_vm1, %v6685_v11  ;;  %v12773_v11 = vld [vmem:[#allocation9_spill] sm:$0xff] }
 0x504   : > { %9656 = vmatprep.mubr.msk.f32.mxu1 %vm225_vm1, %v12747_v41 }
 0x507   : > { %9657 = vmatmul.mubr.msk.f32.vlgmr.msra.gmra.mrb[0].mxu1 %vm225_vm1, %v12748_v33 }
 0x508   : > { %9659 = vmatprep.mubr.msk.f32.mxu1 %vm225_vm1, %v12749_v24 }
 0x50b   : > { %9660 = vmatmul.mubr.msk.f32.gmra.mrb[2].mxu1 %vm225_vm1, %v12750_v26 }
 0x50c   : > { %9662 = vmatprep.mubr.msk.f32.mxu1 %vm225_vm1, %v12751_v27 }
 0x50f   : > { %9663 = vmatmul.mubr.msk.f32.gmra.mrb[4].mxu1 %vm225_vm1, %v12752_v44  ;;  %v12774_v44 = vld [vmem:[#allocation12_spill] sm:$0xff] }
 0x510   : > { %9665 = vmatprep.mubr.msk.f32.mxu1 %vm225_vm1, %v12753_v45 }
 0x513   : > { %9666 = vmatmul.mubr.msk.f32.gmra.mrb[6].mxu1 %vm225_vm1, %v12754_v7 }
 0x514   : > { %9668 = vmatprep.mubr.msk.f32.mxu1 %vm225_vm1, %v12755_v12 }
 0x517   : > { %9669 = vmatmul.mubr.msk.f32.gmra.mrb[8].mxu1 %vm225_vm1, %v12756_v60  ;;  %v12775_v60 = vld [vmem:[#allocation11_spill] sm:$0xff] }
 0x518   : > { %9671 = vmatprep.mubr.msk.f32.mxu1 %vm225_vm1, %v12757_v61 }
 0x51b   : > { %9672 = vmatmul.mubr.msk.f32.gmra.mrb[10].mxu1 %vm225_vm1, %v12758_v6 }
 0x51c   : > { %9674 = vmatprep.mubr.msk.f32.mxu1 %vm225_vm1, %v12759_v9 }
 0x51f   : > { %9675 = vmatmul.mubr.msk.f32.gmra.mrb[12].mxu1 %vm225_vm1, %v12760_v54 }
 0x520   : > { %9677 = vmatprep.mubr.msk.f32.mxu1 %vm225_vm1, %v12761_v3 }
 0x523   : > { %9678 = vmatmul.mubr.msk.f32.gmra.mrb[14].mxu1 %vm225_vm1, %v12729_v29 }
 0x524   : > { %9680 = vmatprep.mubr.msk.f32.mxu1 %vm225_vm1, %v12762_v30  ;;  %v12776_v30 = vld [vmem:[#allocation14_spill] sm:$0xff] }
 0x527   : > { %9681 = vmatmul.mubr.msk.f32.gmra.mrb[16].mxu1 %vm225_vm1, %v12731_v1 }
 0x528   : > { %9683 = vmatprep.mubr.msk.f32.mxu1 %vm225_vm1, %v12732_v56 }
 0x52b   : > { %9684 = vmatmul.mubr.msk.f32.gmra.mrb[18].mxu1 %vm225_vm1, %v12733_v58 }
 0x52c   : > { %9686 = vmatprep.mubr.msk.f32.mxu1 %vm225_vm1, %v12763_v22 }
 0x52f   : > { %9687 = vmatmul.mubr.msk.f32.gmra.mrb[20].mxu1 %vm225_vm1, %v12735_v10  ;;  %v12770_v10 = vld [vmem:[#allocation8_spill] sm:$0xff] }
 0x530   : > { %9689 = vmatprep.mubr.msk.f32.mxu1 %vm225_vm1, %v12764_v53 }
 0x533   : > { %9690 = vmatmul.mubr.msk.f32.gmra.mrb[22].mxu1 %vm225_vm1, %v11813_v59  ;;  %v12768_v59 = vld [vmem:[#allocation6_spill] sm:$0xff] }
 0x534   : > { %9692 = vmatprep.mubr.msk.f32.mxu1 %vm225_vm1, %v12737_v17 }
 0x537   : > { %9693 = vmatmul.mubr.msk.f32.gmra.mrb[24].mxu1 %vm225_vm1, %v11821_v2 }
 0x538   : > { %9695 = vmatprep.mubr.msk.f32.mxu1 %vm225_vm1, %v12765_v23 }
 0x53b   : > { %9696 = vmatmul.mubr.msk.f32.gmra.mrb[26].mxu1 %vm225_vm1, %v11829_v42  ;;  %v12769_v42 = vld [vmem:[#allocation5_spill] sm:$0xff] }
 0x53c   : > { %9698 = vmatprep.mubr.msk.f32.mxu1 %vm225_vm1, %v12045_v57 }
 0x53f   : > { %9699 = vmatmul.mubr.msk.f32.gmra.mrb[28].mxu1 %vm225_vm1, %v12049_v28 }
 0x540   : > { %9701 = vmatprep.mubr.msk.f32.mxu1 %vm225_vm1, %v7074_v18  ;;  %v12777_v18 = vld [vmem:[#allocation13_spill] sm:$0xff] }
 0x543   : > { %9702 = vmatmul.mubr.msk.f32.gmra.mrb[30].mxu1 %vm225_vm1, %v7075_v19 }
 0x5da   : > { %v9658_v25 = vpop.f32.mrb[0].mxu1 }
 0x5db   : > { %v9736_v34 = vadd.f32 %v9658_v25, %v12248_v16  ;;  %v7243_v35 = vpop.f32.mrb[1].mxu1 }
 0x5dc   : > { %v9737_v36 = vadd.f32 %v12248_v16, %v7243_v35 }
 0x5dd   : > { %v7435_v37 = vmul.f32 0.1, %v9736_v34 }
 0x5de   : > { %v7434_v38 = vmul.f32 0.1, %v9737_v36  ;;  %v9661_v39 = vpop.f32.mrb[2].mxu1 }
 0x5df   : > { %v7467_v47 = vadd.f32 %v7435_v37, %v12766_v46  ;;  %v9738_v48 = vadd.f32 %v9661_v39, %v12248_v16  ;;  %v7253_v49 = vpop.f32.mrb[3].mxu1  ;;  %v12778_v37 = vld [vmem:[#allocation16_spill] sm:$0xff] }
 0x5e0   : > { %v7466_v4 = vadd.f32 %v7434_v38, %v12767_v15  ;;  %v9739_v14 = vadd.f32 %v12248_v16, %v7253_v49 }
 0x5e1   : > { %7499 = vst.msk [vmem:[%s12257_s21 + $0x8] sm:$0xff] %vm225_vm1, %v7467_v47  ;;  %v7437_v17 = vmul.f32 0.1, %v9738_v48  ;;  %v12779_v47 = vld [vmem:[#allocation15_spill] sm:$0xff] }
 0x5e2   : > { %7498 = vst.msk [vmem:[%s12257_s21] sm:$0xff] %vm225_vm1, %v7466_v4  ;;  %v7436_v56 = vmul.f32 0.1, %v9739_v14  ;;  %v9664_v57 = vpop.f32.mrb[4].mxu1 }
 0x5e3   : > { %v7469_v0 = vadd.f32 %v7437_v17, %v12768_v59  ;;  %v9740_v2 = vadd.f32 %v9664_v57, %v12248_v16  ;;  %v7263_v13 = vpop.f32.mrb[5].mxu1  ;;  %v12780_v17 = vld [vmem:[#allocation18_spill] sm:$0xff] }
 0x5e4   : > { %v7468_v8 = vadd.f32 %v7436_v56, %v12769_v42  ;;  %v9741_v5 = vadd.f32 %v12248_v16, %v7263_v13 }
 0x5e5   : > { %7501 = vst.msk [vmem:[%s12257_s21 + $0x18] sm:$0xff] %vm225_vm1, %v7469_v0  ;;  %v7439_v29 = vmul.f32 0.1, %v9740_v2  ;;  %v12781_v0 = vld [vmem:[#allocation17_spill] sm:$0xff] }
 0x5e6   : > { %7500 = vst.msk [vmem:[%s12257_s21 + $0x10] sm:$0xff] %vm225_vm1, %v7468_v8  ;;  %v7438_v1 = vmul.f32 0.1, %v9741_v5  ;;  %v9667_v58 = vpop.f32.mrb[6].mxu1 }
 0x5e7   : > { %v7471_v28 = vadd.f32 %v7439_v29, %v12770_v10  ;;  %v9742_v20 = vadd.f32 %v9667_v58, %v12248_v16  ;;  %v7273_v21 = vpop.f32.mrb[7].mxu1  ;;  %v12782_v29 = vld [vmem:[#allocation20_spill] sm:$0xff] }
 0x5e8   : > { %v7470_v32 = vadd.f32 %v7438_v1, %v12771_v31  ;;  %v9743_v40 = vadd.f32 %v12248_v16, %v7273_v21 }
 0x5e9   : > { %7503 = vst.msk [vmem:[%s12257_s21 + $0x28] sm:$0xff] %vm225_vm1, %v7471_v28  ;;  %v7441_v43 = vmul.f32 0.1, %v9742_v20  ;;  %v12783_v28 = vld [vmem:[#allocation19_spill] sm:$0xff] }
 0x5ea   : > { %7502 = vst.msk [vmem:[%s12257_s21 + $0x20] sm:$0xff] %vm225_vm1, %v7470_v32  ;;  %v7440_v50 = vmul.f32 0.1, %v9743_v40  ;;  %v9670_v51 = vpop.f32.mrb[8].mxu1 }
 0x5eb   : > { %v7473_v55 = vadd.f32 %v7441_v43, %v12772_v52  ;;  %v9744_v62 = vadd.f32 %v9670_v51, %v12248_v16  ;;  %v7283_v63 = vpop.f32.mrb[9].mxu1  ;;  %v12784_v43 = vld [vmem:[#allocation22_spill] sm:$0xff] }
 0x5ec   : > { %v7472_v41 = vadd.f32 %v7440_v50, %v12773_v11  ;;  %v9745_v33 = vadd.f32 %v12248_v16, %v7283_v63 }
 0x5ed   : > { %7505 = vst.msk [vmem:[%s12257_s21 + $0x38] sm:$0xff] %vm225_vm1, %v7473_v55  ;;  %v7443_v24 = vmul.f32 0.1, %v9744_v62  ;;  %v12785_v55 = vld [vmem:[#allocation21_spill] sm:$0xff] }
 0x5ee   : > { %7504 = vst.msk [vmem:[%s12257_s21 + $0x30] sm:$0xff] %vm225_vm1, %v7472_v41  ;;  %v7442_v26 = vmul.f32 0.1, %v9745_v33  ;;  %v9673_v27 = vpop.f32.mrb[10].mxu1 }
 0x5ef   : > { %v7475_v45 = vadd.f32 %v7443_v24, %v12774_v44  ;;  %v9746_v7 = vadd.f32 %v9673_v27, %v12248_v16  ;;  %v7293_v12 = vpop.f32.mrb[11].mxu1  ;;  %v12786_v24 = vld [vmem:[#allocation24_spill] sm:$0xff] }
 0x5f0   : > { %v7474_v61 = vadd.f32 %v7442_v26, %v12775_v60  ;;  %v9747_v6 = vadd.f32 %v12248_v16, %v7293_v12 }
 0x5f1   : > { %7507 = vst.msk [vmem:[%s12257_s21 + $0x48] sm:$0xff] %vm225_vm1, %v7475_v45  ;;  %v7445_v9 = vmul.f32 0.1, %v9746_v7  ;;  %v12787_v45 = vld [vmem:[#allocation23_spill] sm:$0xff] }
 0x5f2   : > { %7506 = vst.msk [vmem:[%s12257_s21 + $0x40] sm:$0xff] %vm225_vm1, %v7474_v61  ;;  %v7444_v54 = vmul.f32 0.1, %v9747_v6  ;;  %v9676_v3 = vpop.f32.mrb[12].mxu1 }
 0x5f3   : > { %v7477_v22 = vadd.f32 %v7445_v9, %v12776_v30  ;;  %v9748_v53 = vadd.f32 %v9676_v3, %v12248_v16  ;;  %v7303_v23 = vpop.f32.mrb[13].mxu1  ;;  %v12788_v9 = vld [vmem:[#allocation26_spill] sm:$0xff] }
 0x5f4   : > { %v7476_v19 = vadd.f32 %v7444_v54, %v12777_v18  ;;  %v9749_v25 = vadd.f32 %v12248_v16, %v7303_v23 }
 0x5f5   : > { %7509 = vst.msk [vmem:[%s12257_s21 + $0x58] sm:$0xff] %vm225_vm1, %v7477_v22  ;;  %v7447_v34 = vmul.f32 0.1, %v9748_v53  ;;  %v12789_v22 = vld [vmem:[#allocation25_spill] sm:$0xff] }
 0x5f6   : > { %7508 = vst.msk [vmem:[%s12257_s21 + $0x50] sm:$0xff] %vm225_vm1, %v7476_v19  ;;  %v7446_v35 = vmul.f32 0.1, %v9749_v25  ;;  %v9679_v36 = vpop.f32.mrb[14].mxu1 }
 0x5f7   : > { %v7479_v38 = vadd.f32 %v7447_v34, %v12778_v37  ;;  %v9750_v39 = vadd.f32 %v9679_v36, %v12248_v16  ;;  %v7313_v46 = vpop.f32.mrb[15].mxu1  ;;  %v12790_v34 = vld [vmem:[#allocation28_spill] sm:$0xff] }
 0x5f8   : > { %v7478_v48 = vadd.f32 %v7446_v35, %v12779_v47  ;;  %v9751_v49 = vadd.f32 %v12248_v16, %v7313_v46 }
 0x5f9   : > { %7511 = vst.msk [vmem:[%s12257_s21 + $0x68] sm:$0xff] %vm225_vm1, %v7479_v38  ;;  %v7449_v15 = vmul.f32 0.1, %v9750_v39  ;;  %v12791_v38 = vld [vmem:[#allocation27_spill] sm:$0xff] }
 0x5fa   : > { %7510 = vst.msk [vmem:[%s12257_s21 + $0x60] sm:$0xff] %vm225_vm1, %v7478_v48  ;;  %v7448_v4 = vmul.f32 0.1, %v9751_v49  ;;  %v9682_v14 = vpop.f32.mrb[16].mxu1 }
 0x5fb   : > { %v7481_v56 = vadd.f32 %v7449_v15, %v12780_v17  ;;  %v9752_v57 = vadd.f32 %v9682_v14, %v12248_v16  ;;  %v7323_v59 = vpop.f32.mrb[17].mxu1  ;;  %v12792_v15 = vld [vmem:[#allocation30_spill] sm:$0xff] }
 0x5fc   : > { %v7480_v2 = vadd.f32 %v7448_v4, %v12781_v0  ;;  %v9753_v13 = vadd.f32 %v12248_v16, %v7323_v59 }
 0x5fd   : > { %7513 = vst.msk [vmem:[%s12257_s21 + $0x78] sm:$0xff] %vm225_vm1, %v7481_v56  ;;  %v7451_v42 = vmul.f32 0.1, %v9752_v57  ;;  %v12793_v56 = vld [vmem:[#allocation29_spill] sm:$0xff] }
 0x5fe   : > { %7512 = vst.msk [vmem:[%s12257_s21 + $0x70] sm:$0xff] %vm225_vm1, %v7480_v2  ;;  %v7450_v8 = vmul.f32 0.1, %v9753_v13  ;;  %v9685_v5 = vpop.f32.mrb[18].mxu1 }
 0x5ff   : > { %v7483_v1 = vadd.f32 %v7451_v42, %v12782_v29  ;;  %v9754_v58 = vadd.f32 %v9685_v5, %v12248_v16  ;;  %v7333_v10 = vpop.f32.mrb[19].mxu1  ;;  %v12794_v42 = vld [vmem:[#allocation32_spill] sm:$0xff] }
 0x600   : > { %v7482_v20 = vadd.f32 %v7450_v8, %v12783_v28  ;;  %v9755_v21 = vadd.f32 %v12248_v16, %v7333_v10 }
 0x601   : > { %7515 = vst.msk [vmem:[%s12257_s21 + $0x88] sm:$0xff] %vm225_vm1, %v7483_v1  ;;  %v7453_v31 = vmul.f32 0.1, %v9754_v58  ;;  %v12795_v1 = vld [vmem:[#allocation31_spill] sm:$0xff] }
 0x602   : > { %7514 = vst.msk [vmem:[%s12257_s21 + $0x80] sm:$0xff] %vm225_vm1, %v7482_v20  ;;  %v7452_v32 = vmul.f32 0.1, %v9755_v21  ;;  %v9688_v40 = vpop.f32.mrb[20].mxu1  ;;  %v12796_v21 = vld [vmem:[#allocation39_spill] sm:$0xff] }
 0x603   : > { %v7485_v50 = vadd.f32 %v7453_v31, %v12784_v43  ;;  %v9756_v51 = vadd.f32 %v9688_v40, %v12248_v16  ;;  %v7343_v52 = vpop.f32.mrb[21].mxu1 }
 0x604   : > { %v7484_v62 = vadd.f32 %v7452_v32, %v12785_v55  ;;  %v9757_v63 = vadd.f32 %v12248_v16, %v7343_v52  ;;  %v12797_v32 = vld [vmem:[#allocation38_spill] sm:$0xff] }
 0x605   : > { %7517 = vst.msk [vmem:[%s12257_s21 + $0x98] sm:$0xff] %vm225_vm1, %v7485_v50  ;;  %v7455_v11 = vmul.f32 0.1, %v9756_v51 }
 0x606   : > { %7516 = vst.msk [vmem:[%s12257_s21 + $0x90] sm:$0xff] %vm225_vm1, %v7484_v62  ;;  %v7454_v41 = vmul.f32 0.1, %v9757_v63  ;;  %v9691_v33 = vpop.f32.mrb[22].mxu1 }
 0x607   : > { %v7487_v26 = vadd.f32 %v7455_v11, %v12786_v24  ;;  %v9758_v27 = vadd.f32 %v9691_v33, %v12248_v16  ;;  %v7353_v44 = vpop.f32.mrb[23].mxu1 }
 0x608   : > { %v7486_v7 = vadd.f32 %v7454_v41, %v12787_v45  ;;  %v9759_v12 = vadd.f32 %v12248_v16, %v7353_v44 }
 0x609   : > { %7519 = vst.msk [vmem:[%s12257_s21 + $0xa8] sm:$0xff] %vm225_vm1, %v7487_v26  ;;  %v7457_v60 = vmul.f32 0.1, %v9758_v27 }
 0x60a   : > { %7518 = vst.msk [vmem:[%s12257_s21 + $0xa0] sm:$0xff] %vm225_vm1, %v7486_v7  ;;  %v7456_v61 = vmul.f32 0.1, %v9759_v12  ;;  %v9694_v6 = vpop.f32.mrb[24].mxu1 }
 0x60b   : > { %v7489_v54 = vadd.f32 %v7457_v60, %v12788_v9  ;;  %v9760_v3 = vadd.f32 %v9694_v6, %v12248_v16  ;;  %v7363_v30 = vpop.f32.mrb[25].mxu1 }
 0x60c   : > { %v7488_v53 = vadd.f32 %v7456_v61, %v12789_v22  ;;  %v9761_v23 = vadd.f32 %v12248_v16, %v7363_v30 }
 0x60d   : > { %7521 = vst.msk [vmem:[%s12257_s21 + $0xb8] sm:$0xff] %vm225_vm1, %v7489_v54  ;;  %v7459_v18 = vmul.f32 0.1, %v9760_v3 }
 0x60e   : > { %7520 = vst.msk [vmem:[%s12257_s21 + $0xb0] sm:$0xff] %vm225_vm1, %v7488_v53  ;;  %v7458_v19 = vmul.f32 0.1, %v9761_v23  ;;  %v9697_v25 = vpop.f32.mrb[26].mxu1 }
 0x60f   : > { %v7491_v35 = vadd.f32 %v7459_v18, %v12790_v34  ;;  %v9762_v36 = vadd.f32 %v9697_v25, %v12248_v16  ;;  %v7373_v37 = vpop.f32.mrb[27].mxu1 }
 0x610   : > { %v7490_v39 = vadd.f32 %v7458_v19, %v12791_v38  ;;  %v9763_v46 = vadd.f32 %v12248_v16, %v7373_v37 }
 0x611   : > { %7523 = vst.msk [vmem:[%s12257_s21 + $0xc8] sm:$0xff] %vm225_vm1, %v7491_v35  ;;  %v7461_v47 = vmul.f32 0.1, %v9762_v36 }
 0x612   : > { %7522 = vst.msk [vmem:[%s12257_s21 + $0xc0] sm:$0xff] %vm225_vm1, %v7490_v39  ;;  %v7460_v48 = vmul.f32 0.1, %v9763_v46  ;;  %v9700_v49 = vpop.f32.mrb[28].mxu1 }
 0x613   : > { %v7493_v4 = vadd.f32 %v7461_v47, %v12792_v15  ;;  %v9764_v14 = vadd.f32 %v9700_v49, %v12248_v16  ;;  %v7383_v17 = vpop.f32.mrb[29].mxu1 }
 0x614   : > { %v7492_v57 = vadd.f32 %v7460_v48, %v12793_v56  ;;  %v9765_v59 = vadd.f32 %v12248_v16, %v7383_v17 }
 0x615   : > { %7525 = vst.msk [vmem:[%s12257_s21 + $0xd8] sm:$0xff] %vm225_vm1, %v7493_v4  ;;  %v7463_v0 = vmul.f32 0.1, %v9764_v14 }
 0x616   : > { %7524 = vst.msk [vmem:[%s12257_s21 + $0xd0] sm:$0xff] %vm225_vm1, %v7492_v57  ;;  %v7462_v2 = vmul.f32 0.1, %v9765_v59  ;;  %v9703_v13 = vpop.f32.mrb[30].mxu1 }
 0x617   : > { %v7495_v8 = vadd.f32 %v7463_v0, %v12794_v42  ;;  %v9766_v5 = vadd.f32 %v9703_v13, %v12248_v16  ;;  %v7393_v29 = vpop.f32.mrb[31].mxu1 }
 0x618   : > { %v7494_v58 = vadd.f32 %v7462_v2, %v12795_v1  ;;  %v9767_v10 = vadd.f32 %v12248_v16, %v7393_v29 }
 0x619   : > { %7527 = vst.msk [vmem:[%s12257_s21 + $0xe8] sm:$0xff] %vm225_vm1, %v7495_v8  ;;  %v7465_v28 = vmul.f32 0.1, %v9766_v5 }
 0x61a   : > { %7526 = vst.msk [vmem:[%s12257_s21 + $0xe0] sm:$0xff] %vm225_vm1, %v7494_v58  ;;  %v7464_v20 = vmul.f32 0.1, %v9767_v10 }
 0x61b   : > { %v7497_v31 = vadd.f32 %v7465_v28, %v12796_v21 }
 0x61c   : > { %v7496_v40 = vadd.f32 %v7464_v20, %v12797_v32 }
 0x61d   : > { %7529 = vst.msk [vmem:[%s12257_s21 + $0xf8] sm:$0xff] %vm225_vm1, %v7497_v31 }
 0x61e   : > { %7528 = vst.msk [vmem:[%s12257_s21 + $0xf0] sm:$0xff] %vm225_vm1, %v7496_v40 }
 0x61f PF: > { %s15_s18 = sadd.s32 1, %s10295_s18  }
 0x620   : > { %p12_p4 = scmp.ge.s32.totalorder %s15_s18, 4  }
 0x622   :  { %14 = sbr.rel (!%p12_p4) target bundleno = 1 (0x1), region = 89 }

</bundles_post_ra>
